<compile_context>
chip_gen: v5e
topology: v5e:2x2
jax: 0.10.0
libtpu: 0.0.40
codegen_flags: <defaults>
</compile_context>

<pallas_src>
import functools

import jax
import jax.numpy as jnp
from jax import lax
from jax.experimental import pallas as pl
from jax.experimental.pallas import tpu as pltpu


def bilstm_kernel(x_ref, len_ref, wih_ref, whh_ref, b_ref,
                  hf_ref, hb_ref, *, seq_len, batch, hidden):
    T, B, H = seq_len, batch, hidden

    # Loop-invariant hoists: lengths and biases pre-broadcast to (B, H) so the
    # hot loop only does elementwise compares / adds.
    len_bh = jnp.broadcast_to(len_ref[...], (B, H))                     # (B, H) i32
    bias = [[jnp.broadcast_to(b_ref[d, g], (B, H)) for g in range(4)]   # (B, H) f32
            for d in range(2)]

    def lstm_step(x_t, h, c, d):
        # PyTorch gate order: i, f, g, o.  One small MXU matmul per gate; the
        # gate "slice" is a major-axis weight index (no lane-tile cuts).
        pre = [jnp.dot(x_t, wih_ref[d, g], preferred_element_type=jnp.float32)
               + jnp.dot(h, whh_ref[d, g], preferred_element_type=jnp.float32)
               + bias[d][g]
               for g in range(4)]
        i = jax.nn.sigmoid(pre[0])
        f = jax.nn.sigmoid(pre[1])
        g = jnp.tanh(pre[2])
        o = jax.nn.sigmoid(pre[3])
        c_new = f * c + i * g
        h_new = o * jnp.tanh(c_new)
        return h_new, c_new

    def body(t, carry):
        h_f, c_f, h_b, c_b = carry

        # ---- forward direction, time index t ----
        hf_new, cf_new = lstm_step(x_ref[t], h_f, c_f, 0)
        m_f = t < len_bh
        h_f = jnp.where(m_f, hf_new, h_f)
        c_f = jnp.where(m_f, cf_new, c_f)

        # ---- backward direction, time index T-1-t (same VMEM x buffer) ----
        tb = T - 1 - t
        hb_new, cb_new = lstm_step(x_ref[tb], h_b, c_b, 1)
        m_b = tb < len_bh
        h_b = jnp.where(m_b, hb_new, h_b)
        c_b = jnp.where(m_b, cb_new, c_b)

        return h_f, c_f, h_b, c_b

    z = jnp.zeros((B, H), jnp.float32)
    h_f, _, h_b, _ = lax.fori_loop(0, T, body, (z, z, z, z), unroll=True)

    hf_ref[...] = h_f
    hb_ref[...] = h_b


def bilstm_forward(tokens, lengths, params):
    emb = params["embedding"]            # (V, E), row 0 is the zeroed padding row
    x = jnp.take(emb, tokens, axis=0)    # (B, T, E) -- embedding gather stays in XLA
    B, T, E = x.shape
    H = params["whh_f"].shape[0]

    # Pad batch to a sublane multiple (>= 8 for f32). Padded rows get length 0,
    # so their state stays zero; they are sliced away afterwards.
    B_pad = max(8, ((B + 7) // 8) * 8)
    x_tm = jnp.transpose(x, (1, 0, 2))                               # (T, B, E)
    x_tm = jnp.pad(x_tm, ((0, 0), (0, B_pad - B), (0, 0)))
    len_p = jnp.pad(lengths.astype(jnp.int32), (0, B_pad - B)).reshape(B_pad, 1)

    # Re-stack LSTM weights as (direction, gate, in_dim, H); PyTorch gate order
    # (i, f, g, o) preserved: stacked[d, g] == w[:, g*H:(g+1)*H].
    def per_gate(w, in_dim):
        return w.reshape(in_dim, 4, H).transpose(1, 0, 2)            # (4, in_dim, H)

    wih = jnp.stack([per_gate(params["wih_f"], E), per_gate(params["wih_b"], E)])
    whh = jnp.stack([per_gate(params["whh_f"], H), per_gate(params["whh_b"], H)])
    b = jnp.stack([params["b_f"].reshape(4, 1, H), params["b_b"].reshape(4, 1, H)])

    kernel = functools.partial(bilstm_kernel, seq_len=T, batch=B_pad, hidden=H)
    vmem = pl.BlockSpec(memory_space=pltpu.MemorySpace.VMEM)
    h_f, h_b = pl.pallas_call(
        kernel,
        out_shape=(jax.ShapeDtypeStruct((B_pad, H), jnp.float32),
                   jax.ShapeDtypeStruct((B_pad, H), jnp.float32)),
        in_specs=[vmem] * 5,
        out_specs=(vmem, vmem),
    )(x_tm, len_p, wih, whh, b)

    # Final fc on cat(h_fwd, h_bwd): trivial (B, 2H) @ (2H, O), done in XLA.
    h_f, h_b = h_f[:B], h_b[:B]
    return h_f @ params["wfc_f"] + h_b @ params["wfc_b"] + params["bfc"]


def reference_forward(tokens, lengths, params):
    """Pure-JAX reference matching PyTorch packed BiLSTM + fc semantics."""
    x = jnp.take(params["embedding"], tokens, axis=0)  # (B, T, E)
    B, T, E = x.shape
    H = params["whh_f"].shape[0]

    def run_dir(wih, whh, b, reverse):
        def step(carry, t):
            h, c = carry
            xt = x[:, t]
            gates = xt @ wih + h @ whh + b
            i = jax.nn.sigmoid(gates[:, 0:H])
            f = jax.nn.sigmoid(gates[:, H:2 * H])
            g = jnp.tanh(gates[:, 2 * H:3 * H])
            o = jax.nn.sigmoid(gates[:, 3 * H:4 * H])
            c_new = f * c + i * g
            h_new = o * jnp.tanh(c_new)
            mask = (t < lengths)[:, None]
            return (jnp.where(mask, h_new, h), jnp.where(mask, c_new, c)), None

        ts = jnp.arange(T - 1, -1, -1) if reverse else jnp.arange(T)
        (h, _), _ = lax.scan(step, (jnp.zeros((B, H)), jnp.zeros((B, H))), ts)
        return h

    h_f = run_dir(params["wih_f"], params["whh_f"], params["b_f"][0], False)
    h_b = run_dir(params["wih_b"], params["whh_b"], params["b_b"][0], True)
    return h_f @ params["wfc_f"] + h_b @ params["wfc_b"] + params["bfc"][0]


if __name__ == "__main__":
    V, E, H, O = 20, 16, 32, 4   # vocab_size, embedding_dim, hidden_dim, output_dim
    B, T = 2, 8

    key = jax.random.PRNGKey(0)
    keys = jax.random.split(key, 16)
    scale = 1.0 / jnp.sqrt(H)

    def u(k, shape):
        return jax.random.uniform(k, shape, jnp.float32, -scale, scale)

    emb = jax.random.normal(keys[0], (V, E), jnp.float32) * 0.1
    emb = emb.at[0].set(0.0)  # padding_idx=0

    params = dict(
        embedding=emb,
        wih_f=u(keys[1], (E, 4 * H)), whh_f=u(keys[2], (H, 4 * H)),
        b_f=u(keys[3], (1, 4 * H)) + u(keys[4], (1, 4 * H)),   # b_ih + b_hh
        wih_b=u(keys[5], (E, 4 * H)), whh_b=u(keys[6], (H, 4 * H)),
        b_b=u(keys[7], (1, 4 * H)) + u(keys[8], (1, 4 * H)),
        wfc_f=u(keys[9], (H, O)), wfc_b=u(keys[10], (H, O)),   # fc weight split per direction
        bfc=u(keys[11], (1, O)),
    )

    # enforce_sorted=True -> lengths sorted descending; pad tokens with id 0
    lengths = jnp.array([8, 5], dtype=jnp.int32)
    raw_tok = jax.random.randint(keys[12], (B, T), 1, V)
    pos = jnp.arange(T)[None, :]
    tokens = jnp.where(pos < lengths[:, None], raw_tok, 0)

    out = bilstm_forward(tokens, lengths, params)
    out = jax.block_until_ready(out)

    ref = reference_forward(tokens, lengths, params)
    assert out.shape == (B, O)
    assert jnp.allclose(out, ref, atol=1e-4, rtol=1e-4), (out, ref)
    print("KERNEL_OK")
</pallas_src>

<mosaic_0001>
module attributes {stable_mosaic.version = 11 : i64} {
  func.func @bilstm_kernel(%arg0: memref<8x8x16xf32, #tpu.memory_space<vmem>>, %arg1: memref<8x1xi32, #tpu.memory_space<vmem>>, %arg2: memref<2x4x16x32xf32, #tpu.memory_space<vmem>>, %arg3: memref<2x4x32x32xf32, #tpu.memory_space<vmem>>, %arg4: memref<2x4x1x32xf32, #tpu.memory_space<vmem>>, %arg5: memref<8x32xf32, #tpu.memory_space<vmem>>, %arg6: memref<8x32xf32, #tpu.memory_space<vmem>>) attributes {dimension_semantics = [], scalar_prefetch = 0 : i64, scratch_operands = 0 : i64, tpu.core_type = #tpu.core_type<tc>} {
    %c0 = arith.constant 0 : index
    %c0_0 = arith.constant 0 : index
    %0 = vector.load %arg1[%c0, %c0_0] : memref<8x1xi32, #tpu.memory_space<vmem>>, vector<8x1xi32>
    %1 = vector.shape_cast %0 : vector<8x1xi32> to vector<8x1xi32>
    %2 = vector.broadcast %1 : vector<8x1xi32> to vector<8x32xi32>
    %c0_1 = arith.constant 0 : index
    %c0_2 = arith.constant 0 : index
    %c0_3 = arith.constant 0 : index
    %c0_4 = arith.constant 0 : index
    %3 = vector.load %arg4[%c0_1, %c0_2, %c0_3, %c0_4] : memref<2x4x1x32xf32, #tpu.memory_space<vmem>>, vector<1x1x1x32xf32>
    %4 = vector.shape_cast %3 : vector<1x1x1x32xf32> to vector<1x32xf32>
    %5 = vector.shape_cast %4 : vector<1x32xf32> to vector<1x32xf32>
    %6 = vector.broadcast %5 : vector<1x32xf32> to vector<8x32xf32>
    %c0_5 = arith.constant 0 : index
    %c1 = arith.constant 1 : index
    %c0_6 = arith.constant 0 : index
    %c0_7 = arith.constant 0 : index
    %7 = vector.load %arg4[%c0_5, %c1, %c0_6, %c0_7] : memref<2x4x1x32xf32, #tpu.memory_space<vmem>>, vector<1x1x1x32xf32>
    %8 = vector.shape_cast %7 : vector<1x1x1x32xf32> to vector<1x32xf32>
    %9 = vector.shape_cast %8 : vector<1x32xf32> to vector<1x32xf32>
    %10 = vector.broadcast %9 : vector<1x32xf32> to vector<8x32xf32>
    %c0_8 = arith.constant 0 : index
    %c2 = arith.constant 2 : index
    %c0_9 = arith.constant 0 : index
    %c0_10 = arith.constant 0 : index
    %11 = vector.load %arg4[%c0_8, %c2, %c0_9, %c0_10] : memref<2x4x1x32xf32, #tpu.memory_space<vmem>>, vector<1x1x1x32xf32>
    %12 = vector.shape_cast %11 : vector<1x1x1x32xf32> to vector<1x32xf32>
    %13 = vector.shape_cast %12 : vector<1x32xf32> to vector<1x32xf32>
    %14 = vector.broadcast %13 : vector<1x32xf32> to vector<8x32xf32>
    %c0_11 = arith.constant 0 : index
    %c3 = arith.constant 3 : index
    %c0_12 = arith.constant 0 : index
    %c0_13 = arith.constant 0 : index
    %15 = vector.load %arg4[%c0_11, %c3, %c0_12, %c0_13] : memref<2x4x1x32xf32, #tpu.memory_space<vmem>>, vector<1x1x1x32xf32>
    %16 = vector.shape_cast %15 : vector<1x1x1x32xf32> to vector<1x32xf32>
    %17 = vector.shape_cast %16 : vector<1x32xf32> to vector<1x32xf32>
    %18 = vector.broadcast %17 : vector<1x32xf32> to vector<8x32xf32>
    %c1_14 = arith.constant 1 : index
    %c0_15 = arith.constant 0 : index
    %c0_16 = arith.constant 0 : index
    %c0_17 = arith.constant 0 : index
    %19 = vector.load %arg4[%c1_14, %c0_15, %c0_16, %c0_17] : memref<2x4x1x32xf32, #tpu.memory_space<vmem>>, vector<1x1x1x32xf32>
    %20 = vector.shape_cast %19 : vector<1x1x1x32xf32> to vector<1x32xf32>
    %21 = vector.shape_cast %20 : vector<1x32xf32> to vector<1x32xf32>
    %22 = vector.broadcast %21 : vector<1x32xf32> to vector<8x32xf32>
    %c1_18 = arith.constant 1 : index
    %c1_19 = arith.constant 1 : index
    %c0_20 = arith.constant 0 : index
    %c0_21 = arith.constant 0 : index
    %23 = vector.load %arg4[%c1_18, %c1_19, %c0_20, %c0_21] : memref<2x4x1x32xf32, #tpu.memory_space<vmem>>, vector<1x1x1x32xf32>
    %24 = vector.shape_cast %23 : vector<1x1x1x32xf32> to vector<1x32xf32>
    %25 = vector.shape_cast %24 : vector<1x32xf32> to vector<1x32xf32>
    %26 = vector.broadcast %25 : vector<1x32xf32> to vector<8x32xf32>
    %c1_22 = arith.constant 1 : index
    %c2_23 = arith.constant 2 : index
    %c0_24 = arith.constant 0 : index
    %c0_25 = arith.constant 0 : index
    %27 = vector.load %arg4[%c1_22, %c2_23, %c0_24, %c0_25] : memref<2x4x1x32xf32, #tpu.memory_space<vmem>>, vector<1x1x1x32xf32>
    %28 = vector.shape_cast %27 : vector<1x1x1x32xf32> to vector<1x32xf32>
    %29 = vector.shape_cast %28 : vector<1x32xf32> to vector<1x32xf32>
    %30 = vector.broadcast %29 : vector<1x32xf32> to vector<8x32xf32>
    %c1_26 = arith.constant 1 : index
    %c3_27 = arith.constant 3 : index
    %c0_28 = arith.constant 0 : index
    %c0_29 = arith.constant 0 : index
    %31 = vector.load %arg4[%c1_26, %c3_27, %c0_28, %c0_29] : memref<2x4x1x32xf32, #tpu.memory_space<vmem>>, vector<1x1x1x32xf32>
    %32 = vector.shape_cast %31 : vector<1x1x1x32xf32> to vector<1x32xf32>
    %33 = vector.shape_cast %32 : vector<1x32xf32> to vector<1x32xf32>
    %34 = vector.broadcast %33 : vector<1x32xf32> to vector<8x32xf32>
    %cst = arith.constant 0.000000e+00 : f32
    %35 = vector.broadcast %cst : f32 to vector<8x32xf32>
    %c0_i32 = arith.constant 0 : i32
    %36 = arith.index_cast %c0_i32 : i32 to index
    %c0_30 = arith.constant 0 : index
    %c0_31 = arith.constant 0 : index
    %37 = vector.load %arg0[%36, %c0_30, %c0_31] : memref<8x8x16xf32, #tpu.memory_space<vmem>>, vector<1x8x16xf32>
    %38 = vector.shape_cast %37 : vector<1x8x16xf32> to vector<8x16xf32>
    %c0_32 = arith.constant 0 : index
    %c0_33 = arith.constant 0 : index
    %c0_34 = arith.constant 0 : index
    %c0_35 = arith.constant 0 : index
    %39 = vector.load %arg2[%c0_32, %c0_33, %c0_34, %c0_35] : memref<2x4x16x32xf32, #tpu.memory_space<vmem>>, vector<1x1x16x32xf32>
    %40 = vector.shape_cast %39 : vector<1x1x16x32xf32> to vector<16x32xf32>
    %cst_36 = arith.constant dense<0.000000e+00> : vector<8x32xf32>
    %41 = tpu.matmul %38, %40, %cst_36 {dimension_numbers = #tpu.dot_dimension_numbers<[1], [0], [0], [1], [0, 0, 1, 1], [], []>} : vector<8x16xf32>, vector<16x32xf32>, vector<8x32xf32> -> vector<8x32xf32>
    %c0_37 = arith.constant 0 : index
    %c0_38 = arith.constant 0 : index
    %c0_39 = arith.constant 0 : index
    %c0_40 = arith.constant 0 : index
    %42 = vector.load %arg3[%c0_37, %c0_38, %c0_39, %c0_40] : memref<2x4x32x32xf32, #tpu.memory_space<vmem>>, vector<1x1x32x32xf32>
    %43 = vector.shape_cast %42 : vector<1x1x32x32xf32> to vector<32x32xf32>
    %cst_41 = arith.constant dense<0.000000e+00> : vector<8x32xf32>
    %44 = tpu.matmul %35, %43, %cst_41 {dimension_numbers = #tpu.dot_dimension_numbers<[1], [0], [0], [1], [0, 0, 1, 1], [], []>} : vector<8x32xf32>, vector<32x32xf32>, vector<8x32xf32> -> vector<8x32xf32>
    %45 = arith.addf %41, %44 : vector<8x32xf32>
    %46 = arith.addf %45, %6 : vector<8x32xf32>
    %c0_42 = arith.constant 0 : index
    %c1_43 = arith.constant 1 : index
    %c0_44 = arith.constant 0 : index
    %c0_45 = arith.constant 0 : index
    %47 = vector.load %arg2[%c0_42, %c1_43, %c0_44, %c0_45] : memref<2x4x16x32xf32, #tpu.memory_space<vmem>>, vector<1x1x16x32xf32>
    %48 = vector.shape_cast %47 : vector<1x1x16x32xf32> to vector<16x32xf32>
    %cst_46 = arith.constant dense<0.000000e+00> : vector<8x32xf32>
    %49 = tpu.matmul %38, %48, %cst_46 {dimension_numbers = #tpu.dot_dimension_numbers<[1], [0], [0], [1], [0, 0, 1, 1], [], []>} : vector<8x16xf32>, vector<16x32xf32>, vector<8x32xf32> -> vector<8x32xf32>
    %c0_47 = arith.constant 0 : index
    %c1_48 = arith.constant 1 : index
    %c0_49 = arith.constant 0 : index
    %c0_50 = arith.constant 0 : index
    %50 = vector.load %arg3[%c0_47, %c1_48, %c0_49, %c0_50] : memref<2x4x32x32xf32, #tpu.memory_space<vmem>>, vector<1x1x32x32xf32>
    %51 = vector.shape_cast %50 : vector<1x1x32x32xf32> to vector<32x32xf32>
    %cst_51 = arith.constant dense<0.000000e+00> : vector<8x32xf32>
    %52 = tpu.matmul %35, %51, %cst_51 {dimension_numbers = #tpu.dot_dimension_numbers<[1], [0], [0], [1], [0, 0, 1, 1], [], []>} : vector<8x32xf32>, vector<32x32xf32>, vector<8x32xf32> -> vector<8x32xf32>
    %53 = arith.addf %49, %52 : vector<8x32xf32>
    %54 = arith.addf %53, %10 : vector<8x32xf32>
    %c0_52 = arith.constant 0 : index
    %c2_53 = arith.constant 2 : index
    %c0_54 = arith.constant 0 : index
    %c0_55 = arith.constant 0 : index
    %55 = vector.load %arg2[%c0_52, %c2_53, %c0_54, %c0_55] : memref<2x4x16x32xf32, #tpu.memory_space<vmem>>, vector<1x1x16x32xf32>
    %56 = vector.shape_cast %55 : vector<1x1x16x32xf32> to vector<16x32xf32>
    %cst_56 = arith.constant dense<0.000000e+00> : vector<8x32xf32>
    %57 = tpu.matmul %38, %56, %cst_56 {dimension_numbers = #tpu.dot_dimension_numbers<[1], [0], [0], [1], [0, 0, 1, 1], [], []>} : vector<8x16xf32>, vector<16x32xf32>, vector<8x32xf32> -> vector<8x32xf32>
    %c0_57 = arith.constant 0 : index
    %c2_58 = arith.constant 2 : index
    %c0_59 = arith.constant 0 : index
    %c0_60 = arith.constant 0 : index
    %58 = vector.load %arg3[%c0_57, %c2_58, %c0_59, %c0_60] : memref<2x4x32x32xf32, #tpu.memory_space<vmem>>, vector<1x1x32x32xf32>
    %59 = vector.shape_cast %58 : vector<1x1x32x32xf32> to vector<32x32xf32>
    %cst_61 = arith.constant dense<0.000000e+00> : vector<8x32xf32>
    %60 = tpu.matmul %35, %59, %cst_61 {dimension_numbers = #tpu.dot_dimension_numbers<[1], [0], [0], [1], [0, 0, 1, 1], [], []>} : vector<8x32xf32>, vector<32x32xf32>, vector<8x32xf32> -> vector<8x32xf32>
    %61 = arith.addf %57, %60 : vector<8x32xf32>
    %62 = arith.addf %61, %14 : vector<8x32xf32>
    %c0_62 = arith.constant 0 : index
    %c3_63 = arith.constant 3 : index
    %c0_64 = arith.constant 0 : index
    %c0_65 = arith.constant 0 : index
    %63 = vector.load %arg2[%c0_62, %c3_63, %c0_64, %c0_65] : memref<2x4x16x32xf32, #tpu.memory_space<vmem>>, vector<1x1x16x32xf32>
    %64 = vector.shape_cast %63 : vector<1x1x16x32xf32> to vector<16x32xf32>
    %cst_66 = arith.constant dense<0.000000e+00> : vector<8x32xf32>
    %65 = tpu.matmul %38, %64, %cst_66 {dimension_numbers = #tpu.dot_dimension_numbers<[1], [0], [0], [1], [0, 0, 1, 1], [], []>} : vector<8x16xf32>, vector<16x32xf32>, vector<8x32xf32> -> vector<8x32xf32>
    %c0_67 = arith.constant 0 : index
    %c3_68 = arith.constant 3 : index
    %c0_69 = arith.constant 0 : index
    %c0_70 = arith.constant 0 : index
    %66 = vector.load %arg3[%c0_67, %c3_68, %c0_69, %c0_70] : memref<2x4x32x32xf32, #tpu.memory_space<vmem>>, vector<1x1x32x32xf32>
    %67 = vector.shape_cast %66 : vector<1x1x32x32xf32> to vector<32x32xf32>
    %cst_71 = arith.constant dense<0.000000e+00> : vector<8x32xf32>
    %68 = tpu.matmul %35, %67, %cst_71 {dimension_numbers = #tpu.dot_dimension_numbers<[1], [0], [0], [1], [0, 0, 1, 1], [], []>} : vector<8x32xf32>, vector<32x32xf32>, vector<8x32xf32> -> vector<8x32xf32>
    %69 = arith.addf %65, %68 : vector<8x32xf32>
    %70 = arith.addf %69, %18 : vector<8x32xf32>
    %71 = arith.negf %46 : vector<8x32xf32>
    %72 = math.exp %71 : vector<8x32xf32>
    %cst_72 = arith.constant 1.000000e+00 : f32
    %73 = vector.broadcast %cst_72 : f32 to vector<8x32xf32>
    %74 = arith.addf %73, %72 : vector<8x32xf32>
    %75 = arith.divf %73, %74 : vector<8x32xf32>
    %76 = arith.negf %54 : vector<8x32xf32>
    %77 = math.exp %76 : vector<8x32xf32>
    %cst_73 = arith.constant 1.000000e+00 : f32
    %78 = vector.broadcast %cst_73 : f32 to vector<8x32xf32>
    %79 = arith.addf %78, %77 : vector<8x32xf32>
    %80 = arith.divf %78, %79 : vector<8x32xf32>
    %81 = math.tanh %62 : vector<8x32xf32>
    %82 = arith.negf %70 : vector<8x32xf32>
    %83 = math.exp %82 : vector<8x32xf32>
    %cst_74 = arith.constant 1.000000e+00 : f32
    %84 = vector.broadcast %cst_74 : f32 to vector<8x32xf32>
    %85 = arith.addf %84, %83 : vector<8x32xf32>
    %86 = arith.divf %84, %85 : vector<8x32xf32>
    %87 = arith.mulf %80, %35 : vector<8x32xf32>
    %88 = arith.mulf %75, %81 : vector<8x32xf32>
    %89 = arith.addf %87, %88 : vector<8x32xf32>
    %90 = math.tanh %89 : vector<8x32xf32>
    %91 = arith.mulf %86, %90 : vector<8x32xf32>
    %92 = vector.broadcast %c0_i32 : i32 to vector<8x32xi32>
    %93 = arith.cmpi slt, %92, %2 : vector<8x32xi32>
    %94 = arith.select %93, %91, %35 : vector<8x32xi1>, vector<8x32xf32>
    %95 = arith.select %93, %89, %35 : vector<8x32xi1>, vector<8x32xf32>
    %c7_i32 = arith.constant 7 : i32
    %96 = arith.subi %c7_i32, %c0_i32 : i32
    %97 = arith.index_cast %96 : i32 to index
    %c0_75 = arith.constant 0 : index
    %c0_76 = arith.constant 0 : index
    %98 = vector.load %arg0[%97, %c0_75, %c0_76] : memref<8x8x16xf32, #tpu.memory_space<vmem>>, vector<1x8x16xf32>
    %99 = vector.shape_cast %98 : vector<1x8x16xf32> to vector<8x16xf32>
    %c1_77 = arith.constant 1 : index
    %c0_78 = arith.constant 0 : index
    %c0_79 = arith.constant 0 : index
    %c0_80 = arith.constant 0 : index
    %100 = vector.load %arg2[%c1_77, %c0_78, %c0_79, %c0_80] : memref<2x4x16x32xf32, #tpu.memory_space<vmem>>, vector<1x1x16x32xf32>
    %101 = vector.shape_cast %100 : vector<1x1x16x32xf32> to vector<16x32xf32>
    %cst_81 = arith.constant dense<0.000000e+00> : vector<8x32xf32>
    %102 = tpu.matmul %99, %101, %cst_81 {dimension_numbers = #tpu.dot_dimension_numbers<[1], [0], [0], [1], [0, 0, 1, 1], [], []>} : vector<8x16xf32>, vector<16x32xf32>, vector<8x32xf32> -> vector<8x32xf32>
    %c1_82 = arith.constant 1 : index
    %c0_83 = arith.constant 0 : index
    %c0_84 = arith.constant 0 : index
    %c0_85 = arith.constant 0 : index
    %103 = vector.load %arg3[%c1_82, %c0_83, %c0_84, %c0_85] : memref<2x4x32x32xf32, #tpu.memory_space<vmem>>, vector<1x1x32x32xf32>
    %104 = vector.shape_cast %103 : vector<1x1x32x32xf32> to vector<32x32xf32>
    %cst_86 = arith.constant dense<0.000000e+00> : vector<8x32xf32>
    %105 = tpu.matmul %35, %104, %cst_86 {dimension_numbers = #tpu.dot_dimension_numbers<[1], [0], [0], [1], [0, 0, 1, 1], [], []>} : vector<8x32xf32>, vector<32x32xf32>, vector<8x32xf32> -> vector<8x32xf32>
    %106 = arith.addf %102, %105 : vector<8x32xf32>
    %107 = arith.addf %106, %22 : vector<8x32xf32>
    %c1_87 = arith.constant 1 : index
    %c1_88 = arith.constant 1 : index
    %c0_89 = arith.constant 0 : index
    %c0_90 = arith.constant 0 : index
    %108 = vector.load %arg2[%c1_87, %c1_88, %c0_89, %c0_90] : memref<2x4x16x32xf32, #tpu.memory_space<vmem>>, vector<1x1x16x32xf32>
    %109 = vector.shape_cast %108 : vector<1x1x16x32xf32> to vector<16x32xf32>
    %cst_91 = arith.constant dense<0.000000e+00> : vector<8x32xf32>
    %110 = tpu.matmul %99, %109, %cst_91 {dimension_numbers = #tpu.dot_dimension_numbers<[1], [0], [0], [1], [0, 0, 1, 1], [], []>} : vector<8x16xf32>, vector<16x32xf32>, vector<8x32xf32> -> vector<8x32xf32>
    %c1_92 = arith.constant 1 : index
    %c1_93 = arith.constant 1 : index
    %c0_94 = arith.constant 0 : index
    %c0_95 = arith.constant 0 : index
    %111 = vector.load %arg3[%c1_92, %c1_93, %c0_94, %c0_95] : memref<2x4x32x32xf32, #tpu.memory_space<vmem>>, vector<1x1x32x32xf32>
    %112 = vector.shape_cast %111 : vector<1x1x32x32xf32> to vector<32x32xf32>
    %cst_96 = arith.constant dense<0.000000e+00> : vector<8x32xf32>
    %113 = tpu.matmul %35, %112, %cst_96 {dimension_numbers = #tpu.dot_dimension_numbers<[1], [0], [0], [1], [0, 0, 1, 1], [], []>} : vector<8x32xf32>, vector<32x32xf32>, vector<8x32xf32> -> vector<8x32xf32>
    %114 = arith.addf %110, %113 : vector<8x32xf32>
    %115 = arith.addf %114, %26 : vector<8x32xf32>
    %c1_97 = arith.constant 1 : index
    %c2_98 = arith.constant 2 : index
    %c0_99 = arith.constant 0 : index
    %c0_100 = arith.constant 0 : index
    %116 = vector.load %arg2[%c1_97, %c2_98, %c0_99, %c0_100] : memref<2x4x16x32xf32, #tpu.memory_space<vmem>>, vector<1x1x16x32xf32>
    %117 = vector.shape_cast %116 : vector<1x1x16x32xf32> to vector<16x32xf32>
    %cst_101 = arith.constant dense<0.000000e+00> : vector<8x32xf32>
    %118 = tpu.matmul %99, %117, %cst_101 {dimension_numbers = #tpu.dot_dimension_numbers<[1], [0], [0], [1], [0, 0, 1, 1], [], []>} : vector<8x16xf32>, vector<16x32xf32>, vector<8x32xf32> -> vector<8x32xf32>
    %c1_102 = arith.constant 1 : index
    %c2_103 = arith.constant 2 : index
    %c0_104 = arith.constant 0 : index
    %c0_105 = arith.constant 0 : index
    %119 = vector.load %arg3[%c1_102, %c2_103, %c0_104, %c0_105] : memref<2x4x32x32xf32, #tpu.memory_space<vmem>>, vector<1x1x32x32xf32>
    %120 = vector.shape_cast %119 : vector<1x1x32x32xf32> to vector<32x32xf32>
    %cst_106 = arith.constant dense<0.000000e+00> : vector<8x32xf32>
    %121 = tpu.matmul %35, %120, %cst_106 {dimension_numbers = #tpu.dot_dimension_numbers<[1], [0], [0], [1], [0, 0, 1, 1], [], []>} : vector<8x32xf32>, vector<32x32xf32>, vector<8x32xf32> -> vector<8x32xf32>
    %122 = arith.addf %118, %121 : vector<8x32xf32>
    %123 = arith.addf %122, %30 : vector<8x32xf32>
    %c1_107 = arith.constant 1 : index
    %c3_108 = arith.constant 3 : index
    %c0_109 = arith.constant 0 : index
    %c0_110 = arith.constant 0 : index
    %124 = vector.load %arg2[%c1_107, %c3_108, %c0_109, %c0_110] : memref<2x4x16x32xf32, #tpu.memory_space<vmem>>, vector<1x1x16x32xf32>
    %125 = vector.shape_cast %124 : vector<1x1x16x32xf32> to vector<16x32xf32>
    %cst_111 = arith.constant dense<0.000000e+00> : vector<8x32xf32>
    %126 = tpu.matmul %99, %125, %cst_111 {dimension_numbers = #tpu.dot_dimension_numbers<[1], [0], [0], [1], [0, 0, 1, 1], [], []>} : vector<8x16xf32>, vector<16x32xf32>, vector<8x32xf32> -> vector<8x32xf32>
    %c1_112 = arith.constant 1 : index
    %c3_113 = arith.constant 3 : index
    %c0_114 = arith.constant 0 : index
    %c0_115 = arith.constant 0 : index
    %127 = vector.load %arg3[%c1_112, %c3_113, %c0_114, %c0_115] : memref<2x4x32x32xf32, #tpu.memory_space<vmem>>, vector<1x1x32x32xf32>
    %128 = vector.shape_cast %127 : vector<1x1x32x32xf32> to vector<32x32xf32>
    %cst_116 = arith.constant dense<0.000000e+00> : vector<8x32xf32>
    %129 = tpu.matmul %35, %128, %cst_116 {dimension_numbers = #tpu.dot_dimension_numbers<[1], [0], [0], [1], [0, 0, 1, 1], [], []>} : vector<8x32xf32>, vector<32x32xf32>, vector<8x32xf32> -> vector<8x32xf32>
    %130 = arith.addf %126, %129 : vector<8x32xf32>
    %131 = arith.addf %130, %34 : vector<8x32xf32>
    %132 = arith.negf %107 : vector<8x32xf32>
    %133 = math.exp %132 : vector<8x32xf32>
    %cst_117 = arith.constant 1.000000e+00 : f32
    %134 = vector.broadcast %cst_117 : f32 to vector<8x32xf32>
    %135 = arith.addf %134, %133 : vector<8x32xf32>
    %136 = arith.divf %134, %135 : vector<8x32xf32>
    %137 = arith.negf %115 : vector<8x32xf32>
    %138 = math.exp %137 : vector<8x32xf32>
    %cst_118 = arith.constant 1.000000e+00 : f32
    %139 = vector.broadcast %cst_118 : f32 to vector<8x32xf32>
    %140 = arith.addf %139, %138 : vector<8x32xf32>
    %141 = arith.divf %139, %140 : vector<8x32xf32>
    %142 = math.tanh %123 : vector<8x32xf32>
    %143 = arith.negf %131 : vector<8x32xf32>
    %144 = math.exp %143 : vector<8x32xf32>
    %cst_119 = arith.constant 1.000000e+00 : f32
    %145 = vector.broadcast %cst_119 : f32 to vector<8x32xf32>
    %146 = arith.addf %145, %144 : vector<8x32xf32>
    %147 = arith.divf %145, %146 : vector<8x32xf32>
    %148 = arith.mulf %141, %35 : vector<8x32xf32>
    %149 = arith.mulf %136, %142 : vector<8x32xf32>
    %150 = arith.addf %148, %149 : vector<8x32xf32>
    %151 = math.tanh %150 : vector<8x32xf32>
    %152 = arith.mulf %147, %151 : vector<8x32xf32>
    %153 = vector.broadcast %96 : i32 to vector<8x32xi32>
    %154 = arith.cmpi slt, %153, %2 : vector<8x32xi32>
    %155 = arith.select %154, %152, %35 : vector<8x32xi1>, vector<8x32xf32>
    %156 = arith.select %154, %150, %35 : vector<8x32xi1>, vector<8x32xf32>
    %c1_i32 = arith.constant 1 : i32
    %157 = arith.index_cast %c1_i32 : i32 to index
    %c0_120 = arith.constant 0 : index
    %c0_121 = arith.constant 0 : index
    %158 = vector.load %arg0[%157, %c0_120, %c0_121] : memref<8x8x16xf32, #tpu.memory_space<vmem>>, vector<1x8x16xf32>
    %159 = vector.shape_cast %158 : vector<1x8x16xf32> to vector<8x16xf32>
    %c0_122 = arith.constant 0 : index
    %c0_123 = arith.constant 0 : index
    %c0_124 = arith.constant 0 : index
    %c0_125 = arith.constant 0 : index
    %160 = vector.load %arg2[%c0_122, %c0_123, %c0_124, %c0_125] : memref<2x4x16x32xf32, #tpu.memory_space<vmem>>, vector<1x1x16x32xf32>
    %161 = vector.shape_cast %160 : vector<1x1x16x32xf32> to vector<16x32xf32>
    %cst_126 = arith.constant dense<0.000000e+00> : vector<8x32xf32>
    %162 = tpu.matmul %159, %161, %cst_126 {dimension_numbers = #tpu.dot_dimension_numbers<[1], [0], [0], [1], [0, 0, 1, 1], [], []>} : vector<8x16xf32>, vector<16x32xf32>, vector<8x32xf32> -> vector<8x32xf32>
    %c0_127 = arith.constant 0 : index
    %c0_128 = arith.constant 0 : index
    %c0_129 = arith.constant 0 : index
    %c0_130 = arith.constant 0 : index
    %163 = vector.load %arg3[%c0_127, %c0_128, %c0_129, %c0_130] : memref<2x4x32x32xf32, #tpu.memory_space<vmem>>, vector<1x1x32x32xf32>
    %164 = vector.shape_cast %163 : vector<1x1x32x32xf32> to vector<32x32xf32>
    %cst_131 = arith.constant dense<0.000000e+00> : vector<8x32xf32>
    %165 = tpu.matmul %94, %164, %cst_131 {dimension_numbers = #tpu.dot_dimension_numbers<[1], [0], [0], [1], [0, 0, 1, 1], [], []>} : vector<8x32xf32>, vector<32x32xf32>, vector<8x32xf32> -> vector<8x32xf32>
    %166 = arith.addf %162, %165 : vector<8x32xf32>
    %167 = arith.addf %166, %6 : vector<8x32xf32>
    %c0_132 = arith.constant 0 : index
    %c1_133 = arith.constant 1 : index
    %c0_134 = arith.constant 0 : index
    %c0_135 = arith.constant 0 : index
    %168 = vector.load %arg2[%c0_132, %c1_133, %c0_134, %c0_135] : memref<2x4x16x32xf32, #tpu.memory_space<vmem>>, vector<1x1x16x32xf32>
    %169 = vector.shape_cast %168 : vector<1x1x16x32xf32> to vector<16x32xf32>
    %cst_136 = arith.constant dense<0.000000e+00> : vector<8x32xf32>
    %170 = tpu.matmul %159, %169, %cst_136 {dimension_numbers = #tpu.dot_dimension_numbers<[1], [0], [0], [1], [0, 0, 1, 1], [], []>} : vector<8x16xf32>, vector<16x32xf32>, vector<8x32xf32> -> vector<8x32xf32>
    %c0_137 = arith.constant 0 : index
    %c1_138 = arith.constant 1 : index
    %c0_139 = arith.constant 0 : index
    %c0_140 = arith.constant 0 : index
    %171 = vector.load %arg3[%c0_137, %c1_138, %c0_139, %c0_140] : memref<2x4x32x32xf32, #tpu.memory_space<vmem>>, vector<1x1x32x32xf32>
    %172 = vector.shape_cast %171 : vector<1x1x32x32xf32> to vector<32x32xf32>
    %cst_141 = arith.constant dense<0.000000e+00> : vector<8x32xf32>
    %173 = tpu.matmul %94, %172, %cst_141 {dimension_numbers = #tpu.dot_dimension_numbers<[1], [0], [0], [1], [0, 0, 1, 1], [], []>} : vector<8x32xf32>, vector<32x32xf32>, vector<8x32xf32> -> vector<8x32xf32>
    %174 = arith.addf %170, %173 : vector<8x32xf32>
    %175 = arith.addf %174, %10 : vector<8x32xf32>
    %c0_142 = arith.constant 0 : index
    %c2_143 = arith.constant 2 : index
    %c0_144 = arith.constant 0 : index
    %c0_145 = arith.constant 0 : index
    %176 = vector.load %arg2[%c0_142, %c2_143, %c0_144, %c0_145] : memref<2x4x16x32xf32, #tpu.memory_space<vmem>>, vector<1x1x16x32xf32>
    %177 = vector.shape_cast %176 : vector<1x1x16x32xf32> to vector<16x32xf32>
    %cst_146 = arith.constant dense<0.000000e+00> : vector<8x32xf32>
    %178 = tpu.matmul %159, %177, %cst_146 {dimension_numbers = #tpu.dot_dimension_numbers<[1], [0], [0], [1], [0, 0, 1, 1], [], []>} : vector<8x16xf32>, vector<16x32xf32>, vector<8x32xf32> -> vector<8x32xf32>
    %c0_147 = arith.constant 0 : index
    %c2_148 = arith.constant 2 : index
    %c0_149 = arith.constant 0 : index
    %c0_150 = arith.constant 0 : index
    %179 = vector.load %arg3[%c0_147, %c2_148, %c0_149, %c0_150] : memref<2x4x32x32xf32, #tpu.memory_space<vmem>>, vector<1x1x32x32xf32>
    %180 = vector.shape_cast %179 : vector<1x1x32x32xf32> to vector<32x32xf32>
    %cst_151 = arith.constant dense<0.000000e+00> : vector<8x32xf32>
    %181 = tpu.matmul %94, %180, %cst_151 {dimension_numbers = #tpu.dot_dimension_numbers<[1], [0], [0], [1], [0, 0, 1, 1], [], []>} : vector<8x32xf32>, vector<32x32xf32>, vector<8x32xf32> -> vector<8x32xf32>
    %182 = arith.addf %178, %181 : vector<8x32xf32>
    %183 = arith.addf %182, %14 : vector<8x32xf32>
    %c0_152 = arith.constant 0 : index
    %c3_153 = arith.constant 3 : index
    %c0_154 = arith.constant 0 : index
    %c0_155 = arith.constant 0 : index
    %184 = vector.load %arg2[%c0_152, %c3_153, %c0_154, %c0_155] : memref<2x4x16x32xf32, #tpu.memory_space<vmem>>, vector<1x1x16x32xf32>
    %185 = vector.shape_cast %184 : vector<1x1x16x32xf32> to vector<16x32xf32>
    %cst_156 = arith.constant dense<0.000000e+00> : vector<8x32xf32>
    %186 = tpu.matmul %159, %185, %cst_156 {dimension_numbers = #tpu.dot_dimension_numbers<[1], [0], [0], [1], [0, 0, 1, 1], [], []>} : vector<8x16xf32>, vector<16x32xf32>, vector<8x32xf32> -> vector<8x32xf32>
    %c0_157 = arith.constant 0 : index
    %c3_158 = arith.constant 3 : index
    %c0_159 = arith.constant 0 : index
    %c0_160 = arith.constant 0 : index
    %187 = vector.load %arg3[%c0_157, %c3_158, %c0_159, %c0_160] : memref<2x4x32x32xf32, #tpu.memory_space<vmem>>, vector<1x1x32x32xf32>
    %188 = vector.shape_cast %187 : vector<1x1x32x32xf32> to vector<32x32xf32>
    %cst_161 = arith.constant dense<0.000000e+00> : vector<8x32xf32>
    %189 = tpu.matmul %94, %188, %cst_161 {dimension_numbers = #tpu.dot_dimension_numbers<[1], [0], [0], [1], [0, 0, 1, 1], [], []>} : vector<8x32xf32>, vector<32x32xf32>, vector<8x32xf32> -> vector<8x32xf32>
    %190 = arith.addf %186, %189 : vector<8x32xf32>
    %191 = arith.addf %190, %18 : vector<8x32xf32>
    %192 = arith.negf %167 : vector<8x32xf32>
    %193 = math.exp %192 : vector<8x32xf32>
    %cst_162 = arith.constant 1.000000e+00 : f32
    %194 = vector.broadcast %cst_162 : f32 to vector<8x32xf32>
    %195 = arith.addf %194, %193 : vector<8x32xf32>
    %196 = arith.divf %194, %195 : vector<8x32xf32>
    %197 = arith.negf %175 : vector<8x32xf32>
    %198 = math.exp %197 : vector<8x32xf32>
    %cst_163 = arith.constant 1.000000e+00 : f32
    %199 = vector.broadcast %cst_163 : f32 to vector<8x32xf32>
    %200 = arith.addf %199, %198 : vector<8x32xf32>
    %201 = arith.divf %199, %200 : vector<8x32xf32>
    %202 = math.tanh %183 : vector<8x32xf32>
    %203 = arith.negf %191 : vector<8x32xf32>
    %204 = math.exp %203 : vector<8x32xf32>
    %cst_164 = arith.constant 1.000000e+00 : f32
    %205 = vector.broadcast %cst_164 : f32 to vector<8x32xf32>
    %206 = arith.addf %205, %204 : vector<8x32xf32>
    %207 = arith.divf %205, %206 : vector<8x32xf32>
    %208 = arith.mulf %201, %95 : vector<8x32xf32>
    %209 = arith.mulf %196, %202 : vector<8x32xf32>
    %210 = arith.addf %208, %209 : vector<8x32xf32>
    %211 = math.tanh %210 : vector<8x32xf32>
    %212 = arith.mulf %207, %211 : vector<8x32xf32>
    %213 = vector.broadcast %c1_i32 : i32 to vector<8x32xi32>
    %214 = arith.cmpi slt, %213, %2 : vector<8x32xi32>
    %215 = arith.select %214, %212, %94 : vector<8x32xi1>, vector<8x32xf32>
    %216 = arith.select %214, %210, %95 : vector<8x32xi1>, vector<8x32xf32>
    %c7_i32_165 = arith.constant 7 : i32
    %217 = arith.subi %c7_i32_165, %c1_i32 : i32
    %218 = arith.index_cast %217 : i32 to index
    %c0_166 = arith.constant 0 : index
    %c0_167 = arith.constant 0 : index
    %219 = vector.load %arg0[%218, %c0_166, %c0_167] : memref<8x8x16xf32, #tpu.memory_space<vmem>>, vector<1x8x16xf32>
    %220 = vector.shape_cast %219 : vector<1x8x16xf32> to vector<8x16xf32>
    %c1_168 = arith.constant 1 : index
    %c0_169 = arith.constant 0 : index
    %c0_170 = arith.constant 0 : index
    %c0_171 = arith.constant 0 : index
    %221 = vector.load %arg2[%c1_168, %c0_169, %c0_170, %c0_171] : memref<2x4x16x32xf32, #tpu.memory_space<vmem>>, vector<1x1x16x32xf32>
    %222 = vector.shape_cast %221 : vector<1x1x16x32xf32> to vector<16x32xf32>
    %cst_172 = arith.constant dense<0.000000e+00> : vector<8x32xf32>
    %223 = tpu.matmul %220, %222, %cst_172 {dimension_numbers = #tpu.dot_dimension_numbers<[1], [0], [0], [1], [0, 0, 1, 1], [], []>} : vector<8x16xf32>, vector<16x32xf32>, vector<8x32xf32> -> vector<8x32xf32>
    %c1_173 = arith.constant 1 : index
    %c0_174 = arith.constant 0 : index
    %c0_175 = arith.constant 0 : index
    %c0_176 = arith.constant 0 : index
    %224 = vector.load %arg3[%c1_173, %c0_174, %c0_175, %c0_176] : memref<2x4x32x32xf32, #tpu.memory_space<vmem>>, vector<1x1x32x32xf32>
    %225 = vector.shape_cast %224 : vector<1x1x32x32xf32> to vector<32x32xf32>
    %cst_177 = arith.constant dense<0.000000e+00> : vector<8x32xf32>
    %226 = tpu.matmul %155, %225, %cst_177 {dimension_numbers = #tpu.dot_dimension_numbers<[1], [0], [0], [1], [0, 0, 1, 1], [], []>} : vector<8x32xf32>, vector<32x32xf32>, vector<8x32xf32> -> vector<8x32xf32>
    %227 = arith.addf %223, %226 : vector<8x32xf32>
    %228 = arith.addf %227, %22 : vector<8x32xf32>
    %c1_178 = arith.constant 1 : index
    %c1_179 = arith.constant 1 : index
    %c0_180 = arith.constant 0 : index
    %c0_181 = arith.constant 0 : index
    %229 = vector.load %arg2[%c1_178, %c1_179, %c0_180, %c0_181] : memref<2x4x16x32xf32, #tpu.memory_space<vmem>>, vector<1x1x16x32xf32>
    %230 = vector.shape_cast %229 : vector<1x1x16x32xf32> to vector<16x32xf32>
    %cst_182 = arith.constant dense<0.000000e+00> : vector<8x32xf32>
    %231 = tpu.matmul %220, %230, %cst_182 {dimension_numbers = #tpu.dot_dimension_numbers<[1], [0], [0], [1], [0, 0, 1, 1], [], []>} : vector<8x16xf32>, vector<16x32xf32>, vector<8x32xf32> -> vector<8x32xf32>
    %c1_183 = arith.constant 1 : index
    %c1_184 = arith.constant 1 : index
    %c0_185 = arith.constant 0 : index
    %c0_186 = arith.constant 0 : index
    %232 = vector.load %arg3[%c1_183, %c1_184, %c0_185, %c0_186] : memref<2x4x32x32xf32, #tpu.memory_space<vmem>>, vector<1x1x32x32xf32>
    %233 = vector.shape_cast %232 : vector<1x1x32x32xf32> to vector<32x32xf32>
    %cst_187 = arith.constant dense<0.000000e+00> : vector<8x32xf32>
    %234 = tpu.matmul %155, %233, %cst_187 {dimension_numbers = #tpu.dot_dimension_numbers<[1], [0], [0], [1], [0, 0, 1, 1], [], []>} : vector<8x32xf32>, vector<32x32xf32>, vector<8x32xf32> -> vector<8x32xf32>
    %235 = arith.addf %231, %234 : vector<8x32xf32>
    %236 = arith.addf %235, %26 : vector<8x32xf32>
    %c1_188 = arith.constant 1 : index
    %c2_189 = arith.constant 2 : index
    %c0_190 = arith.constant 0 : index
    %c0_191 = arith.constant 0 : index
    %237 = vector.load %arg2[%c1_188, %c2_189, %c0_190, %c0_191] : memref<2x4x16x32xf32, #tpu.memory_space<vmem>>, vector<1x1x16x32xf32>
    %238 = vector.shape_cast %237 : vector<1x1x16x32xf32> to vector<16x32xf32>
    %cst_192 = arith.constant dense<0.000000e+00> : vector<8x32xf32>
    %239 = tpu.matmul %220, %238, %cst_192 {dimension_numbers = #tpu.dot_dimension_numbers<[1], [0], [0], [1], [0, 0, 1, 1], [], []>} : vector<8x16xf32>, vector<16x32xf32>, vector<8x32xf32> -> vector<8x32xf32>
    %c1_193 = arith.constant 1 : index
    %c2_194 = arith.constant 2 : index
    %c0_195 = arith.constant 0 : index
    %c0_196 = arith.constant 0 : index
    %240 = vector.load %arg3[%c1_193, %c2_194, %c0_195, %c0_196] : memref<2x4x32x32xf32, #tpu.memory_space<vmem>>, vector<1x1x32x32xf32>
    %241 = vector.shape_cast %240 : vector<1x1x32x32xf32> to vector<32x32xf32>
    %cst_197 = arith.constant dense<0.000000e+00> : vector<8x32xf32>
    %242 = tpu.matmul %155, %241, %cst_197 {dimension_numbers = #tpu.dot_dimension_numbers<[1], [0], [0], [1], [0, 0, 1, 1], [], []>} : vector<8x32xf32>, vector<32x32xf32>, vector<8x32xf32> -> vector<8x32xf32>
    %243 = arith.addf %239, %242 : vector<8x32xf32>
    %244 = arith.addf %243, %30 : vector<8x32xf32>
    %c1_198 = arith.constant 1 : index
    %c3_199 = arith.constant 3 : index
    %c0_200 = arith.constant 0 : index
    %c0_201 = arith.constant 0 : index
    %245 = vector.load %arg2[%c1_198, %c3_199, %c0_200, %c0_201] : memref<2x4x16x32xf32, #tpu.memory_space<vmem>>, vector<1x1x16x32xf32>
    %246 = vector.shape_cast %245 : vector<1x1x16x32xf32> to vector<16x32xf32>
    %cst_202 = arith.constant dense<0.000000e+00> : vector<8x32xf32>
    %247 = tpu.matmul %220, %246, %cst_202 {dimension_numbers = #tpu.dot_dimension_numbers<[1], [0], [0], [1], [0, 0, 1, 1], [], []>} : vector<8x16xf32>, vector<16x32xf32>, vector<8x32xf32> -> vector<8x32xf32>
    %c1_203 = arith.constant 1 : index
    %c3_204 = arith.constant 3 : index
    %c0_205 = arith.constant 0 : index
    %c0_206 = arith.constant 0 : index
    %248 = vector.load %arg3[%c1_203, %c3_204, %c0_205, %c0_206] : memref<2x4x32x32xf32, #tpu.memory_space<vmem>>, vector<1x1x32x32xf32>
    %249 = vector.shape_cast %248 : vector<1x1x32x32xf32> to vector<32x32xf32>
    %cst_207 = arith.constant dense<0.000000e+00> : vector<8x32xf32>
    %250 = tpu.matmul %155, %249, %cst_207 {dimension_numbers = #tpu.dot_dimension_numbers<[1], [0], [0], [1], [0, 0, 1, 1], [], []>} : vector<8x32xf32>, vector<32x32xf32>, vector<8x32xf32> -> vector<8x32xf32>
    %251 = arith.addf %247, %250 : vector<8x32xf32>
    %252 = arith.addf %251, %34 : vector<8x32xf32>
    %253 = arith.negf %228 : vector<8x32xf32>
    %254 = math.exp %253 : vector<8x32xf32>
    %cst_208 = arith.constant 1.000000e+00 : f32
    %255 = vector.broadcast %cst_208 : f32 to vector<8x32xf32>
    %256 = arith.addf %255, %254 : vector<8x32xf32>
    %257 = arith.divf %255, %256 : vector<8x32xf32>
    %258 = arith.negf %236 : vector<8x32xf32>
    %259 = math.exp %258 : vector<8x32xf32>
    %cst_209 = arith.constant 1.000000e+00 : f32
    %260 = vector.broadcast %cst_209 : f32 to vector<8x32xf32>
    %261 = arith.addf %260, %259 : vector<8x32xf32>
    %262 = arith.divf %260, %261 : vector<8x32xf32>
    %263 = math.tanh %244 : vector<8x32xf32>
    %264 = arith.negf %252 : vector<8x32xf32>
    %265 = math.exp %264 : vector<8x32xf32>
    %cst_210 = arith.constant 1.000000e+00 : f32
    %266 = vector.broadcast %cst_210 : f32 to vector<8x32xf32>
    %267 = arith.addf %266, %265 : vector<8x32xf32>
    %268 = arith.divf %266, %267 : vector<8x32xf32>
    %269 = arith.mulf %262, %156 : vector<8x32xf32>
    %270 = arith.mulf %257, %263 : vector<8x32xf32>
    %271 = arith.addf %269, %270 : vector<8x32xf32>
    %272 = math.tanh %271 : vector<8x32xf32>
    %273 = arith.mulf %268, %272 : vector<8x32xf32>
    %274 = vector.broadcast %217 : i32 to vector<8x32xi32>
    %275 = arith.cmpi slt, %274, %2 : vector<8x32xi32>
    %276 = arith.select %275, %273, %155 : vector<8x32xi1>, vector<8x32xf32>
    %277 = arith.select %275, %271, %156 : vector<8x32xi1>, vector<8x32xf32>
    %c2_i32 = arith.constant 2 : i32
    %278 = arith.index_cast %c2_i32 : i32 to index
    %c0_211 = arith.constant 0 : index
    %c0_212 = arith.constant 0 : index
    %279 = vector.load %arg0[%278, %c0_211, %c0_212] : memref<8x8x16xf32, #tpu.memory_space<vmem>>, vector<1x8x16xf32>
    %280 = vector.shape_cast %279 : vector<1x8x16xf32> to vector<8x16xf32>
    %c0_213 = arith.constant 0 : index
    %c0_214 = arith.constant 0 : index
    %c0_215 = arith.constant 0 : index
    %c0_216 = arith.constant 0 : index
    %281 = vector.load %arg2[%c0_213, %c0_214, %c0_215, %c0_216] : memref<2x4x16x32xf32, #tpu.memory_space<vmem>>, vector<1x1x16x32xf32>
    %282 = vector.shape_cast %281 : vector<1x1x16x32xf32> to vector<16x32xf32>
    %cst_217 = arith.constant dense<0.000000e+00> : vector<8x32xf32>
    %283 = tpu.matmul %280, %282, %cst_217 {dimension_numbers = #tpu.dot_dimension_numbers<[1], [0], [0], [1], [0, 0, 1, 1], [], []>} : vector<8x16xf32>, vector<16x32xf32>, vector<8x32xf32> -> vector<8x32xf32>
    %c0_218 = arith.constant 0 : index
    %c0_219 = arith.constant 0 : index
    %c0_220 = arith.constant 0 : index
    %c0_221 = arith.constant 0 : index
    %284 = vector.load %arg3[%c0_218, %c0_219, %c0_220, %c0_221] : memref<2x4x32x32xf32, #tpu.memory_space<vmem>>, vector<1x1x32x32xf32>
    %285 = vector.shape_cast %284 : vector<1x1x32x32xf32> to vector<32x32xf32>
    %cst_222 = arith.constant dense<0.000000e+00> : vector<8x32xf32>
    %286 = tpu.matmul %215, %285, %cst_222 {dimension_numbers = #tpu.dot_dimension_numbers<[1], [0], [0], [1], [0, 0, 1, 1], [], []>} : vector<8x32xf32>, vector<32x32xf32>, vector<8x32xf32> -> vector<8x32xf32>
    %287 = arith.addf %283, %286 : vector<8x32xf32>
    %288 = arith.addf %287, %6 : vector<8x32xf32>
    %c0_223 = arith.constant 0 : index
    %c1_224 = arith.constant 1 : index
    %c0_225 = arith.constant 0 : index
    %c0_226 = arith.constant 0 : index
    %289 = vector.load %arg2[%c0_223, %c1_224, %c0_225, %c0_226] : memref<2x4x16x32xf32, #tpu.memory_space<vmem>>, vector<1x1x16x32xf32>
    %290 = vector.shape_cast %289 : vector<1x1x16x32xf32> to vector<16x32xf32>
    %cst_227 = arith.constant dense<0.000000e+00> : vector<8x32xf32>
    %291 = tpu.matmul %280, %290, %cst_227 {dimension_numbers = #tpu.dot_dimension_numbers<[1], [0], [0], [1], [0, 0, 1, 1], [], []>} : vector<8x16xf32>, vector<16x32xf32>, vector<8x32xf32> -> vector<8x32xf32>
    %c0_228 = arith.constant 0 : index
    %c1_229 = arith.constant 1 : index
    %c0_230 = arith.constant 0 : index
    %c0_231 = arith.constant 0 : index
    %292 = vector.load %arg3[%c0_228, %c1_229, %c0_230, %c0_231] : memref<2x4x32x32xf32, #tpu.memory_space<vmem>>, vector<1x1x32x32xf32>
    %293 = vector.shape_cast %292 : vector<1x1x32x32xf32> to vector<32x32xf32>
    %cst_232 = arith.constant dense<0.000000e+00> : vector<8x32xf32>
    %294 = tpu.matmul %215, %293, %cst_232 {dimension_numbers = #tpu.dot_dimension_numbers<[1], [0], [0], [1], [0, 0, 1, 1], [], []>} : vector<8x32xf32>, vector<32x32xf32>, vector<8x32xf32> -> vector<8x32xf32>
    %295 = arith.addf %291, %294 : vector<8x32xf32>
    %296 = arith.addf %295, %10 : vector<8x32xf32>
    %c0_233 = arith.constant 0 : index
    %c2_234 = arith.constant 2 : index
    %c0_235 = arith.constant 0 : index
    %c0_236 = arith.constant 0 : index
    %297 = vector.load %arg2[%c0_233, %c2_234, %c0_235, %c0_236] : memref<2x4x16x32xf32, #tpu.memory_space<vmem>>, vector<1x1x16x32xf32>
    %298 = vector.shape_cast %297 : vector<1x1x16x32xf32> to vector<16x32xf32>
    %cst_237 = arith.constant dense<0.000000e+00> : vector<8x32xf32>
    %299 = tpu.matmul %280, %298, %cst_237 {dimension_numbers = #tpu.dot_dimension_numbers<[1], [0], [0], [1], [0, 0, 1, 1], [], []>} : vector<8x16xf32>, vector<16x32xf32>, vector<8x32xf32> -> vector<8x32xf32>
    %c0_238 = arith.constant 0 : index
    %c2_239 = arith.constant 2 : index
    %c0_240 = arith.constant 0 : index
    %c0_241 = arith.constant 0 : index
    %300 = vector.load %arg3[%c0_238, %c2_239, %c0_240, %c0_241] : memref<2x4x32x32xf32, #tpu.memory_space<vmem>>, vector<1x1x32x32xf32>
    %301 = vector.shape_cast %300 : vector<1x1x32x32xf32> to vector<32x32xf32>
    %cst_242 = arith.constant dense<0.000000e+00> : vector<8x32xf32>
    %302 = tpu.matmul %215, %301, %cst_242 {dimension_numbers = #tpu.dot_dimension_numbers<[1], [0], [0], [1], [0, 0, 1, 1], [], []>} : vector<8x32xf32>, vector<32x32xf32>, vector<8x32xf32> -> vector<8x32xf32>
    %303 = arith.addf %299, %302 : vector<8x32xf32>
    %304 = arith.addf %303, %14 : vector<8x32xf32>
    %c0_243 = arith.constant 0 : index
    %c3_244 = arith.constant 3 : index
    %c0_245 = arith.constant 0 : index
    %c0_246 = arith.constant 0 : index
    %305 = vector.load %arg2[%c0_243, %c3_244, %c0_245, %c0_246] : memref<2x4x16x32xf32, #tpu.memory_space<vmem>>, vector<1x1x16x32xf32>
    %306 = vector.shape_cast %305 : vector<1x1x16x32xf32> to vector<16x32xf32>
    %cst_247 = arith.constant dense<0.000000e+00> : vector<8x32xf32>
    %307 = tpu.matmul %280, %306, %cst_247 {dimension_numbers = #tpu.dot_dimension_numbers<[1], [0], [0], [1], [0, 0, 1, 1], [], []>} : vector<8x16xf32>, vector<16x32xf32>, vector<8x32xf32> -> vector<8x32xf32>
    %c0_248 = arith.constant 0 : index
    %c3_249 = arith.constant 3 : index
    %c0_250 = arith.constant 0 : index
    %c0_251 = arith.constant 0 : index
    %308 = vector.load %arg3[%c0_248, %c3_249, %c0_250, %c0_251] : memref<2x4x32x32xf32, #tpu.memory_space<vmem>>, vector<1x1x32x32xf32>
    %309 = vector.shape_cast %308 : vector<1x1x32x32xf32> to vector<32x32xf32>
    %cst_252 = arith.constant dense<0.000000e+00> : vector<8x32xf32>
    %310 = tpu.matmul %215, %309, %cst_252 {dimension_numbers = #tpu.dot_dimension_numbers<[1], [0], [0], [1], [0, 0, 1, 1], [], []>} : vector<8x32xf32>, vector<32x32xf32>, vector<8x32xf32> -> vector<8x32xf32>
    %311 = arith.addf %307, %310 : vector<8x32xf32>
    %312 = arith.addf %311, %18 : vector<8x32xf32>
    %313 = arith.negf %288 : vector<8x32xf32>
    %314 = math.exp %313 : vector<8x32xf32>
    %cst_253 = arith.constant 1.000000e+00 : f32
    %315 = vector.broadcast %cst_253 : f32 to vector<8x32xf32>
    %316 = arith.addf %315, %314 : vector<8x32xf32>
    %317 = arith.divf %315, %316 : vector<8x32xf32>
    %318 = arith.negf %296 : vector<8x32xf32>
    %319 = math.exp %318 : vector<8x32xf32>
    %cst_254 = arith.constant 1.000000e+00 : f32
    %320 = vector.broadcast %cst_254 : f32 to vector<8x32xf32>
    %321 = arith.addf %320, %319 : vector<8x32xf32>
    %322 = arith.divf %320, %321 : vector<8x32xf32>
    %323 = math.tanh %304 : vector<8x32xf32>
    %324 = arith.negf %312 : vector<8x32xf32>
    %325 = math.exp %324 : vector<8x32xf32>
    %cst_255 = arith.constant 1.000000e+00 : f32
    %326 = vector.broadcast %cst_255 : f32 to vector<8x32xf32>
    %327 = arith.addf %326, %325 : vector<8x32xf32>
    %328 = arith.divf %326, %327 : vector<8x32xf32>
    %329 = arith.mulf %322, %216 : vector<8x32xf32>
    %330 = arith.mulf %317, %323 : vector<8x32xf32>
    %331 = arith.addf %329, %330 : vector<8x32xf32>
    %332 = math.tanh %331 : vector<8x32xf32>
    %333 = arith.mulf %328, %332 : vector<8x32xf32>
    %334 = vector.broadcast %c2_i32 : i32 to vector<8x32xi32>
    %335 = arith.cmpi slt, %334, %2 : vector<8x32xi32>
    %336 = arith.select %335, %333, %215 : vector<8x32xi1>, vector<8x32xf32>
    %337 = arith.select %335, %331, %216 : vector<8x32xi1>, vector<8x32xf32>
    %c7_i32_256 = arith.constant 7 : i32
    %338 = arith.subi %c7_i32_256, %c2_i32 : i32
    %339 = arith.index_cast %338 : i32 to index
    %c0_257 = arith.constant 0 : index
    %c0_258 = arith.constant 0 : index
    %340 = vector.load %arg0[%339, %c0_257, %c0_258] : memref<8x8x16xf32, #tpu.memory_space<vmem>>, vector<1x8x16xf32>
    %341 = vector.shape_cast %340 : vector<1x8x16xf32> to vector<8x16xf32>
    %c1_259 = arith.constant 1 : index
    %c0_260 = arith.constant 0 : index
    %c0_261 = arith.constant 0 : index
    %c0_262 = arith.constant 0 : index
    %342 = vector.load %arg2[%c1_259, %c0_260, %c0_261, %c0_262] : memref<2x4x16x32xf32, #tpu.memory_space<vmem>>, vector<1x1x16x32xf32>
    %343 = vector.shape_cast %342 : vector<1x1x16x32xf32> to vector<16x32xf32>
    %cst_263 = arith.constant dense<0.000000e+00> : vector<8x32xf32>
    %344 = tpu.matmul %341, %343, %cst_263 {dimension_numbers = #tpu.dot_dimension_numbers<[1], [0], [0], [1], [0, 0, 1, 1], [], []>} : vector<8x16xf32>, vector<16x32xf32>, vector<8x32xf32> -> vector<8x32xf32>
    %c1_264 = arith.constant 1 : index
    %c0_265 = arith.constant 0 : index
    %c0_266 = arith.constant 0 : index
    %c0_267 = arith.constant 0 : index
    %345 = vector.load %arg3[%c1_264, %c0_265, %c0_266, %c0_267] : memref<2x4x32x32xf32, #tpu.memory_space<vmem>>, vector<1x1x32x32xf32>
    %346 = vector.shape_cast %345 : vector<1x1x32x32xf32> to vector<32x32xf32>
    %cst_268 = arith.constant dense<0.000000e+00> : vector<8x32xf32>
    %347 = tpu.matmul %276, %346, %cst_268 {dimension_numbers = #tpu.dot_dimension_numbers<[1], [0], [0], [1], [0, 0, 1, 1], [], []>} : vector<8x32xf32>, vector<32x32xf32>, vector<8x32xf32> -> vector<8x32xf32>
    %348 = arith.addf %344, %347 : vector<8x32xf32>
    %349 = arith.addf %348, %22 : vector<8x32xf32>
    %c1_269 = arith.constant 1 : index
    %c1_270 = arith.constant 1 : index
    %c0_271 = arith.constant 0 : index
    %c0_272 = arith.constant 0 : index
    %350 = vector.load %arg2[%c1_269, %c1_270, %c0_271, %c0_272] : memref<2x4x16x32xf32, #tpu.memory_space<vmem>>, vector<1x1x16x32xf32>
    %351 = vector.shape_cast %350 : vector<1x1x16x32xf32> to vector<16x32xf32>
    %cst_273 = arith.constant dense<0.000000e+00> : vector<8x32xf32>
    %352 = tpu.matmul %341, %351, %cst_273 {dimension_numbers = #tpu.dot_dimension_numbers<[1], [0], [0], [1], [0, 0, 1, 1], [], []>} : vector<8x16xf32>, vector<16x32xf32>, vector<8x32xf32> -> vector<8x32xf32>
    %c1_274 = arith.constant 1 : index
    %c1_275 = arith.constant 1 : index
    %c0_276 = arith.constant 0 : index
    %c0_277 = arith.constant 0 : index
    %353 = vector.load %arg3[%c1_274, %c1_275, %c0_276, %c0_277] : memref<2x4x32x32xf32, #tpu.memory_space<vmem>>, vector<1x1x32x32xf32>
    %354 = vector.shape_cast %353 : vector<1x1x32x32xf32> to vector<32x32xf32>
    %cst_278 = arith.constant dense<0.000000e+00> : vector<8x32xf32>
    %355 = tpu.matmul %276, %354, %cst_278 {dimension_numbers = #tpu.dot_dimension_numbers<[1], [0], [0], [1], [0, 0, 1, 1], [], []>} : vector<8x32xf32>, vector<32x32xf32>, vector<8x32xf32> -> vector<8x32xf32>
    %356 = arith.addf %352, %355 : vector<8x32xf32>
    %357 = arith.addf %356, %26 : vector<8x32xf32>
    %c1_279 = arith.constant 1 : index
    %c2_280 = arith.constant 2 : index
    %c0_281 = arith.constant 0 : index
    %c0_282 = arith.constant 0 : index
    %358 = vector.load %arg2[%c1_279, %c2_280, %c0_281, %c0_282] : memref<2x4x16x32xf32, #tpu.memory_space<vmem>>, vector<1x1x16x32xf32>
    %359 = vector.shape_cast %358 : vector<1x1x16x32xf32> to vector<16x32xf32>
    %cst_283 = arith.constant dense<0.000000e+00> : vector<8x32xf32>
    %360 = tpu.matmul %341, %359, %cst_283 {dimension_numbers = #tpu.dot_dimension_numbers<[1], [0], [0], [1], [0, 0, 1, 1], [], []>} : vector<8x16xf32>, vector<16x32xf32>, vector<8x32xf32> -> vector<8x32xf32>
    %c1_284 = arith.constant 1 : index
    %c2_285 = arith.constant 2 : index
    %c0_286 = arith.constant 0 : index
    %c0_287 = arith.constant 0 : index
    %361 = vector.load %arg3[%c1_284, %c2_285, %c0_286, %c0_287] : memref<2x4x32x32xf32, #tpu.memory_space<vmem>>, vector<1x1x32x32xf32>
    %362 = vector.shape_cast %361 : vector<1x1x32x32xf32> to vector<32x32xf32>
    %cst_288 = arith.constant dense<0.000000e+00> : vector<8x32xf32>
    %363 = tpu.matmul %276, %362, %cst_288 {dimension_numbers = #tpu.dot_dimension_numbers<[1], [0], [0], [1], [0, 0, 1, 1], [], []>} : vector<8x32xf32>, vector<32x32xf32>, vector<8x32xf32> -> vector<8x32xf32>
    %364 = arith.addf %360, %363 : vector<8x32xf32>
    %365 = arith.addf %364, %30 : vector<8x32xf32>
    %c1_289 = arith.constant 1 : index
    %c3_290 = arith.constant 3 : index
    %c0_291 = arith.constant 0 : index
    %c0_292 = arith.constant 0 : index
    %366 = vector.load %arg2[%c1_289, %c3_290, %c0_291, %c0_292] : memref<2x4x16x32xf32, #tpu.memory_space<vmem>>, vector<1x1x16x32xf32>
    %367 = vector.shape_cast %366 : vector<1x1x16x32xf32> to vector<16x32xf32>
    %cst_293 = arith.constant dense<0.000000e+00> : vector<8x32xf32>
    %368 = tpu.matmul %341, %367, %cst_293 {dimension_numbers = #tpu.dot_dimension_numbers<[1], [0], [0], [1], [0, 0, 1, 1], [], []>} : vector<8x16xf32>, vector<16x32xf32>, vector<8x32xf32> -> vector<8x32xf32>
    %c1_294 = arith.constant 1 : index
    %c3_295 = arith.constant 3 : index
    %c0_296 = arith.constant 0 : index
    %c0_297 = arith.constant 0 : index
    %369 = vector.load %arg3[%c1_294, %c3_295, %c0_296, %c0_297] : memref<2x4x32x32xf32, #tpu.memory_space<vmem>>, vector<1x1x32x32xf32>
    %370 = vector.shape_cast %369 : vector<1x1x32x32xf32> to vector<32x32xf32>
    %cst_298 = arith.constant dense<0.000000e+00> : vector<8x32xf32>
    %371 = tpu.matmul %276, %370, %cst_298 {dimension_numbers = #tpu.dot_dimension_numbers<[1], [0], [0], [1], [0, 0, 1, 1], [], []>} : vector<8x32xf32>, vector<32x32xf32>, vector<8x32xf32> -> vector<8x32xf32>
    %372 = arith.addf %368, %371 : vector<8x32xf32>
    %373 = arith.addf %372, %34 : vector<8x32xf32>
    %374 = arith.negf %349 : vector<8x32xf32>
    %375 = math.exp %374 : vector<8x32xf32>
    %cst_299 = arith.constant 1.000000e+00 : f32
    %376 = vector.broadcast %cst_299 : f32 to vector<8x32xf32>
    %377 = arith.addf %376, %375 : vector<8x32xf32>
    %378 = arith.divf %376, %377 : vector<8x32xf32>
    %379 = arith.negf %357 : vector<8x32xf32>
    %380 = math.exp %379 : vector<8x32xf32>
    %cst_300 = arith.constant 1.000000e+00 : f32
    %381 = vector.broadcast %cst_300 : f32 to vector<8x32xf32>
    %382 = arith.addf %381, %380 : vector<8x32xf32>
    %383 = arith.divf %381, %382 : vector<8x32xf32>
    %384 = math.tanh %365 : vector<8x32xf32>
    %385 = arith.negf %373 : vector<8x32xf32>
    %386 = math.exp %385 : vector<8x32xf32>
    %cst_301 = arith.constant 1.000000e+00 : f32
    %387 = vector.broadcast %cst_301 : f32 to vector<8x32xf32>
    %388 = arith.addf %387, %386 : vector<8x32xf32>
    %389 = arith.divf %387, %388 : vector<8x32xf32>
    %390 = arith.mulf %383, %277 : vector<8x32xf32>
    %391 = arith.mulf %378, %384 : vector<8x32xf32>
    %392 = arith.addf %390, %391 : vector<8x32xf32>
    %393 = math.tanh %392 : vector<8x32xf32>
    %394 = arith.mulf %389, %393 : vector<8x32xf32>
    %395 = vector.broadcast %338 : i32 to vector<8x32xi32>
    %396 = arith.cmpi slt, %395, %2 : vector<8x32xi32>
    %397 = arith.select %396, %394, %276 : vector<8x32xi1>, vector<8x32xf32>
    %398 = arith.select %396, %392, %277 : vector<8x32xi1>, vector<8x32xf32>
    %c3_i32 = arith.constant 3 : i32
    %399 = arith.index_cast %c3_i32 : i32 to index
    %c0_302 = arith.constant 0 : index
    %c0_303 = arith.constant 0 : index
    %400 = vector.load %arg0[%399, %c0_302, %c0_303] : memref<8x8x16xf32, #tpu.memory_space<vmem>>, vector<1x8x16xf32>
    %401 = vector.shape_cast %400 : vector<1x8x16xf32> to vector<8x16xf32>
    %c0_304 = arith.constant 0 : index
    %c0_305 = arith.constant 0 : index
    %c0_306 = arith.constant 0 : index
    %c0_307 = arith.constant 0 : index
    %402 = vector.load %arg2[%c0_304, %c0_305, %c0_306, %c0_307] : memref<2x4x16x32xf32, #tpu.memory_space<vmem>>, vector<1x1x16x32xf32>
    %403 = vector.shape_cast %402 : vector<1x1x16x32xf32> to vector<16x32xf32>
    %cst_308 = arith.constant dense<0.000000e+00> : vector<8x32xf32>
    %404 = tpu.matmul %401, %403, %cst_308 {dimension_numbers = #tpu.dot_dimension_numbers<[1], [0], [0], [1], [0, 0, 1, 1], [], []>} : vector<8x16xf32>, vector<16x32xf32>, vector<8x32xf32> -> vector<8x32xf32>
    %c0_309 = arith.constant 0 : index
    %c0_310 = arith.constant 0 : index
    %c0_311 = arith.constant 0 : index
    %c0_312 = arith.constant 0 : index
    %405 = vector.load %arg3[%c0_309, %c0_310, %c0_311, %c0_312] : memref<2x4x32x32xf32, #tpu.memory_space<vmem>>, vector<1x1x32x32xf32>
    %406 = vector.shape_cast %405 : vector<1x1x32x32xf32> to vector<32x32xf32>
    %cst_313 = arith.constant dense<0.000000e+00> : vector<8x32xf32>
    %407 = tpu.matmul %336, %406, %cst_313 {dimension_numbers = #tpu.dot_dimension_numbers<[1], [0], [0], [1], [0, 0, 1, 1], [], []>} : vector<8x32xf32>, vector<32x32xf32>, vector<8x32xf32> -> vector<8x32xf32>
    %408 = arith.addf %404, %407 : vector<8x32xf32>
    %409 = arith.addf %408, %6 : vector<8x32xf32>
    %c0_314 = arith.constant 0 : index
    %c1_315 = arith.constant 1 : index
    %c0_316 = arith.constant 0 : index
    %c0_317 = arith.constant 0 : index
    %410 = vector.load %arg2[%c0_314, %c1_315, %c0_316, %c0_317] : memref<2x4x16x32xf32, #tpu.memory_space<vmem>>, vector<1x1x16x32xf32>
    %411 = vector.shape_cast %410 : vector<1x1x16x32xf32> to vector<16x32xf32>
    %cst_318 = arith.constant dense<0.000000e+00> : vector<8x32xf32>
    %412 = tpu.matmul %401, %411, %cst_318 {dimension_numbers = #tpu.dot_dimension_numbers<[1], [0], [0], [1], [0, 0, 1, 1], [], []>} : vector<8x16xf32>, vector<16x32xf32>, vector<8x32xf32> -> vector<8x32xf32>
    %c0_319 = arith.constant 0 : index
    %c1_320 = arith.constant 1 : index
    %c0_321 = arith.constant 0 : index
    %c0_322 = arith.constant 0 : index
    %413 = vector.load %arg3[%c0_319, %c1_320, %c0_321, %c0_322] : memref<2x4x32x32xf32, #tpu.memory_space<vmem>>, vector<1x1x32x32xf32>
    %414 = vector.shape_cast %413 : vector<1x1x32x32xf32> to vector<32x32xf32>
    %cst_323 = arith.constant dense<0.000000e+00> : vector<8x32xf32>
    %415 = tpu.matmul %336, %414, %cst_323 {dimension_numbers = #tpu.dot_dimension_numbers<[1], [0], [0], [1], [0, 0, 1, 1], [], []>} : vector<8x32xf32>, vector<32x32xf32>, vector<8x32xf32> -> vector<8x32xf32>
    %416 = arith.addf %412, %415 : vector<8x32xf32>
    %417 = arith.addf %416, %10 : vector<8x32xf32>
    %c0_324 = arith.constant 0 : index
    %c2_325 = arith.constant 2 : index
    %c0_326 = arith.constant 0 : index
    %c0_327 = arith.constant 0 : index
    %418 = vector.load %arg2[%c0_324, %c2_325, %c0_326, %c0_327] : memref<2x4x16x32xf32, #tpu.memory_space<vmem>>, vector<1x1x16x32xf32>
    %419 = vector.shape_cast %418 : vector<1x1x16x32xf32> to vector<16x32xf32>
    %cst_328 = arith.constant dense<0.000000e+00> : vector<8x32xf32>
    %420 = tpu.matmul %401, %419, %cst_328 {dimension_numbers = #tpu.dot_dimension_numbers<[1], [0], [0], [1], [0, 0, 1, 1], [], []>} : vector<8x16xf32>, vector<16x32xf32>, vector<8x32xf32> -> vector<8x32xf32>
    %c0_329 = arith.constant 0 : index
    %c2_330 = arith.constant 2 : index
    %c0_331 = arith.constant 0 : index
    %c0_332 = arith.constant 0 : index
    %421 = vector.load %arg3[%c0_329, %c2_330, %c0_331, %c0_332] : memref<2x4x32x32xf32, #tpu.memory_space<vmem>>, vector<1x1x32x32xf32>
    %422 = vector.shape_cast %421 : vector<1x1x32x32xf32> to vector<32x32xf32>
    %cst_333 = arith.constant dense<0.000000e+00> : vector<8x32xf32>
    %423 = tpu.matmul %336, %422, %cst_333 {dimension_numbers = #tpu.dot_dimension_numbers<[1], [0], [0], [1], [0, 0, 1, 1], [], []>} : vector<8x32xf32>, vector<32x32xf32>, vector<8x32xf32> -> vector<8x32xf32>
    %424 = arith.addf %420, %423 : vector<8x32xf32>
    %425 = arith.addf %424, %14 : vector<8x32xf32>
    %c0_334 = arith.constant 0 : index
    %c3_335 = arith.constant 3 : index
    %c0_336 = arith.constant 0 : index
    %c0_337 = arith.constant 0 : index
    %426 = vector.load %arg2[%c0_334, %c3_335, %c0_336, %c0_337] : memref<2x4x16x32xf32, #tpu.memory_space<vmem>>, vector<1x1x16x32xf32>
    %427 = vector.shape_cast %426 : vector<1x1x16x32xf32> to vector<16x32xf32>
    %cst_338 = arith.constant dense<0.000000e+00> : vector<8x32xf32>
    %428 = tpu.matmul %401, %427, %cst_338 {dimension_numbers = #tpu.dot_dimension_numbers<[1], [0], [0], [1], [0, 0, 1, 1], [], []>} : vector<8x16xf32>, vector<16x32xf32>, vector<8x32xf32> -> vector<8x32xf32>
    %c0_339 = arith.constant 0 : index
    %c3_340 = arith.constant 3 : index
    %c0_341 = arith.constant 0 : index
    %c0_342 = arith.constant 0 : index
    %429 = vector.load %arg3[%c0_339, %c3_340, %c0_341, %c0_342] : memref<2x4x32x32xf32, #tpu.memory_space<vmem>>, vector<1x1x32x32xf32>
    %430 = vector.shape_cast %429 : vector<1x1x32x32xf32> to vector<32x32xf32>
    %cst_343 = arith.constant dense<0.000000e+00> : vector<8x32xf32>
    %431 = tpu.matmul %336, %430, %cst_343 {dimension_numbers = #tpu.dot_dimension_numbers<[1], [0], [0], [1], [0, 0, 1, 1], [], []>} : vector<8x32xf32>, vector<32x32xf32>, vector<8x32xf32> -> vector<8x32xf32>
    %432 = arith.addf %428, %431 : vector<8x32xf32>
    %433 = arith.addf %432, %18 : vector<8x32xf32>
    %434 = arith.negf %409 : vector<8x32xf32>
    %435 = math.exp %434 : vector<8x32xf32>
    %cst_344 = arith.constant 1.000000e+00 : f32
    %436 = vector.broadcast %cst_344 : f32 to vector<8x32xf32>
    %437 = arith.addf %436, %435 : vector<8x32xf32>
    %438 = arith.divf %436, %437 : vector<8x32xf32>
    %439 = arith.negf %417 : vector<8x32xf32>
    %440 = math.exp %439 : vector<8x32xf32>
    %cst_345 = arith.constant 1.000000e+00 : f32
    %441 = vector.broadcast %cst_345 : f32 to vector<8x32xf32>
    %442 = arith.addf %441, %440 : vector<8x32xf32>
    %443 = arith.divf %441, %442 : vector<8x32xf32>
    %444 = math.tanh %425 : vector<8x32xf32>
    %445 = arith.negf %433 : vector<8x32xf32>
    %446 = math.exp %445 : vector<8x32xf32>
    %cst_346 = arith.constant 1.000000e+00 : f32
    %447 = vector.broadcast %cst_346 : f32 to vector<8x32xf32>
    %448 = arith.addf %447, %446 : vector<8x32xf32>
    %449 = arith.divf %447, %448 : vector<8x32xf32>
    %450 = arith.mulf %443, %337 : vector<8x32xf32>
    %451 = arith.mulf %438, %444 : vector<8x32xf32>
    %452 = arith.addf %450, %451 : vector<8x32xf32>
    %453 = math.tanh %452 : vector<8x32xf32>
    %454 = arith.mulf %449, %453 : vector<8x32xf32>
    %455 = vector.broadcast %c3_i32 : i32 to vector<8x32xi32>
    %456 = arith.cmpi slt, %455, %2 : vector<8x32xi32>
    %457 = arith.select %456, %454, %336 : vector<8x32xi1>, vector<8x32xf32>
    %458 = arith.select %456, %452, %337 : vector<8x32xi1>, vector<8x32xf32>
    %c7_i32_347 = arith.constant 7 : i32
    %459 = arith.subi %c7_i32_347, %c3_i32 : i32
    %460 = arith.index_cast %459 : i32 to index
    %c0_348 = arith.constant 0 : index
    %c0_349 = arith.constant 0 : index
    %461 = vector.load %arg0[%460, %c0_348, %c0_349] : memref<8x8x16xf32, #tpu.memory_space<vmem>>, vector<1x8x16xf32>
    %462 = vector.shape_cast %461 : vector<1x8x16xf32> to vector<8x16xf32>
    %c1_350 = arith.constant 1 : index
    %c0_351 = arith.constant 0 : index
    %c0_352 = arith.constant 0 : index
    %c0_353 = arith.constant 0 : index
    %463 = vector.load %arg2[%c1_350, %c0_351, %c0_352, %c0_353] : memref<2x4x16x32xf32, #tpu.memory_space<vmem>>, vector<1x1x16x32xf32>
    %464 = vector.shape_cast %463 : vector<1x1x16x32xf32> to vector<16x32xf32>
    %cst_354 = arith.constant dense<0.000000e+00> : vector<8x32xf32>
    %465 = tpu.matmul %462, %464, %cst_354 {dimension_numbers = #tpu.dot_dimension_numbers<[1], [0], [0], [1], [0, 0, 1, 1], [], []>} : vector<8x16xf32>, vector<16x32xf32>, vector<8x32xf32> -> vector<8x32xf32>
    %c1_355 = arith.constant 1 : index
    %c0_356 = arith.constant 0 : index
    %c0_357 = arith.constant 0 : index
    %c0_358 = arith.constant 0 : index
    %466 = vector.load %arg3[%c1_355, %c0_356, %c0_357, %c0_358] : memref<2x4x32x32xf32, #tpu.memory_space<vmem>>, vector<1x1x32x32xf32>
    %467 = vector.shape_cast %466 : vector<1x1x32x32xf32> to vector<32x32xf32>
    %cst_359 = arith.constant dense<0.000000e+00> : vector<8x32xf32>
    %468 = tpu.matmul %397, %467, %cst_359 {dimension_numbers = #tpu.dot_dimension_numbers<[1], [0], [0], [1], [0, 0, 1, 1], [], []>} : vector<8x32xf32>, vector<32x32xf32>, vector<8x32xf32> -> vector<8x32xf32>
    %469 = arith.addf %465, %468 : vector<8x32xf32>
    %470 = arith.addf %469, %22 : vector<8x32xf32>
    %c1_360 = arith.constant 1 : index
    %c1_361 = arith.constant 1 : index
    %c0_362 = arith.constant 0 : index
    %c0_363 = arith.constant 0 : index
    %471 = vector.load %arg2[%c1_360, %c1_361, %c0_362, %c0_363] : memref<2x4x16x32xf32, #tpu.memory_space<vmem>>, vector<1x1x16x32xf32>
    %472 = vector.shape_cast %471 : vector<1x1x16x32xf32> to vector<16x32xf32>
    %cst_364 = arith.constant dense<0.000000e+00> : vector<8x32xf32>
    %473 = tpu.matmul %462, %472, %cst_364 {dimension_numbers = #tpu.dot_dimension_numbers<[1], [0], [0], [1], [0, 0, 1, 1], [], []>} : vector<8x16xf32>, vector<16x32xf32>, vector<8x32xf32> -> vector<8x32xf32>
    %c1_365 = arith.constant 1 : index
    %c1_366 = arith.constant 1 : index
    %c0_367 = arith.constant 0 : index
    %c0_368 = arith.constant 0 : index
    %474 = vector.load %arg3[%c1_365, %c1_366, %c0_367, %c0_368] : memref<2x4x32x32xf32, #tpu.memory_space<vmem>>, vector<1x1x32x32xf32>
    %475 = vector.shape_cast %474 : vector<1x1x32x32xf32> to vector<32x32xf32>
    %cst_369 = arith.constant dense<0.000000e+00> : vector<8x32xf32>
    %476 = tpu.matmul %397, %475, %cst_369 {dimension_numbers = #tpu.dot_dimension_numbers<[1], [0], [0], [1], [0, 0, 1, 1], [], []>} : vector<8x32xf32>, vector<32x32xf32>, vector<8x32xf32> -> vector<8x32xf32>
    %477 = arith.addf %473, %476 : vector<8x32xf32>
    %478 = arith.addf %477, %26 : vector<8x32xf32>
    %c1_370 = arith.constant 1 : index
    %c2_371 = arith.constant 2 : index
    %c0_372 = arith.constant 0 : index
    %c0_373 = arith.constant 0 : index
    %479 = vector.load %arg2[%c1_370, %c2_371, %c0_372, %c0_373] : memref<2x4x16x32xf32, #tpu.memory_space<vmem>>, vector<1x1x16x32xf32>
    %480 = vector.shape_cast %479 : vector<1x1x16x32xf32> to vector<16x32xf32>
    %cst_374 = arith.constant dense<0.000000e+00> : vector<8x32xf32>
    %481 = tpu.matmul %462, %480, %cst_374 {dimension_numbers = #tpu.dot_dimension_numbers<[1], [0], [0], [1], [0, 0, 1, 1], [], []>} : vector<8x16xf32>, vector<16x32xf32>, vector<8x32xf32> -> vector<8x32xf32>
    %c1_375 = arith.constant 1 : index
    %c2_376 = arith.constant 2 : index
    %c0_377 = arith.constant 0 : index
    %c0_378 = arith.constant 0 : index
    %482 = vector.load %arg3[%c1_375, %c2_376, %c0_377, %c0_378] : memref<2x4x32x32xf32, #tpu.memory_space<vmem>>, vector<1x1x32x32xf32>
    %483 = vector.shape_cast %482 : vector<1x1x32x32xf32> to vector<32x32xf32>
    %cst_379 = arith.constant dense<0.000000e+00> : vector<8x32xf32>
    %484 = tpu.matmul %397, %483, %cst_379 {dimension_numbers = #tpu.dot_dimension_numbers<[1], [0], [0], [1], [0, 0, 1, 1], [], []>} : vector<8x32xf32>, vector<32x32xf32>, vector<8x32xf32> -> vector<8x32xf32>
    %485 = arith.addf %481, %484 : vector<8x32xf32>
    %486 = arith.addf %485, %30 : vector<8x32xf32>
    %c1_380 = arith.constant 1 : index
    %c3_381 = arith.constant 3 : index
    %c0_382 = arith.constant 0 : index
    %c0_383 = arith.constant 0 : index
    %487 = vector.load %arg2[%c1_380, %c3_381, %c0_382, %c0_383] : memref<2x4x16x32xf32, #tpu.memory_space<vmem>>, vector<1x1x16x32xf32>
    %488 = vector.shape_cast %487 : vector<1x1x16x32xf32> to vector<16x32xf32>
    %cst_384 = arith.constant dense<0.000000e+00> : vector<8x32xf32>
    %489 = tpu.matmul %462, %488, %cst_384 {dimension_numbers = #tpu.dot_dimension_numbers<[1], [0], [0], [1], [0, 0, 1, 1], [], []>} : vector<8x16xf32>, vector<16x32xf32>, vector<8x32xf32> -> vector<8x32xf32>
    %c1_385 = arith.constant 1 : index
    %c3_386 = arith.constant 3 : index
    %c0_387 = arith.constant 0 : index
    %c0_388 = arith.constant 0 : index
    %490 = vector.load %arg3[%c1_385, %c3_386, %c0_387, %c0_388] : memref<2x4x32x32xf32, #tpu.memory_space<vmem>>, vector<1x1x32x32xf32>
    %491 = vector.shape_cast %490 : vector<1x1x32x32xf32> to vector<32x32xf32>
    %cst_389 = arith.constant dense<0.000000e+00> : vector<8x32xf32>
    %492 = tpu.matmul %397, %491, %cst_389 {dimension_numbers = #tpu.dot_dimension_numbers<[1], [0], [0], [1], [0, 0, 1, 1], [], []>} : vector<8x32xf32>, vector<32x32xf32>, vector<8x32xf32> -> vector<8x32xf32>
    %493 = arith.addf %489, %492 : vector<8x32xf32>
    %494 = arith.addf %493, %34 : vector<8x32xf32>
    %495 = arith.negf %470 : vector<8x32xf32>
    %496 = math.exp %495 : vector<8x32xf32>
    %cst_390 = arith.constant 1.000000e+00 : f32
    %497 = vector.broadcast %cst_390 : f32 to vector<8x32xf32>
    %498 = arith.addf %497, %496 : vector<8x32xf32>
    %499 = arith.divf %497, %498 : vector<8x32xf32>
    %500 = arith.negf %478 : vector<8x32xf32>
    %501 = math.exp %500 : vector<8x32xf32>
    %cst_391 = arith.constant 1.000000e+00 : f32
    %502 = vector.broadcast %cst_391 : f32 to vector<8x32xf32>
    %503 = arith.addf %502, %501 : vector<8x32xf32>
    %504 = arith.divf %502, %503 : vector<8x32xf32>
    %505 = math.tanh %486 : vector<8x32xf32>
    %506 = arith.negf %494 : vector<8x32xf32>
    %507 = math.exp %506 : vector<8x32xf32>
    %cst_392 = arith.constant 1.000000e+00 : f32
    %508 = vector.broadcast %cst_392 : f32 to vector<8x32xf32>
    %509 = arith.addf %508, %507 : vector<8x32xf32>
    %510 = arith.divf %508, %509 : vector<8x32xf32>
    %511 = arith.mulf %504, %398 : vector<8x32xf32>
    %512 = arith.mulf %499, %505 : vector<8x32xf32>
    %513 = arith.addf %511, %512 : vector<8x32xf32>
    %514 = math.tanh %513 : vector<8x32xf32>
    %515 = arith.mulf %510, %514 : vector<8x32xf32>
    %516 = vector.broadcast %459 : i32 to vector<8x32xi32>
    %517 = arith.cmpi slt, %516, %2 : vector<8x32xi32>
    %518 = arith.select %517, %515, %397 : vector<8x32xi1>, vector<8x32xf32>
    %519 = arith.select %517, %513, %398 : vector<8x32xi1>, vector<8x32xf32>
    %c4_i32 = arith.constant 4 : i32
    %520 = arith.index_cast %c4_i32 : i32 to index
    %c0_393 = arith.constant 0 : index
    %c0_394 = arith.constant 0 : index
    %521 = vector.load %arg0[%520, %c0_393, %c0_394] : memref<8x8x16xf32, #tpu.memory_space<vmem>>, vector<1x8x16xf32>
    %522 = vector.shape_cast %521 : vector<1x8x16xf32> to vector<8x16xf32>
    %c0_395 = arith.constant 0 : index
    %c0_396 = arith.constant 0 : index
    %c0_397 = arith.constant 0 : index
    %c0_398 = arith.constant 0 : index
    %523 = vector.load %arg2[%c0_395, %c0_396, %c0_397, %c0_398] : memref<2x4x16x32xf32, #tpu.memory_space<vmem>>, vector<1x1x16x32xf32>
    %524 = vector.shape_cast %523 : vector<1x1x16x32xf32> to vector<16x32xf32>
    %cst_399 = arith.constant dense<0.000000e+00> : vector<8x32xf32>
    %525 = tpu.matmul %522, %524, %cst_399 {dimension_numbers = #tpu.dot_dimension_numbers<[1], [0], [0], [1], [0, 0, 1, 1], [], []>} : vector<8x16xf32>, vector<16x32xf32>, vector<8x32xf32> -> vector<8x32xf32>
    %c0_400 = arith.constant 0 : index
    %c0_401 = arith.constant 0 : index
    %c0_402 = arith.constant 0 : index
    %c0_403 = arith.constant 0 : index
    %526 = vector.load %arg3[%c0_400, %c0_401, %c0_402, %c0_403] : memref<2x4x32x32xf32, #tpu.memory_space<vmem>>, vector<1x1x32x32xf32>
    %527 = vector.shape_cast %526 : vector<1x1x32x32xf32> to vector<32x32xf32>
    %cst_404 = arith.constant dense<0.000000e+00> : vector<8x32xf32>
    %528 = tpu.matmul %457, %527, %cst_404 {dimension_numbers = #tpu.dot_dimension_numbers<[1], [0], [0], [1], [0, 0, 1, 1], [], []>} : vector<8x32xf32>, vector<32x32xf32>, vector<8x32xf32> -> vector<8x32xf32>
    %529 = arith.addf %525, %528 : vector<8x32xf32>
    %530 = arith.addf %529, %6 : vector<8x32xf32>
    %c0_405 = arith.constant 0 : index
    %c1_406 = arith.constant 1 : index
    %c0_407 = arith.constant 0 : index
    %c0_408 = arith.constant 0 : index
    %531 = vector.load %arg2[%c0_405, %c1_406, %c0_407, %c0_408] : memref<2x4x16x32xf32, #tpu.memory_space<vmem>>, vector<1x1x16x32xf32>
    %532 = vector.shape_cast %531 : vector<1x1x16x32xf32> to vector<16x32xf32>
    %cst_409 = arith.constant dense<0.000000e+00> : vector<8x32xf32>
    %533 = tpu.matmul %522, %532, %cst_409 {dimension_numbers = #tpu.dot_dimension_numbers<[1], [0], [0], [1], [0, 0, 1, 1], [], []>} : vector<8x16xf32>, vector<16x32xf32>, vector<8x32xf32> -> vector<8x32xf32>
    %c0_410 = arith.constant 0 : index
    %c1_411 = arith.constant 1 : index
    %c0_412 = arith.constant 0 : index
    %c0_413 = arith.constant 0 : index
    %534 = vector.load %arg3[%c0_410, %c1_411, %c0_412, %c0_413] : memref<2x4x32x32xf32, #tpu.memory_space<vmem>>, vector<1x1x32x32xf32>
    %535 = vector.shape_cast %534 : vector<1x1x32x32xf32> to vector<32x32xf32>
    %cst_414 = arith.constant dense<0.000000e+00> : vector<8x32xf32>
    %536 = tpu.matmul %457, %535, %cst_414 {dimension_numbers = #tpu.dot_dimension_numbers<[1], [0], [0], [1], [0, 0, 1, 1], [], []>} : vector<8x32xf32>, vector<32x32xf32>, vector<8x32xf32> -> vector<8x32xf32>
    %537 = arith.addf %533, %536 : vector<8x32xf32>
    %538 = arith.addf %537, %10 : vector<8x32xf32>
    %c0_415 = arith.constant 0 : index
    %c2_416 = arith.constant 2 : index
    %c0_417 = arith.constant 0 : index
    %c0_418 = arith.constant 0 : index
    %539 = vector.load %arg2[%c0_415, %c2_416, %c0_417, %c0_418] : memref<2x4x16x32xf32, #tpu.memory_space<vmem>>, vector<1x1x16x32xf32>
    %540 = vector.shape_cast %539 : vector<1x1x16x32xf32> to vector<16x32xf32>
    %cst_419 = arith.constant dense<0.000000e+00> : vector<8x32xf32>
    %541 = tpu.matmul %522, %540, %cst_419 {dimension_numbers = #tpu.dot_dimension_numbers<[1], [0], [0], [1], [0, 0, 1, 1], [], []>} : vector<8x16xf32>, vector<16x32xf32>, vector<8x32xf32> -> vector<8x32xf32>
    %c0_420 = arith.constant 0 : index
    %c2_421 = arith.constant 2 : index
    %c0_422 = arith.constant 0 : index
    %c0_423 = arith.constant 0 : index
    %542 = vector.load %arg3[%c0_420, %c2_421, %c0_422, %c0_423] : memref<2x4x32x32xf32, #tpu.memory_space<vmem>>, vector<1x1x32x32xf32>
    %543 = vector.shape_cast %542 : vector<1x1x32x32xf32> to vector<32x32xf32>
    %cst_424 = arith.constant dense<0.000000e+00> : vector<8x32xf32>
    %544 = tpu.matmul %457, %543, %cst_424 {dimension_numbers = #tpu.dot_dimension_numbers<[1], [0], [0], [1], [0, 0, 1, 1], [], []>} : vector<8x32xf32>, vector<32x32xf32>, vector<8x32xf32> -> vector<8x32xf32>
    %545 = arith.addf %541, %544 : vector<8x32xf32>
    %546 = arith.addf %545, %14 : vector<8x32xf32>
    %c0_425 = arith.constant 0 : index
    %c3_426 = arith.constant 3 : index
    %c0_427 = arith.constant 0 : index
    %c0_428 = arith.constant 0 : index
    %547 = vector.load %arg2[%c0_425, %c3_426, %c0_427, %c0_428] : memref<2x4x16x32xf32, #tpu.memory_space<vmem>>, vector<1x1x16x32xf32>
    %548 = vector.shape_cast %547 : vector<1x1x16x32xf32> to vector<16x32xf32>
    %cst_429 = arith.constant dense<0.000000e+00> : vector<8x32xf32>
    %549 = tpu.matmul %522, %548, %cst_429 {dimension_numbers = #tpu.dot_dimension_numbers<[1], [0], [0], [1], [0, 0, 1, 1], [], []>} : vector<8x16xf32>, vector<16x32xf32>, vector<8x32xf32> -> vector<8x32xf32>
    %c0_430 = arith.constant 0 : index
    %c3_431 = arith.constant 3 : index
    %c0_432 = arith.constant 0 : index
    %c0_433 = arith.constant 0 : index
    %550 = vector.load %arg3[%c0_430, %c3_431, %c0_432, %c0_433] : memref<2x4x32x32xf32, #tpu.memory_space<vmem>>, vector<1x1x32x32xf32>
    %551 = vector.shape_cast %550 : vector<1x1x32x32xf32> to vector<32x32xf32>
    %cst_434 = arith.constant dense<0.000000e+00> : vector<8x32xf32>
    %552 = tpu.matmul %457, %551, %cst_434 {dimension_numbers = #tpu.dot_dimension_numbers<[1], [0], [0], [1], [0, 0, 1, 1], [], []>} : vector<8x32xf32>, vector<32x32xf32>, vector<8x32xf32> -> vector<8x32xf32>
    %553 = arith.addf %549, %552 : vector<8x32xf32>
    %554 = arith.addf %553, %18 : vector<8x32xf32>
    %555 = arith.negf %530 : vector<8x32xf32>
    %556 = math.exp %555 : vector<8x32xf32>
    %cst_435 = arith.constant 1.000000e+00 : f32
    %557 = vector.broadcast %cst_435 : f32 to vector<8x32xf32>
    %558 = arith.addf %557, %556 : vector<8x32xf32>
    %559 = arith.divf %557, %558 : vector<8x32xf32>
    %560 = arith.negf %538 : vector<8x32xf32>
    %561 = math.exp %560 : vector<8x32xf32>
    %cst_436 = arith.constant 1.000000e+00 : f32
    %562 = vector.broadcast %cst_436 : f32 to vector<8x32xf32>
    %563 = arith.addf %562, %561 : vector<8x32xf32>
    %564 = arith.divf %562, %563 : vector<8x32xf32>
    %565 = math.tanh %546 : vector<8x32xf32>
    %566 = arith.negf %554 : vector<8x32xf32>
    %567 = math.exp %566 : vector<8x32xf32>
    %cst_437 = arith.constant 1.000000e+00 : f32
    %568 = vector.broadcast %cst_437 : f32 to vector<8x32xf32>
    %569 = arith.addf %568, %567 : vector<8x32xf32>
    %570 = arith.divf %568, %569 : vector<8x32xf32>
    %571 = arith.mulf %564, %458 : vector<8x32xf32>
    %572 = arith.mulf %559, %565 : vector<8x32xf32>
    %573 = arith.addf %571, %572 : vector<8x32xf32>
    %574 = math.tanh %573 : vector<8x32xf32>
    %575 = arith.mulf %570, %574 : vector<8x32xf32>
    %576 = vector.broadcast %c4_i32 : i32 to vector<8x32xi32>
    %577 = arith.cmpi slt, %576, %2 : vector<8x32xi32>
    %578 = arith.select %577, %575, %457 : vector<8x32xi1>, vector<8x32xf32>
    %579 = arith.select %577, %573, %458 : vector<8x32xi1>, vector<8x32xf32>
    %c7_i32_438 = arith.constant 7 : i32
    %580 = arith.subi %c7_i32_438, %c4_i32 : i32
    %581 = arith.index_cast %580 : i32 to index
    %c0_439 = arith.constant 0 : index
    %c0_440 = arith.constant 0 : index
    %582 = vector.load %arg0[%581, %c0_439, %c0_440] : memref<8x8x16xf32, #tpu.memory_space<vmem>>, vector<1x8x16xf32>
    %583 = vector.shape_cast %582 : vector<1x8x16xf32> to vector<8x16xf32>
    %c1_441 = arith.constant 1 : index
    %c0_442 = arith.constant 0 : index
    %c0_443 = arith.constant 0 : index
    %c0_444 = arith.constant 0 : index
    %584 = vector.load %arg2[%c1_441, %c0_442, %c0_443, %c0_444] : memref<2x4x16x32xf32, #tpu.memory_space<vmem>>, vector<1x1x16x32xf32>
    %585 = vector.shape_cast %584 : vector<1x1x16x32xf32> to vector<16x32xf32>
    %cst_445 = arith.constant dense<0.000000e+00> : vector<8x32xf32>
    %586 = tpu.matmul %583, %585, %cst_445 {dimension_numbers = #tpu.dot_dimension_numbers<[1], [0], [0], [1], [0, 0, 1, 1], [], []>} : vector<8x16xf32>, vector<16x32xf32>, vector<8x32xf32> -> vector<8x32xf32>
    %c1_446 = arith.constant 1 : index
    %c0_447 = arith.constant 0 : index
    %c0_448 = arith.constant 0 : index
    %c0_449 = arith.constant 0 : index
    %587 = vector.load %arg3[%c1_446, %c0_447, %c0_448, %c0_449] : memref<2x4x32x32xf32, #tpu.memory_space<vmem>>, vector<1x1x32x32xf32>
    %588 = vector.shape_cast %587 : vector<1x1x32x32xf32> to vector<32x32xf32>
    %cst_450 = arith.constant dense<0.000000e+00> : vector<8x32xf32>
    %589 = tpu.matmul %518, %588, %cst_450 {dimension_numbers = #tpu.dot_dimension_numbers<[1], [0], [0], [1], [0, 0, 1, 1], [], []>} : vector<8x32xf32>, vector<32x32xf32>, vector<8x32xf32> -> vector<8x32xf32>
    %590 = arith.addf %586, %589 : vector<8x32xf32>
    %591 = arith.addf %590, %22 : vector<8x32xf32>
    %c1_451 = arith.constant 1 : index
    %c1_452 = arith.constant 1 : index
    %c0_453 = arith.constant 0 : index
    %c0_454 = arith.constant 0 : index
    %592 = vector.load %arg2[%c1_451, %c1_452, %c0_453, %c0_454] : memref<2x4x16x32xf32, #tpu.memory_space<vmem>>, vector<1x1x16x32xf32>
    %593 = vector.shape_cast %592 : vector<1x1x16x32xf32> to vector<16x32xf32>
    %cst_455 = arith.constant dense<0.000000e+00> : vector<8x32xf32>
    %594 = tpu.matmul %583, %593, %cst_455 {dimension_numbers = #tpu.dot_dimension_numbers<[1], [0], [0], [1], [0, 0, 1, 1], [], []>} : vector<8x16xf32>, vector<16x32xf32>, vector<8x32xf32> -> vector<8x32xf32>
    %c1_456 = arith.constant 1 : index
    %c1_457 = arith.constant 1 : index
    %c0_458 = arith.constant 0 : index
    %c0_459 = arith.constant 0 : index
    %595 = vector.load %arg3[%c1_456, %c1_457, %c0_458, %c0_459] : memref<2x4x32x32xf32, #tpu.memory_space<vmem>>, vector<1x1x32x32xf32>
    %596 = vector.shape_cast %595 : vector<1x1x32x32xf32> to vector<32x32xf32>
    %cst_460 = arith.constant dense<0.000000e+00> : vector<8x32xf32>
    %597 = tpu.matmul %518, %596, %cst_460 {dimension_numbers = #tpu.dot_dimension_numbers<[1], [0], [0], [1], [0, 0, 1, 1], [], []>} : vector<8x32xf32>, vector<32x32xf32>, vector<8x32xf32> -> vector<8x32xf32>
    %598 = arith.addf %594, %597 : vector<8x32xf32>
    %599 = arith.addf %598, %26 : vector<8x32xf32>
    %c1_461 = arith.constant 1 : index
    %c2_462 = arith.constant 2 : index
    %c0_463 = arith.constant 0 : index
    %c0_464 = arith.constant 0 : index
    %600 = vector.load %arg2[%c1_461, %c2_462, %c0_463, %c0_464] : memref<2x4x16x32xf32, #tpu.memory_space<vmem>>, vector<1x1x16x32xf32>
    %601 = vector.shape_cast %600 : vector<1x1x16x32xf32> to vector<16x32xf32>
    %cst_465 = arith.constant dense<0.000000e+00> : vector<8x32xf32>
    %602 = tpu.matmul %583, %601, %cst_465 {dimension_numbers = #tpu.dot_dimension_numbers<[1], [0], [0], [1], [0, 0, 1, 1], [], []>} : vector<8x16xf32>, vector<16x32xf32>, vector<8x32xf32> -> vector<8x32xf32>
    %c1_466 = arith.constant 1 : index
    %c2_467 = arith.constant 2 : index
    %c0_468 = arith.constant 0 : index
    %c0_469 = arith.constant 0 : index
    %603 = vector.load %arg3[%c1_466, %c2_467, %c0_468, %c0_469] : memref<2x4x32x32xf32, #tpu.memory_space<vmem>>, vector<1x1x32x32xf32>
    %604 = vector.shape_cast %603 : vector<1x1x32x32xf32> to vector<32x32xf32>
    %cst_470 = arith.constant dense<0.000000e+00> : vector<8x32xf32>
    %605 = tpu.matmul %518, %604, %cst_470 {dimension_numbers = #tpu.dot_dimension_numbers<[1], [0], [0], [1], [0, 0, 1, 1], [], []>} : vector<8x32xf32>, vector<32x32xf32>, vector<8x32xf32> -> vector<8x32xf32>
    %606 = arith.addf %602, %605 : vector<8x32xf32>
    %607 = arith.addf %606, %30 : vector<8x32xf32>
    %c1_471 = arith.constant 1 : index
    %c3_472 = arith.constant 3 : index
    %c0_473 = arith.constant 0 : index
    %c0_474 = arith.constant 0 : index
    %608 = vector.load %arg2[%c1_471, %c3_472, %c0_473, %c0_474] : memref<2x4x16x32xf32, #tpu.memory_space<vmem>>, vector<1x1x16x32xf32>
    %609 = vector.shape_cast %608 : vector<1x1x16x32xf32> to vector<16x32xf32>
    %cst_475 = arith.constant dense<0.000000e+00> : vector<8x32xf32>
    %610 = tpu.matmul %583, %609, %cst_475 {dimension_numbers = #tpu.dot_dimension_numbers<[1], [0], [0], [1], [0, 0, 1, 1], [], []>} : vector<8x16xf32>, vector<16x32xf32>, vector<8x32xf32> -> vector<8x32xf32>
    %c1_476 = arith.constant 1 : index
    %c3_477 = arith.constant 3 : index
    %c0_478 = arith.constant 0 : index
    %c0_479 = arith.constant 0 : index
    %611 = vector.load %arg3[%c1_476, %c3_477, %c0_478, %c0_479] : memref<2x4x32x32xf32, #tpu.memory_space<vmem>>, vector<1x1x32x32xf32>
    %612 = vector.shape_cast %611 : vector<1x1x32x32xf32> to vector<32x32xf32>
    %cst_480 = arith.constant dense<0.000000e+00> : vector<8x32xf32>
    %613 = tpu.matmul %518, %612, %cst_480 {dimension_numbers = #tpu.dot_dimension_numbers<[1], [0], [0], [1], [0, 0, 1, 1], [], []>} : vector<8x32xf32>, vector<32x32xf32>, vector<8x32xf32> -> vector<8x32xf32>
    %614 = arith.addf %610, %613 : vector<8x32xf32>
    %615 = arith.addf %614, %34 : vector<8x32xf32>
    %616 = arith.negf %591 : vector<8x32xf32>
    %617 = math.exp %616 : vector<8x32xf32>
    %cst_481 = arith.constant 1.000000e+00 : f32
    %618 = vector.broadcast %cst_481 : f32 to vector<8x32xf32>
    %619 = arith.addf %618, %617 : vector<8x32xf32>
    %620 = arith.divf %618, %619 : vector<8x32xf32>
    %621 = arith.negf %599 : vector<8x32xf32>
    %622 = math.exp %621 : vector<8x32xf32>
    %cst_482 = arith.constant 1.000000e+00 : f32
    %623 = vector.broadcast %cst_482 : f32 to vector<8x32xf32>
    %624 = arith.addf %623, %622 : vector<8x32xf32>
    %625 = arith.divf %623, %624 : vector<8x32xf32>
    %626 = math.tanh %607 : vector<8x32xf32>
    %627 = arith.negf %615 : vector<8x32xf32>
    %628 = math.exp %627 : vector<8x32xf32>
    %cst_483 = arith.constant 1.000000e+00 : f32
    %629 = vector.broadcast %cst_483 : f32 to vector<8x32xf32>
    %630 = arith.addf %629, %628 : vector<8x32xf32>
    %631 = arith.divf %629, %630 : vector<8x32xf32>
    %632 = arith.mulf %625, %519 : vector<8x32xf32>
    %633 = arith.mulf %620, %626 : vector<8x32xf32>
    %634 = arith.addf %632, %633 : vector<8x32xf32>
    %635 = math.tanh %634 : vector<8x32xf32>
    %636 = arith.mulf %631, %635 : vector<8x32xf32>
    %637 = vector.broadcast %580 : i32 to vector<8x32xi32>
    %638 = arith.cmpi slt, %637, %2 : vector<8x32xi32>
    %639 = arith.select %638, %636, %518 : vector<8x32xi1>, vector<8x32xf32>
    %640 = arith.select %638, %634, %519 : vector<8x32xi1>, vector<8x32xf32>
    %c5_i32 = arith.constant 5 : i32
    %641 = arith.index_cast %c5_i32 : i32 to index
    %c0_484 = arith.constant 0 : index
    %c0_485 = arith.constant 0 : index
    %642 = vector.load %arg0[%641, %c0_484, %c0_485] : memref<8x8x16xf32, #tpu.memory_space<vmem>>, vector<1x8x16xf32>
    %643 = vector.shape_cast %642 : vector<1x8x16xf32> to vector<8x16xf32>
    %c0_486 = arith.constant 0 : index
    %c0_487 = arith.constant 0 : index
    %c0_488 = arith.constant 0 : index
    %c0_489 = arith.constant 0 : index
    %644 = vector.load %arg2[%c0_486, %c0_487, %c0_488, %c0_489] : memref<2x4x16x32xf32, #tpu.memory_space<vmem>>, vector<1x1x16x32xf32>
    %645 = vector.shape_cast %644 : vector<1x1x16x32xf32> to vector<16x32xf32>
    %cst_490 = arith.constant dense<0.000000e+00> : vector<8x32xf32>
    %646 = tpu.matmul %643, %645, %cst_490 {dimension_numbers = #tpu.dot_dimension_numbers<[1], [0], [0], [1], [0, 0, 1, 1], [], []>} : vector<8x16xf32>, vector<16x32xf32>, vector<8x32xf32> -> vector<8x32xf32>
    %c0_491 = arith.constant 0 : index
    %c0_492 = arith.constant 0 : index
    %c0_493 = arith.constant 0 : index
    %c0_494 = arith.constant 0 : index
    %647 = vector.load %arg3[%c0_491, %c0_492, %c0_493, %c0_494] : memref<2x4x32x32xf32, #tpu.memory_space<vmem>>, vector<1x1x32x32xf32>
    %648 = vector.shape_cast %647 : vector<1x1x32x32xf32> to vector<32x32xf32>
    %cst_495 = arith.constant dense<0.000000e+00> : vector<8x32xf32>
    %649 = tpu.matmul %578, %648, %cst_495 {dimension_numbers = #tpu.dot_dimension_numbers<[1], [0], [0], [1], [0, 0, 1, 1], [], []>} : vector<8x32xf32>, vector<32x32xf32>, vector<8x32xf32> -> vector<8x32xf32>
    %650 = arith.addf %646, %649 : vector<8x32xf32>
    %651 = arith.addf %650, %6 : vector<8x32xf32>
    %c0_496 = arith.constant 0 : index
    %c1_497 = arith.constant 1 : index
    %c0_498 = arith.constant 0 : index
    %c0_499 = arith.constant 0 : index
    %652 = vector.load %arg2[%c0_496, %c1_497, %c0_498, %c0_499] : memref<2x4x16x32xf32, #tpu.memory_space<vmem>>, vector<1x1x16x32xf32>
    %653 = vector.shape_cast %652 : vector<1x1x16x32xf32> to vector<16x32xf32>
    %cst_500 = arith.constant dense<0.000000e+00> : vector<8x32xf32>
    %654 = tpu.matmul %643, %653, %cst_500 {dimension_numbers = #tpu.dot_dimension_numbers<[1], [0], [0], [1], [0, 0, 1, 1], [], []>} : vector<8x16xf32>, vector<16x32xf32>, vector<8x32xf32> -> vector<8x32xf32>
    %c0_501 = arith.constant 0 : index
    %c1_502 = arith.constant 1 : index
    %c0_503 = arith.constant 0 : index
    %c0_504 = arith.constant 0 : index
    %655 = vector.load %arg3[%c0_501, %c1_502, %c0_503, %c0_504] : memref<2x4x32x32xf32, #tpu.memory_space<vmem>>, vector<1x1x32x32xf32>
    %656 = vector.shape_cast %655 : vector<1x1x32x32xf32> to vector<32x32xf32>
    %cst_505 = arith.constant dense<0.000000e+00> : vector<8x32xf32>
    %657 = tpu.matmul %578, %656, %cst_505 {dimension_numbers = #tpu.dot_dimension_numbers<[1], [0], [0], [1], [0, 0, 1, 1], [], []>} : vector<8x32xf32>, vector<32x32xf32>, vector<8x32xf32> -> vector<8x32xf32>
    %658 = arith.addf %654, %657 : vector<8x32xf32>
    %659 = arith.addf %658, %10 : vector<8x32xf32>
    %c0_506 = arith.constant 0 : index
    %c2_507 = arith.constant 2 : index
    %c0_508 = arith.constant 0 : index
    %c0_509 = arith.constant 0 : index
    %660 = vector.load %arg2[%c0_506, %c2_507, %c0_508, %c0_509] : memref<2x4x16x32xf32, #tpu.memory_space<vmem>>, vector<1x1x16x32xf32>
    %661 = vector.shape_cast %660 : vector<1x1x16x32xf32> to vector<16x32xf32>
    %cst_510 = arith.constant dense<0.000000e+00> : vector<8x32xf32>
    %662 = tpu.matmul %643, %661, %cst_510 {dimension_numbers = #tpu.dot_dimension_numbers<[1], [0], [0], [1], [0, 0, 1, 1], [], []>} : vector<8x16xf32>, vector<16x32xf32>, vector<8x32xf32> -> vector<8x32xf32>
    %c0_511 = arith.constant 0 : index
    %c2_512 = arith.constant 2 : index
    %c0_513 = arith.constant 0 : index
    %c0_514 = arith.constant 0 : index
    %663 = vector.load %arg3[%c0_511, %c2_512, %c0_513, %c0_514] : memref<2x4x32x32xf32, #tpu.memory_space<vmem>>, vector<1x1x32x32xf32>
    %664 = vector.shape_cast %663 : vector<1x1x32x32xf32> to vector<32x32xf32>
    %cst_515 = arith.constant dense<0.000000e+00> : vector<8x32xf32>
    %665 = tpu.matmul %578, %664, %cst_515 {dimension_numbers = #tpu.dot_dimension_numbers<[1], [0], [0], [1], [0, 0, 1, 1], [], []>} : vector<8x32xf32>, vector<32x32xf32>, vector<8x32xf32> -> vector<8x32xf32>
    %666 = arith.addf %662, %665 : vector<8x32xf32>
    %667 = arith.addf %666, %14 : vector<8x32xf32>
    %c0_516 = arith.constant 0 : index
    %c3_517 = arith.constant 3 : index
    %c0_518 = arith.constant 0 : index
    %c0_519 = arith.constant 0 : index
    %668 = vector.load %arg2[%c0_516, %c3_517, %c0_518, %c0_519] : memref<2x4x16x32xf32, #tpu.memory_space<vmem>>, vector<1x1x16x32xf32>
    %669 = vector.shape_cast %668 : vector<1x1x16x32xf32> to vector<16x32xf32>
    %cst_520 = arith.constant dense<0.000000e+00> : vector<8x32xf32>
    %670 = tpu.matmul %643, %669, %cst_520 {dimension_numbers = #tpu.dot_dimension_numbers<[1], [0], [0], [1], [0, 0, 1, 1], [], []>} : vector<8x16xf32>, vector<16x32xf32>, vector<8x32xf32> -> vector<8x32xf32>
    %c0_521 = arith.constant 0 : index
    %c3_522 = arith.constant 3 : index
    %c0_523 = arith.constant 0 : index
    %c0_524 = arith.constant 0 : index
    %671 = vector.load %arg3[%c0_521, %c3_522, %c0_523, %c0_524] : memref<2x4x32x32xf32, #tpu.memory_space<vmem>>, vector<1x1x32x32xf32>
    %672 = vector.shape_cast %671 : vector<1x1x32x32xf32> to vector<32x32xf32>
    %cst_525 = arith.constant dense<0.000000e+00> : vector<8x32xf32>
    %673 = tpu.matmul %578, %672, %cst_525 {dimension_numbers = #tpu.dot_dimension_numbers<[1], [0], [0], [1], [0, 0, 1, 1], [], []>} : vector<8x32xf32>, vector<32x32xf32>, vector<8x32xf32> -> vector<8x32xf32>
    %674 = arith.addf %670, %673 : vector<8x32xf32>
    %675 = arith.addf %674, %18 : vector<8x32xf32>
    %676 = arith.negf %651 : vector<8x32xf32>
    %677 = math.exp %676 : vector<8x32xf32>
    %cst_526 = arith.constant 1.000000e+00 : f32
    %678 = vector.broadcast %cst_526 : f32 to vector<8x32xf32>
    %679 = arith.addf %678, %677 : vector<8x32xf32>
    %680 = arith.divf %678, %679 : vector<8x32xf32>
    %681 = arith.negf %659 : vector<8x32xf32>
    %682 = math.exp %681 : vector<8x32xf32>
    %cst_527 = arith.constant 1.000000e+00 : f32
    %683 = vector.broadcast %cst_527 : f32 to vector<8x32xf32>
    %684 = arith.addf %683, %682 : vector<8x32xf32>
    %685 = arith.divf %683, %684 : vector<8x32xf32>
    %686 = math.tanh %667 : vector<8x32xf32>
    %687 = arith.negf %675 : vector<8x32xf32>
    %688 = math.exp %687 : vector<8x32xf32>
    %cst_528 = arith.constant 1.000000e+00 : f32
    %689 = vector.broadcast %cst_528 : f32 to vector<8x32xf32>
    %690 = arith.addf %689, %688 : vector<8x32xf32>
    %691 = arith.divf %689, %690 : vector<8x32xf32>
    %692 = arith.mulf %685, %579 : vector<8x32xf32>
    %693 = arith.mulf %680, %686 : vector<8x32xf32>
    %694 = arith.addf %692, %693 : vector<8x32xf32>
    %695 = math.tanh %694 : vector<8x32xf32>
    %696 = arith.mulf %691, %695 : vector<8x32xf32>
    %697 = vector.broadcast %c5_i32 : i32 to vector<8x32xi32>
    %698 = arith.cmpi slt, %697, %2 : vector<8x32xi32>
    %699 = arith.select %698, %696, %578 : vector<8x32xi1>, vector<8x32xf32>
    %700 = arith.select %698, %694, %579 : vector<8x32xi1>, vector<8x32xf32>
    %c7_i32_529 = arith.constant 7 : i32
    %701 = arith.subi %c7_i32_529, %c5_i32 : i32
    %702 = arith.index_cast %701 : i32 to index
    %c0_530 = arith.constant 0 : index
    %c0_531 = arith.constant 0 : index
    %703 = vector.load %arg0[%702, %c0_530, %c0_531] : memref<8x8x16xf32, #tpu.memory_space<vmem>>, vector<1x8x16xf32>
    %704 = vector.shape_cast %703 : vector<1x8x16xf32> to vector<8x16xf32>
    %c1_532 = arith.constant 1 : index
    %c0_533 = arith.constant 0 : index
    %c0_534 = arith.constant 0 : index
    %c0_535 = arith.constant 0 : index
    %705 = vector.load %arg2[%c1_532, %c0_533, %c0_534, %c0_535] : memref<2x4x16x32xf32, #tpu.memory_space<vmem>>, vector<1x1x16x32xf32>
    %706 = vector.shape_cast %705 : vector<1x1x16x32xf32> to vector<16x32xf32>
    %cst_536 = arith.constant dense<0.000000e+00> : vector<8x32xf32>
    %707 = tpu.matmul %704, %706, %cst_536 {dimension_numbers = #tpu.dot_dimension_numbers<[1], [0], [0], [1], [0, 0, 1, 1], [], []>} : vector<8x16xf32>, vector<16x32xf32>, vector<8x32xf32> -> vector<8x32xf32>
    %c1_537 = arith.constant 1 : index
    %c0_538 = arith.constant 0 : index
    %c0_539 = arith.constant 0 : index
    %c0_540 = arith.constant 0 : index
    %708 = vector.load %arg3[%c1_537, %c0_538, %c0_539, %c0_540] : memref<2x4x32x32xf32, #tpu.memory_space<vmem>>, vector<1x1x32x32xf32>
    %709 = vector.shape_cast %708 : vector<1x1x32x32xf32> to vector<32x32xf32>
    %cst_541 = arith.constant dense<0.000000e+00> : vector<8x32xf32>
    %710 = tpu.matmul %639, %709, %cst_541 {dimension_numbers = #tpu.dot_dimension_numbers<[1], [0], [0], [1], [0, 0, 1, 1], [], []>} : vector<8x32xf32>, vector<32x32xf32>, vector<8x32xf32> -> vector<8x32xf32>
    %711 = arith.addf %707, %710 : vector<8x32xf32>
    %712 = arith.addf %711, %22 : vector<8x32xf32>
    %c1_542 = arith.constant 1 : index
    %c1_543 = arith.constant 1 : index
    %c0_544 = arith.constant 0 : index
    %c0_545 = arith.constant 0 : index
    %713 = vector.load %arg2[%c1_542, %c1_543, %c0_544, %c0_545] : memref<2x4x16x32xf32, #tpu.memory_space<vmem>>, vector<1x1x16x32xf32>
    %714 = vector.shape_cast %713 : vector<1x1x16x32xf32> to vector<16x32xf32>
    %cst_546 = arith.constant dense<0.000000e+00> : vector<8x32xf32>
    %715 = tpu.matmul %704, %714, %cst_546 {dimension_numbers = #tpu.dot_dimension_numbers<[1], [0], [0], [1], [0, 0, 1, 1], [], []>} : vector<8x16xf32>, vector<16x32xf32>, vector<8x32xf32> -> vector<8x32xf32>
    %c1_547 = arith.constant 1 : index
    %c1_548 = arith.constant 1 : index
    %c0_549 = arith.constant 0 : index
    %c0_550 = arith.constant 0 : index
    %716 = vector.load %arg3[%c1_547, %c1_548, %c0_549, %c0_550] : memref<2x4x32x32xf32, #tpu.memory_space<vmem>>, vector<1x1x32x32xf32>
    %717 = vector.shape_cast %716 : vector<1x1x32x32xf32> to vector<32x32xf32>
    %cst_551 = arith.constant dense<0.000000e+00> : vector<8x32xf32>
    %718 = tpu.matmul %639, %717, %cst_551 {dimension_numbers = #tpu.dot_dimension_numbers<[1], [0], [0], [1], [0, 0, 1, 1], [], []>} : vector<8x32xf32>, vector<32x32xf32>, vector<8x32xf32> -> vector<8x32xf32>
    %719 = arith.addf %715, %718 : vector<8x32xf32>
    %720 = arith.addf %719, %26 : vector<8x32xf32>
    %c1_552 = arith.constant 1 : index
    %c2_553 = arith.constant 2 : index
    %c0_554 = arith.constant 0 : index
    %c0_555 = arith.constant 0 : index
    %721 = vector.load %arg2[%c1_552, %c2_553, %c0_554, %c0_555] : memref<2x4x16x32xf32, #tpu.memory_space<vmem>>, vector<1x1x16x32xf32>
    %722 = vector.shape_cast %721 : vector<1x1x16x32xf32> to vector<16x32xf32>
    %cst_556 = arith.constant dense<0.000000e+00> : vector<8x32xf32>
    %723 = tpu.matmul %704, %722, %cst_556 {dimension_numbers = #tpu.dot_dimension_numbers<[1], [0], [0], [1], [0, 0, 1, 1], [], []>} : vector<8x16xf32>, vector<16x32xf32>, vector<8x32xf32> -> vector<8x32xf32>
    %c1_557 = arith.constant 1 : index
    %c2_558 = arith.constant 2 : index
    %c0_559 = arith.constant 0 : index
    %c0_560 = arith.constant 0 : index
    %724 = vector.load %arg3[%c1_557, %c2_558, %c0_559, %c0_560] : memref<2x4x32x32xf32, #tpu.memory_space<vmem>>, vector<1x1x32x32xf32>
    %725 = vector.shape_cast %724 : vector<1x1x32x32xf32> to vector<32x32xf32>
    %cst_561 = arith.constant dense<0.000000e+00> : vector<8x32xf32>
    %726 = tpu.matmul %639, %725, %cst_561 {dimension_numbers = #tpu.dot_dimension_numbers<[1], [0], [0], [1], [0, 0, 1, 1], [], []>} : vector<8x32xf32>, vector<32x32xf32>, vector<8x32xf32> -> vector<8x32xf32>
    %727 = arith.addf %723, %726 : vector<8x32xf32>
    %728 = arith.addf %727, %30 : vector<8x32xf32>
    %c1_562 = arith.constant 1 : index
    %c3_563 = arith.constant 3 : index
    %c0_564 = arith.constant 0 : index
    %c0_565 = arith.constant 0 : index
    %729 = vector.load %arg2[%c1_562, %c3_563, %c0_564, %c0_565] : memref<2x4x16x32xf32, #tpu.memory_space<vmem>>, vector<1x1x16x32xf32>
    %730 = vector.shape_cast %729 : vector<1x1x16x32xf32> to vector<16x32xf32>
    %cst_566 = arith.constant dense<0.000000e+00> : vector<8x32xf32>
    %731 = tpu.matmul %704, %730, %cst_566 {dimension_numbers = #tpu.dot_dimension_numbers<[1], [0], [0], [1], [0, 0, 1, 1], [], []>} : vector<8x16xf32>, vector<16x32xf32>, vector<8x32xf32> -> vector<8x32xf32>
    %c1_567 = arith.constant 1 : index
    %c3_568 = arith.constant 3 : index
    %c0_569 = arith.constant 0 : index
    %c0_570 = arith.constant 0 : index
    %732 = vector.load %arg3[%c1_567, %c3_568, %c0_569, %c0_570] : memref<2x4x32x32xf32, #tpu.memory_space<vmem>>, vector<1x1x32x32xf32>
    %733 = vector.shape_cast %732 : vector<1x1x32x32xf32> to vector<32x32xf32>
    %cst_571 = arith.constant dense<0.000000e+00> : vector<8x32xf32>
    %734 = tpu.matmul %639, %733, %cst_571 {dimension_numbers = #tpu.dot_dimension_numbers<[1], [0], [0], [1], [0, 0, 1, 1], [], []>} : vector<8x32xf32>, vector<32x32xf32>, vector<8x32xf32> -> vector<8x32xf32>
    %735 = arith.addf %731, %734 : vector<8x32xf32>
    %736 = arith.addf %735, %34 : vector<8x32xf32>
    %737 = arith.negf %712 : vector<8x32xf32>
    %738 = math.exp %737 : vector<8x32xf32>
    %cst_572 = arith.constant 1.000000e+00 : f32
    %739 = vector.broadcast %cst_572 : f32 to vector<8x32xf32>
    %740 = arith.addf %739, %738 : vector<8x32xf32>
    %741 = arith.divf %739, %740 : vector<8x32xf32>
    %742 = arith.negf %720 : vector<8x32xf32>
    %743 = math.exp %742 : vector<8x32xf32>
    %cst_573 = arith.constant 1.000000e+00 : f32
    %744 = vector.broadcast %cst_573 : f32 to vector<8x32xf32>
    %745 = arith.addf %744, %743 : vector<8x32xf32>
    %746 = arith.divf %744, %745 : vector<8x32xf32>
    %747 = math.tanh %728 : vector<8x32xf32>
    %748 = arith.negf %736 : vector<8x32xf32>
    %749 = math.exp %748 : vector<8x32xf32>
    %cst_574 = arith.constant 1.000000e+00 : f32
    %750 = vector.broadcast %cst_574 : f32 to vector<8x32xf32>
    %751 = arith.addf %750, %749 : vector<8x32xf32>
    %752 = arith.divf %750, %751 : vector<8x32xf32>
    %753 = arith.mulf %746, %640 : vector<8x32xf32>
    %754 = arith.mulf %741, %747 : vector<8x32xf32>
    %755 = arith.addf %753, %754 : vector<8x32xf32>
    %756 = math.tanh %755 : vector<8x32xf32>
    %757 = arith.mulf %752, %756 : vector<8x32xf32>
    %758 = vector.broadcast %701 : i32 to vector<8x32xi32>
    %759 = arith.cmpi slt, %758, %2 : vector<8x32xi32>
    %760 = arith.select %759, %757, %639 : vector<8x32xi1>, vector<8x32xf32>
    %761 = arith.select %759, %755, %640 : vector<8x32xi1>, vector<8x32xf32>
    %c6_i32 = arith.constant 6 : i32
    %762 = arith.index_cast %c6_i32 : i32 to index
    %c0_575 = arith.constant 0 : index
    %c0_576 = arith.constant 0 : index
    %763 = vector.load %arg0[%762, %c0_575, %c0_576] : memref<8x8x16xf32, #tpu.memory_space<vmem>>, vector<1x8x16xf32>
    %764 = vector.shape_cast %763 : vector<1x8x16xf32> to vector<8x16xf32>
    %c0_577 = arith.constant 0 : index
    %c0_578 = arith.constant 0 : index
    %c0_579 = arith.constant 0 : index
    %c0_580 = arith.constant 0 : index
    %765 = vector.load %arg2[%c0_577, %c0_578, %c0_579, %c0_580] : memref<2x4x16x32xf32, #tpu.memory_space<vmem>>, vector<1x1x16x32xf32>
    %766 = vector.shape_cast %765 : vector<1x1x16x32xf32> to vector<16x32xf32>
    %cst_581 = arith.constant dense<0.000000e+00> : vector<8x32xf32>
    %767 = tpu.matmul %764, %766, %cst_581 {dimension_numbers = #tpu.dot_dimension_numbers<[1], [0], [0], [1], [0, 0, 1, 1], [], []>} : vector<8x16xf32>, vector<16x32xf32>, vector<8x32xf32> -> vector<8x32xf32>
    %c0_582 = arith.constant 0 : index
    %c0_583 = arith.constant 0 : index
    %c0_584 = arith.constant 0 : index
    %c0_585 = arith.constant 0 : index
    %768 = vector.load %arg3[%c0_582, %c0_583, %c0_584, %c0_585] : memref<2x4x32x32xf32, #tpu.memory_space<vmem>>, vector<1x1x32x32xf32>
    %769 = vector.shape_cast %768 : vector<1x1x32x32xf32> to vector<32x32xf32>
    %cst_586 = arith.constant dense<0.000000e+00> : vector<8x32xf32>
    %770 = tpu.matmul %699, %769, %cst_586 {dimension_numbers = #tpu.dot_dimension_numbers<[1], [0], [0], [1], [0, 0, 1, 1], [], []>} : vector<8x32xf32>, vector<32x32xf32>, vector<8x32xf32> -> vector<8x32xf32>
    %771 = arith.addf %767, %770 : vector<8x32xf32>
    %772 = arith.addf %771, %6 : vector<8x32xf32>
    %c0_587 = arith.constant 0 : index
    %c1_588 = arith.constant 1 : index
    %c0_589 = arith.constant 0 : index
    %c0_590 = arith.constant 0 : index
    %773 = vector.load %arg2[%c0_587, %c1_588, %c0_589, %c0_590] : memref<2x4x16x32xf32, #tpu.memory_space<vmem>>, vector<1x1x16x32xf32>
    %774 = vector.shape_cast %773 : vector<1x1x16x32xf32> to vector<16x32xf32>
    %cst_591 = arith.constant dense<0.000000e+00> : vector<8x32xf32>
    %775 = tpu.matmul %764, %774, %cst_591 {dimension_numbers = #tpu.dot_dimension_numbers<[1], [0], [0], [1], [0, 0, 1, 1], [], []>} : vector<8x16xf32>, vector<16x32xf32>, vector<8x32xf32> -> vector<8x32xf32>
    %c0_592 = arith.constant 0 : index
    %c1_593 = arith.constant 1 : index
    %c0_594 = arith.constant 0 : index
    %c0_595 = arith.constant 0 : index
    %776 = vector.load %arg3[%c0_592, %c1_593, %c0_594, %c0_595] : memref<2x4x32x32xf32, #tpu.memory_space<vmem>>, vector<1x1x32x32xf32>
    %777 = vector.shape_cast %776 : vector<1x1x32x32xf32> to vector<32x32xf32>
    %cst_596 = arith.constant dense<0.000000e+00> : vector<8x32xf32>
    %778 = tpu.matmul %699, %777, %cst_596 {dimension_numbers = #tpu.dot_dimension_numbers<[1], [0], [0], [1], [0, 0, 1, 1], [], []>} : vector<8x32xf32>, vector<32x32xf32>, vector<8x32xf32> -> vector<8x32xf32>
    %779 = arith.addf %775, %778 : vector<8x32xf32>
    %780 = arith.addf %779, %10 : vector<8x32xf32>
    %c0_597 = arith.constant 0 : index
    %c2_598 = arith.constant 2 : index
    %c0_599 = arith.constant 0 : index
    %c0_600 = arith.constant 0 : index
    %781 = vector.load %arg2[%c0_597, %c2_598, %c0_599, %c0_600] : memref<2x4x16x32xf32, #tpu.memory_space<vmem>>, vector<1x1x16x32xf32>
    %782 = vector.shape_cast %781 : vector<1x1x16x32xf32> to vector<16x32xf32>
    %cst_601 = arith.constant dense<0.000000e+00> : vector<8x32xf32>
    %783 = tpu.matmul %764, %782, %cst_601 {dimension_numbers = #tpu.dot_dimension_numbers<[1], [0], [0], [1], [0, 0, 1, 1], [], []>} : vector<8x16xf32>, vector<16x32xf32>, vector<8x32xf32> -> vector<8x32xf32>
    %c0_602 = arith.constant 0 : index
    %c2_603 = arith.constant 2 : index
    %c0_604 = arith.constant 0 : index
    %c0_605 = arith.constant 0 : index
    %784 = vector.load %arg3[%c0_602, %c2_603, %c0_604, %c0_605] : memref<2x4x32x32xf32, #tpu.memory_space<vmem>>, vector<1x1x32x32xf32>
    %785 = vector.shape_cast %784 : vector<1x1x32x32xf32> to vector<32x32xf32>
    %cst_606 = arith.constant dense<0.000000e+00> : vector<8x32xf32>
    %786 = tpu.matmul %699, %785, %cst_606 {dimension_numbers = #tpu.dot_dimension_numbers<[1], [0], [0], [1], [0, 0, 1, 1], [], []>} : vector<8x32xf32>, vector<32x32xf32>, vector<8x32xf32> -> vector<8x32xf32>
    %787 = arith.addf %783, %786 : vector<8x32xf32>
    %788 = arith.addf %787, %14 : vector<8x32xf32>
    %c0_607 = arith.constant 0 : index
    %c3_608 = arith.constant 3 : index
    %c0_609 = arith.constant 0 : index
    %c0_610 = arith.constant 0 : index
    %789 = vector.load %arg2[%c0_607, %c3_608, %c0_609, %c0_610] : memref<2x4x16x32xf32, #tpu.memory_space<vmem>>, vector<1x1x16x32xf32>
    %790 = vector.shape_cast %789 : vector<1x1x16x32xf32> to vector<16x32xf32>
    %cst_611 = arith.constant dense<0.000000e+00> : vector<8x32xf32>
    %791 = tpu.matmul %764, %790, %cst_611 {dimension_numbers = #tpu.dot_dimension_numbers<[1], [0], [0], [1], [0, 0, 1, 1], [], []>} : vector<8x16xf32>, vector<16x32xf32>, vector<8x32xf32> -> vector<8x32xf32>
    %c0_612 = arith.constant 0 : index
    %c3_613 = arith.constant 3 : index
    %c0_614 = arith.constant 0 : index
    %c0_615 = arith.constant 0 : index
    %792 = vector.load %arg3[%c0_612, %c3_613, %c0_614, %c0_615] : memref<2x4x32x32xf32, #tpu.memory_space<vmem>>, vector<1x1x32x32xf32>
    %793 = vector.shape_cast %792 : vector<1x1x32x32xf32> to vector<32x32xf32>
    %cst_616 = arith.constant dense<0.000000e+00> : vector<8x32xf32>
    %794 = tpu.matmul %699, %793, %cst_616 {dimension_numbers = #tpu.dot_dimension_numbers<[1], [0], [0], [1], [0, 0, 1, 1], [], []>} : vector<8x32xf32>, vector<32x32xf32>, vector<8x32xf32> -> vector<8x32xf32>
    %795 = arith.addf %791, %794 : vector<8x32xf32>
    %796 = arith.addf %795, %18 : vector<8x32xf32>
    %797 = arith.negf %772 : vector<8x32xf32>
    %798 = math.exp %797 : vector<8x32xf32>
    %cst_617 = arith.constant 1.000000e+00 : f32
    %799 = vector.broadcast %cst_617 : f32 to vector<8x32xf32>
    %800 = arith.addf %799, %798 : vector<8x32xf32>
    %801 = arith.divf %799, %800 : vector<8x32xf32>
    %802 = arith.negf %780 : vector<8x32xf32>
    %803 = math.exp %802 : vector<8x32xf32>
    %cst_618 = arith.constant 1.000000e+00 : f32
    %804 = vector.broadcast %cst_618 : f32 to vector<8x32xf32>
    %805 = arith.addf %804, %803 : vector<8x32xf32>
    %806 = arith.divf %804, %805 : vector<8x32xf32>
    %807 = math.tanh %788 : vector<8x32xf32>
    %808 = arith.negf %796 : vector<8x32xf32>
    %809 = math.exp %808 : vector<8x32xf32>
    %cst_619 = arith.constant 1.000000e+00 : f32
    %810 = vector.broadcast %cst_619 : f32 to vector<8x32xf32>
    %811 = arith.addf %810, %809 : vector<8x32xf32>
    %812 = arith.divf %810, %811 : vector<8x32xf32>
    %813 = arith.mulf %806, %700 : vector<8x32xf32>
    %814 = arith.mulf %801, %807 : vector<8x32xf32>
    %815 = arith.addf %813, %814 : vector<8x32xf32>
    %816 = math.tanh %815 : vector<8x32xf32>
    %817 = arith.mulf %812, %816 : vector<8x32xf32>
    %818 = vector.broadcast %c6_i32 : i32 to vector<8x32xi32>
    %819 = arith.cmpi slt, %818, %2 : vector<8x32xi32>
    %820 = arith.select %819, %817, %699 : vector<8x32xi1>, vector<8x32xf32>
    %821 = arith.select %819, %815, %700 : vector<8x32xi1>, vector<8x32xf32>
    %c7_i32_620 = arith.constant 7 : i32
    %822 = arith.subi %c7_i32_620, %c6_i32 : i32
    %823 = arith.index_cast %822 : i32 to index
    %c0_621 = arith.constant 0 : index
    %c0_622 = arith.constant 0 : index
    %824 = vector.load %arg0[%823, %c0_621, %c0_622] : memref<8x8x16xf32, #tpu.memory_space<vmem>>, vector<1x8x16xf32>
    %825 = vector.shape_cast %824 : vector<1x8x16xf32> to vector<8x16xf32>
    %c1_623 = arith.constant 1 : index
    %c0_624 = arith.constant 0 : index
    %c0_625 = arith.constant 0 : index
    %c0_626 = arith.constant 0 : index
    %826 = vector.load %arg2[%c1_623, %c0_624, %c0_625, %c0_626] : memref<2x4x16x32xf32, #tpu.memory_space<vmem>>, vector<1x1x16x32xf32>
    %827 = vector.shape_cast %826 : vector<1x1x16x32xf32> to vector<16x32xf32>
    %cst_627 = arith.constant dense<0.000000e+00> : vector<8x32xf32>
    %828 = tpu.matmul %825, %827, %cst_627 {dimension_numbers = #tpu.dot_dimension_numbers<[1], [0], [0], [1], [0, 0, 1, 1], [], []>} : vector<8x16xf32>, vector<16x32xf32>, vector<8x32xf32> -> vector<8x32xf32>
    %c1_628 = arith.constant 1 : index
    %c0_629 = arith.constant 0 : index
    %c0_630 = arith.constant 0 : index
    %c0_631 = arith.constant 0 : index
    %829 = vector.load %arg3[%c1_628, %c0_629, %c0_630, %c0_631] : memref<2x4x32x32xf32, #tpu.memory_space<vmem>>, vector<1x1x32x32xf32>
    %830 = vector.shape_cast %829 : vector<1x1x32x32xf32> to vector<32x32xf32>
    %cst_632 = arith.constant dense<0.000000e+00> : vector<8x32xf32>
    %831 = tpu.matmul %760, %830, %cst_632 {dimension_numbers = #tpu.dot_dimension_numbers<[1], [0], [0], [1], [0, 0, 1, 1], [], []>} : vector<8x32xf32>, vector<32x32xf32>, vector<8x32xf32> -> vector<8x32xf32>
    %832 = arith.addf %828, %831 : vector<8x32xf32>
    %833 = arith.addf %832, %22 : vector<8x32xf32>
    %c1_633 = arith.constant 1 : index
    %c1_634 = arith.constant 1 : index
    %c0_635 = arith.constant 0 : index
    %c0_636 = arith.constant 0 : index
    %834 = vector.load %arg2[%c1_633, %c1_634, %c0_635, %c0_636] : memref<2x4x16x32xf32, #tpu.memory_space<vmem>>, vector<1x1x16x32xf32>
    %835 = vector.shape_cast %834 : vector<1x1x16x32xf32> to vector<16x32xf32>
    %cst_637 = arith.constant dense<0.000000e+00> : vector<8x32xf32>
    %836 = tpu.matmul %825, %835, %cst_637 {dimension_numbers = #tpu.dot_dimension_numbers<[1], [0], [0], [1], [0, 0, 1, 1], [], []>} : vector<8x16xf32>, vector<16x32xf32>, vector<8x32xf32> -> vector<8x32xf32>
    %c1_638 = arith.constant 1 : index
    %c1_639 = arith.constant 1 : index
    %c0_640 = arith.constant 0 : index
    %c0_641 = arith.constant 0 : index
    %837 = vector.load %arg3[%c1_638, %c1_639, %c0_640, %c0_641] : memref<2x4x32x32xf32, #tpu.memory_space<vmem>>, vector<1x1x32x32xf32>
    %838 = vector.shape_cast %837 : vector<1x1x32x32xf32> to vector<32x32xf32>
    %cst_642 = arith.constant dense<0.000000e+00> : vector<8x32xf32>
    %839 = tpu.matmul %760, %838, %cst_642 {dimension_numbers = #tpu.dot_dimension_numbers<[1], [0], [0], [1], [0, 0, 1, 1], [], []>} : vector<8x32xf32>, vector<32x32xf32>, vector<8x32xf32> -> vector<8x32xf32>
    %840 = arith.addf %836, %839 : vector<8x32xf32>
    %841 = arith.addf %840, %26 : vector<8x32xf32>
    %c1_643 = arith.constant 1 : index
    %c2_644 = arith.constant 2 : index
    %c0_645 = arith.constant 0 : index
    %c0_646 = arith.constant 0 : index
    %842 = vector.load %arg2[%c1_643, %c2_644, %c0_645, %c0_646] : memref<2x4x16x32xf32, #tpu.memory_space<vmem>>, vector<1x1x16x32xf32>
    %843 = vector.shape_cast %842 : vector<1x1x16x32xf32> to vector<16x32xf32>
    %cst_647 = arith.constant dense<0.000000e+00> : vector<8x32xf32>
    %844 = tpu.matmul %825, %843, %cst_647 {dimension_numbers = #tpu.dot_dimension_numbers<[1], [0], [0], [1], [0, 0, 1, 1], [], []>} : vector<8x16xf32>, vector<16x32xf32>, vector<8x32xf32> -> vector<8x32xf32>
    %c1_648 = arith.constant 1 : index
    %c2_649 = arith.constant 2 : index
    %c0_650 = arith.constant 0 : index
    %c0_651 = arith.constant 0 : index
    %845 = vector.load %arg3[%c1_648, %c2_649, %c0_650, %c0_651] : memref<2x4x32x32xf32, #tpu.memory_space<vmem>>, vector<1x1x32x32xf32>
    %846 = vector.shape_cast %845 : vector<1x1x32x32xf32> to vector<32x32xf32>
    %cst_652 = arith.constant dense<0.000000e+00> : vector<8x32xf32>
    %847 = tpu.matmul %760, %846, %cst_652 {dimension_numbers = #tpu.dot_dimension_numbers<[1], [0], [0], [1], [0, 0, 1, 1], [], []>} : vector<8x32xf32>, vector<32x32xf32>, vector<8x32xf32> -> vector<8x32xf32>
    %848 = arith.addf %844, %847 : vector<8x32xf32>
    %849 = arith.addf %848, %30 : vector<8x32xf32>
    %c1_653 = arith.constant 1 : index
    %c3_654 = arith.constant 3 : index
    %c0_655 = arith.constant 0 : index
    %c0_656 = arith.constant 0 : index
    %850 = vector.load %arg2[%c1_653, %c3_654, %c0_655, %c0_656] : memref<2x4x16x32xf32, #tpu.memory_space<vmem>>, vector<1x1x16x32xf32>
    %851 = vector.shape_cast %850 : vector<1x1x16x32xf32> to vector<16x32xf32>
    %cst_657 = arith.constant dense<0.000000e+00> : vector<8x32xf32>
    %852 = tpu.matmul %825, %851, %cst_657 {dimension_numbers = #tpu.dot_dimension_numbers<[1], [0], [0], [1], [0, 0, 1, 1], [], []>} : vector<8x16xf32>, vector<16x32xf32>, vector<8x32xf32> -> vector<8x32xf32>
    %c1_658 = arith.constant 1 : index
    %c3_659 = arith.constant 3 : index
    %c0_660 = arith.constant 0 : index
    %c0_661 = arith.constant 0 : index
    %853 = vector.load %arg3[%c1_658, %c3_659, %c0_660, %c0_661] : memref<2x4x32x32xf32, #tpu.memory_space<vmem>>, vector<1x1x32x32xf32>
    %854 = vector.shape_cast %853 : vector<1x1x32x32xf32> to vector<32x32xf32>
    %cst_662 = arith.constant dense<0.000000e+00> : vector<8x32xf32>
    %855 = tpu.matmul %760, %854, %cst_662 {dimension_numbers = #tpu.dot_dimension_numbers<[1], [0], [0], [1], [0, 0, 1, 1], [], []>} : vector<8x32xf32>, vector<32x32xf32>, vector<8x32xf32> -> vector<8x32xf32>
    %856 = arith.addf %852, %855 : vector<8x32xf32>
    %857 = arith.addf %856, %34 : vector<8x32xf32>
    %858 = arith.negf %833 : vector<8x32xf32>
    %859 = math.exp %858 : vector<8x32xf32>
    %cst_663 = arith.constant 1.000000e+00 : f32
    %860 = vector.broadcast %cst_663 : f32 to vector<8x32xf32>
    %861 = arith.addf %860, %859 : vector<8x32xf32>
    %862 = arith.divf %860, %861 : vector<8x32xf32>
    %863 = arith.negf %841 : vector<8x32xf32>
    %864 = math.exp %863 : vector<8x32xf32>
    %cst_664 = arith.constant 1.000000e+00 : f32
    %865 = vector.broadcast %cst_664 : f32 to vector<8x32xf32>
    %866 = arith.addf %865, %864 : vector<8x32xf32>
    %867 = arith.divf %865, %866 : vector<8x32xf32>
    %868 = math.tanh %849 : vector<8x32xf32>
    %869 = arith.negf %857 : vector<8x32xf32>
    %870 = math.exp %869 : vector<8x32xf32>
    %cst_665 = arith.constant 1.000000e+00 : f32
    %871 = vector.broadcast %cst_665 : f32 to vector<8x32xf32>
    %872 = arith.addf %871, %870 : vector<8x32xf32>
    %873 = arith.divf %871, %872 : vector<8x32xf32>
    %874 = arith.mulf %867, %761 : vector<8x32xf32>
    %875 = arith.mulf %862, %868 : vector<8x32xf32>
    %876 = arith.addf %874, %875 : vector<8x32xf32>
    %877 = math.tanh %876 : vector<8x32xf32>
    %878 = arith.mulf %873, %877 : vector<8x32xf32>
    %879 = vector.broadcast %822 : i32 to vector<8x32xi32>
    %880 = arith.cmpi slt, %879, %2 : vector<8x32xi32>
    %881 = arith.select %880, %878, %760 : vector<8x32xi1>, vector<8x32xf32>
    %882 = arith.select %880, %876, %761 : vector<8x32xi1>, vector<8x32xf32>
    %c7_i32_666 = arith.constant 7 : i32
    %883 = arith.index_cast %c7_i32_666 : i32 to index
    %c0_667 = arith.constant 0 : index
    %c0_668 = arith.constant 0 : index
    %884 = vector.load %arg0[%883, %c0_667, %c0_668] : memref<8x8x16xf32, #tpu.memory_space<vmem>>, vector<1x8x16xf32>
    %885 = vector.shape_cast %884 : vector<1x8x16xf32> to vector<8x16xf32>
    %c0_669 = arith.constant 0 : index
    %c0_670 = arith.constant 0 : index
    %c0_671 = arith.constant 0 : index
    %c0_672 = arith.constant 0 : index
    %886 = vector.load %arg2[%c0_669, %c0_670, %c0_671, %c0_672] : memref<2x4x16x32xf32, #tpu.memory_space<vmem>>, vector<1x1x16x32xf32>
    %887 = vector.shape_cast %886 : vector<1x1x16x32xf32> to vector<16x32xf32>
    %cst_673 = arith.constant dense<0.000000e+00> : vector<8x32xf32>
    %888 = tpu.matmul %885, %887, %cst_673 {dimension_numbers = #tpu.dot_dimension_numbers<[1], [0], [0], [1], [0, 0, 1, 1], [], []>} : vector<8x16xf32>, vector<16x32xf32>, vector<8x32xf32> -> vector<8x32xf32>
    %c0_674 = arith.constant 0 : index
    %c0_675 = arith.constant 0 : index
    %c0_676 = arith.constant 0 : index
    %c0_677 = arith.constant 0 : index
    %889 = vector.load %arg3[%c0_674, %c0_675, %c0_676, %c0_677] : memref<2x4x32x32xf32, #tpu.memory_space<vmem>>, vector<1x1x32x32xf32>
    %890 = vector.shape_cast %889 : vector<1x1x32x32xf32> to vector<32x32xf32>
    %cst_678 = arith.constant dense<0.000000e+00> : vector<8x32xf32>
    %891 = tpu.matmul %820, %890, %cst_678 {dimension_numbers = #tpu.dot_dimension_numbers<[1], [0], [0], [1], [0, 0, 1, 1], [], []>} : vector<8x32xf32>, vector<32x32xf32>, vector<8x32xf32> -> vector<8x32xf32>
    %892 = arith.addf %888, %891 : vector<8x32xf32>
    %893 = arith.addf %892, %6 : vector<8x32xf32>
    %c0_679 = arith.constant 0 : index
    %c1_680 = arith.constant 1 : index
    %c0_681 = arith.constant 0 : index
    %c0_682 = arith.constant 0 : index
    %894 = vector.load %arg2[%c0_679, %c1_680, %c0_681, %c0_682] : memref<2x4x16x32xf32, #tpu.memory_space<vmem>>, vector<1x1x16x32xf32>
    %895 = vector.shape_cast %894 : vector<1x1x16x32xf32> to vector<16x32xf32>
    %cst_683 = arith.constant dense<0.000000e+00> : vector<8x32xf32>
    %896 = tpu.matmul %885, %895, %cst_683 {dimension_numbers = #tpu.dot_dimension_numbers<[1], [0], [0], [1], [0, 0, 1, 1], [], []>} : vector<8x16xf32>, vector<16x32xf32>, vector<8x32xf32> -> vector<8x32xf32>
    %c0_684 = arith.constant 0 : index
    %c1_685 = arith.constant 1 : index
    %c0_686 = arith.constant 0 : index
    %c0_687 = arith.constant 0 : index
    %897 = vector.load %arg3[%c0_684, %c1_685, %c0_686, %c0_687] : memref<2x4x32x32xf32, #tpu.memory_space<vmem>>, vector<1x1x32x32xf32>
    %898 = vector.shape_cast %897 : vector<1x1x32x32xf32> to vector<32x32xf32>
    %cst_688 = arith.constant dense<0.000000e+00> : vector<8x32xf32>
    %899 = tpu.matmul %820, %898, %cst_688 {dimension_numbers = #tpu.dot_dimension_numbers<[1], [0], [0], [1], [0, 0, 1, 1], [], []>} : vector<8x32xf32>, vector<32x32xf32>, vector<8x32xf32> -> vector<8x32xf32>
    %900 = arith.addf %896, %899 : vector<8x32xf32>
    %901 = arith.addf %900, %10 : vector<8x32xf32>
    %c0_689 = arith.constant 0 : index
    %c2_690 = arith.constant 2 : index
    %c0_691 = arith.constant 0 : index
    %c0_692 = arith.constant 0 : index
    %902 = vector.load %arg2[%c0_689, %c2_690, %c0_691, %c0_692] : memref<2x4x16x32xf32, #tpu.memory_space<vmem>>, vector<1x1x16x32xf32>
    %903 = vector.shape_cast %902 : vector<1x1x16x32xf32> to vector<16x32xf32>
    %cst_693 = arith.constant dense<0.000000e+00> : vector<8x32xf32>
    %904 = tpu.matmul %885, %903, %cst_693 {dimension_numbers = #tpu.dot_dimension_numbers<[1], [0], [0], [1], [0, 0, 1, 1], [], []>} : vector<8x16xf32>, vector<16x32xf32>, vector<8x32xf32> -> vector<8x32xf32>
    %c0_694 = arith.constant 0 : index
    %c2_695 = arith.constant 2 : index
    %c0_696 = arith.constant 0 : index
    %c0_697 = arith.constant 0 : index
    %905 = vector.load %arg3[%c0_694, %c2_695, %c0_696, %c0_697] : memref<2x4x32x32xf32, #tpu.memory_space<vmem>>, vector<1x1x32x32xf32>
    %906 = vector.shape_cast %905 : vector<1x1x32x32xf32> to vector<32x32xf32>
    %cst_698 = arith.constant dense<0.000000e+00> : vector<8x32xf32>
    %907 = tpu.matmul %820, %906, %cst_698 {dimension_numbers = #tpu.dot_dimension_numbers<[1], [0], [0], [1], [0, 0, 1, 1], [], []>} : vector<8x32xf32>, vector<32x32xf32>, vector<8x32xf32> -> vector<8x32xf32>
    %908 = arith.addf %904, %907 : vector<8x32xf32>
    %909 = arith.addf %908, %14 : vector<8x32xf32>
    %c0_699 = arith.constant 0 : index
    %c3_700 = arith.constant 3 : index
    %c0_701 = arith.constant 0 : index
    %c0_702 = arith.constant 0 : index
    %910 = vector.load %arg2[%c0_699, %c3_700, %c0_701, %c0_702] : memref<2x4x16x32xf32, #tpu.memory_space<vmem>>, vector<1x1x16x32xf32>
    %911 = vector.shape_cast %910 : vector<1x1x16x32xf32> to vector<16x32xf32>
    %cst_703 = arith.constant dense<0.000000e+00> : vector<8x32xf32>
    %912 = tpu.matmul %885, %911, %cst_703 {dimension_numbers = #tpu.dot_dimension_numbers<[1], [0], [0], [1], [0, 0, 1, 1], [], []>} : vector<8x16xf32>, vector<16x32xf32>, vector<8x32xf32> -> vector<8x32xf32>
    %c0_704 = arith.constant 0 : index
    %c3_705 = arith.constant 3 : index
    %c0_706 = arith.constant 0 : index
    %c0_707 = arith.constant 0 : index
    %913 = vector.load %arg3[%c0_704, %c3_705, %c0_706, %c0_707] : memref<2x4x32x32xf32, #tpu.memory_space<vmem>>, vector<1x1x32x32xf32>
    %914 = vector.shape_cast %913 : vector<1x1x32x32xf32> to vector<32x32xf32>
    %cst_708 = arith.constant dense<0.000000e+00> : vector<8x32xf32>
    %915 = tpu.matmul %820, %914, %cst_708 {dimension_numbers = #tpu.dot_dimension_numbers<[1], [0], [0], [1], [0, 0, 1, 1], [], []>} : vector<8x32xf32>, vector<32x32xf32>, vector<8x32xf32> -> vector<8x32xf32>
    %916 = arith.addf %912, %915 : vector<8x32xf32>
    %917 = arith.addf %916, %18 : vector<8x32xf32>
    %918 = arith.negf %893 : vector<8x32xf32>
    %919 = math.exp %918 : vector<8x32xf32>
    %cst_709 = arith.constant 1.000000e+00 : f32
    %920 = vector.broadcast %cst_709 : f32 to vector<8x32xf32>
    %921 = arith.addf %920, %919 : vector<8x32xf32>
    %922 = arith.divf %920, %921 : vector<8x32xf32>
    %923 = arith.negf %901 : vector<8x32xf32>
    %924 = math.exp %923 : vector<8x32xf32>
    %cst_710 = arith.constant 1.000000e+00 : f32
    %925 = vector.broadcast %cst_710 : f32 to vector<8x32xf32>
    %926 = arith.addf %925, %924 : vector<8x32xf32>
    %927 = arith.divf %925, %926 : vector<8x32xf32>
    %928 = math.tanh %909 : vector<8x32xf32>
    %929 = arith.negf %917 : vector<8x32xf32>
    %930 = math.exp %929 : vector<8x32xf32>
    %cst_711 = arith.constant 1.000000e+00 : f32
    %931 = vector.broadcast %cst_711 : f32 to vector<8x32xf32>
    %932 = arith.addf %931, %930 : vector<8x32xf32>
    %933 = arith.divf %931, %932 : vector<8x32xf32>
    %934 = arith.mulf %927, %821 : vector<8x32xf32>
    %935 = arith.mulf %922, %928 : vector<8x32xf32>
    %936 = arith.addf %934, %935 : vector<8x32xf32>
    %937 = math.tanh %936 : vector<8x32xf32>
    %938 = arith.mulf %933, %937 : vector<8x32xf32>
    %939 = vector.broadcast %c7_i32_666 : i32 to vector<8x32xi32>
    %940 = arith.cmpi slt, %939, %2 : vector<8x32xi32>
    %941 = arith.select %940, %938, %820 : vector<8x32xi1>, vector<8x32xf32>
    %942 = arith.select %940, %936, %821 : vector<8x32xi1>, vector<8x32xf32>
    %c7_i32_712 = arith.constant 7 : i32
    %943 = arith.subi %c7_i32_712, %c7_i32_666 : i32
    %944 = arith.index_cast %943 : i32 to index
    %c0_713 = arith.constant 0 : index
    %c0_714 = arith.constant 0 : index
    %945 = vector.load %arg0[%944, %c0_713, %c0_714] : memref<8x8x16xf32, #tpu.memory_space<vmem>>, vector<1x8x16xf32>
    %946 = vector.shape_cast %945 : vector<1x8x16xf32> to vector<8x16xf32>
    %c1_715 = arith.constant 1 : index
    %c0_716 = arith.constant 0 : index
    %c0_717 = arith.constant 0 : index
    %c0_718 = arith.constant 0 : index
    %947 = vector.load %arg2[%c1_715, %c0_716, %c0_717, %c0_718] : memref<2x4x16x32xf32, #tpu.memory_space<vmem>>, vector<1x1x16x32xf32>
    %948 = vector.shape_cast %947 : vector<1x1x16x32xf32> to vector<16x32xf32>
    %cst_719 = arith.constant dense<0.000000e+00> : vector<8x32xf32>
    %949 = tpu.matmul %946, %948, %cst_719 {dimension_numbers = #tpu.dot_dimension_numbers<[1], [0], [0], [1], [0, 0, 1, 1], [], []>} : vector<8x16xf32>, vector<16x32xf32>, vector<8x32xf32> -> vector<8x32xf32>
    %c1_720 = arith.constant 1 : index
    %c0_721 = arith.constant 0 : index
    %c0_722 = arith.constant 0 : index
    %c0_723 = arith.constant 0 : index
    %950 = vector.load %arg3[%c1_720, %c0_721, %c0_722, %c0_723] : memref<2x4x32x32xf32, #tpu.memory_space<vmem>>, vector<1x1x32x32xf32>
    %951 = vector.shape_cast %950 : vector<1x1x32x32xf32> to vector<32x32xf32>
    %cst_724 = arith.constant dense<0.000000e+00> : vector<8x32xf32>
    %952 = tpu.matmul %881, %951, %cst_724 {dimension_numbers = #tpu.dot_dimension_numbers<[1], [0], [0], [1], [0, 0, 1, 1], [], []>} : vector<8x32xf32>, vector<32x32xf32>, vector<8x32xf32> -> vector<8x32xf32>
    %953 = arith.addf %949, %952 : vector<8x32xf32>
    %954 = arith.addf %953, %22 : vector<8x32xf32>
    %c1_725 = arith.constant 1 : index
    %c1_726 = arith.constant 1 : index
    %c0_727 = arith.constant 0 : index
    %c0_728 = arith.constant 0 : index
    %955 = vector.load %arg2[%c1_725, %c1_726, %c0_727, %c0_728] : memref<2x4x16x32xf32, #tpu.memory_space<vmem>>, vector<1x1x16x32xf32>
    %956 = vector.shape_cast %955 : vector<1x1x16x32xf32> to vector<16x32xf32>
    %cst_729 = arith.constant dense<0.000000e+00> : vector<8x32xf32>
    %957 = tpu.matmul %946, %956, %cst_729 {dimension_numbers = #tpu.dot_dimension_numbers<[1], [0], [0], [1], [0, 0, 1, 1], [], []>} : vector<8x16xf32>, vector<16x32xf32>, vector<8x32xf32> -> vector<8x32xf32>
    %c1_730 = arith.constant 1 : index
    %c1_731 = arith.constant 1 : index
    %c0_732 = arith.constant 0 : index
    %c0_733 = arith.constant 0 : index
    %958 = vector.load %arg3[%c1_730, %c1_731, %c0_732, %c0_733] : memref<2x4x32x32xf32, #tpu.memory_space<vmem>>, vector<1x1x32x32xf32>
    %959 = vector.shape_cast %958 : vector<1x1x32x32xf32> to vector<32x32xf32>
    %cst_734 = arith.constant dense<0.000000e+00> : vector<8x32xf32>
    %960 = tpu.matmul %881, %959, %cst_734 {dimension_numbers = #tpu.dot_dimension_numbers<[1], [0], [0], [1], [0, 0, 1, 1], [], []>} : vector<8x32xf32>, vector<32x32xf32>, vector<8x32xf32> -> vector<8x32xf32>
    %961 = arith.addf %957, %960 : vector<8x32xf32>
    %962 = arith.addf %961, %26 : vector<8x32xf32>
    %c1_735 = arith.constant 1 : index
    %c2_736 = arith.constant 2 : index
    %c0_737 = arith.constant 0 : index
    %c0_738 = arith.constant 0 : index
    %963 = vector.load %arg2[%c1_735, %c2_736, %c0_737, %c0_738] : memref<2x4x16x32xf32, #tpu.memory_space<vmem>>, vector<1x1x16x32xf32>
    %964 = vector.shape_cast %963 : vector<1x1x16x32xf32> to vector<16x32xf32>
    %cst_739 = arith.constant dense<0.000000e+00> : vector<8x32xf32>
    %965 = tpu.matmul %946, %964, %cst_739 {dimension_numbers = #tpu.dot_dimension_numbers<[1], [0], [0], [1], [0, 0, 1, 1], [], []>} : vector<8x16xf32>, vector<16x32xf32>, vector<8x32xf32> -> vector<8x32xf32>
    %c1_740 = arith.constant 1 : index
    %c2_741 = arith.constant 2 : index
    %c0_742 = arith.constant 0 : index
    %c0_743 = arith.constant 0 : index
    %966 = vector.load %arg3[%c1_740, %c2_741, %c0_742, %c0_743] : memref<2x4x32x32xf32, #tpu.memory_space<vmem>>, vector<1x1x32x32xf32>
    %967 = vector.shape_cast %966 : vector<1x1x32x32xf32> to vector<32x32xf32>
    %cst_744 = arith.constant dense<0.000000e+00> : vector<8x32xf32>
    %968 = tpu.matmul %881, %967, %cst_744 {dimension_numbers = #tpu.dot_dimension_numbers<[1], [0], [0], [1], [0, 0, 1, 1], [], []>} : vector<8x32xf32>, vector<32x32xf32>, vector<8x32xf32> -> vector<8x32xf32>
    %969 = arith.addf %965, %968 : vector<8x32xf32>
    %970 = arith.addf %969, %30 : vector<8x32xf32>
    %c1_745 = arith.constant 1 : index
    %c3_746 = arith.constant 3 : index
    %c0_747 = arith.constant 0 : index
    %c0_748 = arith.constant 0 : index
    %971 = vector.load %arg2[%c1_745, %c3_746, %c0_747, %c0_748] : memref<2x4x16x32xf32, #tpu.memory_space<vmem>>, vector<1x1x16x32xf32>
    %972 = vector.shape_cast %971 : vector<1x1x16x32xf32> to vector<16x32xf32>
    %cst_749 = arith.constant dense<0.000000e+00> : vector<8x32xf32>
    %973 = tpu.matmul %946, %972, %cst_749 {dimension_numbers = #tpu.dot_dimension_numbers<[1], [0], [0], [1], [0, 0, 1, 1], [], []>} : vector<8x16xf32>, vector<16x32xf32>, vector<8x32xf32> -> vector<8x32xf32>
    %c1_750 = arith.constant 1 : index
    %c3_751 = arith.constant 3 : index
    %c0_752 = arith.constant 0 : index
    %c0_753 = arith.constant 0 : index
    %974 = vector.load %arg3[%c1_750, %c3_751, %c0_752, %c0_753] : memref<2x4x32x32xf32, #tpu.memory_space<vmem>>, vector<1x1x32x32xf32>
    %975 = vector.shape_cast %974 : vector<1x1x32x32xf32> to vector<32x32xf32>
    %cst_754 = arith.constant dense<0.000000e+00> : vector<8x32xf32>
    %976 = tpu.matmul %881, %975, %cst_754 {dimension_numbers = #tpu.dot_dimension_numbers<[1], [0], [0], [1], [0, 0, 1, 1], [], []>} : vector<8x32xf32>, vector<32x32xf32>, vector<8x32xf32> -> vector<8x32xf32>
    %977 = arith.addf %973, %976 : vector<8x32xf32>
    %978 = arith.addf %977, %34 : vector<8x32xf32>
    %979 = arith.negf %954 : vector<8x32xf32>
    %980 = math.exp %979 : vector<8x32xf32>
    %cst_755 = arith.constant 1.000000e+00 : f32
    %981 = vector.broadcast %cst_755 : f32 to vector<8x32xf32>
    %982 = arith.addf %981, %980 : vector<8x32xf32>
    %983 = arith.divf %981, %982 : vector<8x32xf32>
    %984 = arith.negf %962 : vector<8x32xf32>
    %985 = math.exp %984 : vector<8x32xf32>
    %cst_756 = arith.constant 1.000000e+00 : f32
    %986 = vector.broadcast %cst_756 : f32 to vector<8x32xf32>
    %987 = arith.addf %986, %985 : vector<8x32xf32>
    %988 = arith.divf %986, %987 : vector<8x32xf32>
    %989 = math.tanh %970 : vector<8x32xf32>
    %990 = arith.negf %978 : vector<8x32xf32>
    %991 = math.exp %990 : vector<8x32xf32>
    %cst_757 = arith.constant 1.000000e+00 : f32
    %992 = vector.broadcast %cst_757 : f32 to vector<8x32xf32>
    %993 = arith.addf %992, %991 : vector<8x32xf32>
    %994 = arith.divf %992, %993 : vector<8x32xf32>
    %995 = arith.mulf %988, %882 : vector<8x32xf32>
    %996 = arith.mulf %983, %989 : vector<8x32xf32>
    %997 = arith.addf %995, %996 : vector<8x32xf32>
    %998 = math.tanh %997 : vector<8x32xf32>
    %999 = arith.mulf %994, %998 : vector<8x32xf32>
    %1000 = vector.broadcast %943 : i32 to vector<8x32xi32>
    %1001 = arith.cmpi slt, %1000, %2 : vector<8x32xi32>
    %1002 = arith.select %1001, %999, %881 : vector<8x32xi1>, vector<8x32xf32>
    %1003 = arith.select %1001, %997, %882 : vector<8x32xi1>, vector<8x32xf32>
    %c8_i32 = arith.constant 8 : i32
    %c0_758 = arith.constant 0 : index
    %c0_759 = arith.constant 0 : index
    %1004 = vector.load %arg5[%c0_758, %c0_759] : memref<8x32xf32, #tpu.memory_space<vmem>>, vector<8x32xf32>
    tpu.vector_store %arg5[%c0_758, %c0_759], %941 {strides = array<i32>} : memref<8x32xf32, #tpu.memory_space<vmem>>, vector<8x32xf32>,
    %c0_760 = arith.constant 0 : index
    %c0_761 = arith.constant 0 : index
    %1005 = vector.load %arg6[%c0_760, %c0_761] : memref<8x32xf32, #tpu.memory_space<vmem>>, vector<8x32xf32>
    tpu.vector_store %arg6[%c0_760, %c0_761], %1002 {strides = array<i32>} : memref<8x32xf32, #tpu.memory_space<vmem>>, vector<8x32xf32>,
    return
  }
}

</mosaic_0001>

<bundles_post_ra>
// kernel: tpu_custom_call.1
= control target key start
LH: loop header
LB: loop body
LE: loop exit
PB: predicated region body
PF: predicated region fallthrough
CT: control target
= control target key end

     0   :  { %12 = vsyncpa [#allocation3], 0  ;;  %s6224_s0 = inlined_call_operand.hbm [shape: f32[8,8,16], index: 0, kind: input, shape index: {}]   ;;  %s6225_s1 = inlined_call_operand.vmem [shape: s32[8,1], index: 1, kind: input, shape index: {}]   ;;  %s6226_s2 = inlined_call_operand.hbm [shape: f32[2,4,16,32], index: 2, kind: input, shape index: {}]   ;;  %s6227_s3 = inlined_call_operand.hbm [shape: f32[2,4,32,32], index: 3, kind: input, shape index: {}]   ;;  %s6228_s4 = inlined_call_operand.vmem [shape: f32[2,4,1,32], index: 4, kind: input, shape index: {}]   ;;  %s6229_s5 = inlined_call_operand.hbm [shape: f32[8,32], index: 5, kind: output, shape index: {0}]   ;;  %s6230_s6 = inlined_call_operand.hbm [shape: f32[8,32], index: 6, kind: output, shape index: {1}]  }
   0x1   :  { %13 = vsyncpa [#allocation6], 0 }
   0x2   :  { %14 = vsyncpa [#allocation4], 0 }
   0x3   :  { %15 = vsyncpa [#allocation10], 0  ;;  %s35_s23 = sshll.u32 %s6226_s2, 4  ;;  %s4645_s24 = smov [#allocation5]   ;;  %s36_s23 = int_to_ptr.hbm [resolvable:$true] %s35_s23 }
   0x4   :  { %s37_s25 = sshll.u32 %s4645_s24, 4  ;;  %s20_s28 = sshll.u32 %s6224_s0, 4  ;;  %s38_s25 = int_to_ptr.vmem [resolvable:$true] %s37_s25  ;;  %s21_s28 = int_to_ptr.hbm [resolvable:$true] %s20_s28 }
   0x5   :  { %s4646_s29 = smov 128   ;;  %s4647_s30 = smov 8  }
   0x6   :  { %43 = dma.hbm_to_vmem [thread:$0]  %s36_s23, 2048, %s38_s25, [#allocation6], %s4646_s29, %s4646_s29, %s4647_s30  }
   0x7   :  { %s4648_s7 = smov [#allocation2]   ;;  %s48_s11 = sshll.u32 %s6227_s3, 4  ;;  %s49_s11 = int_to_ptr.hbm [resolvable:$true] %s48_s11 }
   0x8   :  { %s22_s8 = sshll.u32 %s4648_s7, 4  ;;  %s4649_s2 = smov [#allocation7]   ;;  %s23_s8 = int_to_ptr.vmem [resolvable:$true] %s22_s8 }
   0x9   :  { %28 = dma.hbm_to_vmem [thread:$0]  %s21_s28, 1024, %s23_s8, [#allocation3], %s4646_s29, %s4646_s29, %s4647_s30  }
   0xa   :  { %s50_s12 = sshll.u32 %s4649_s2, 4  ;;  %s51_s12 = int_to_ptr.vmem [resolvable:$true] %s50_s12 }
   0xb   :  { %56 = dma.hbm_to_vmem [thread:$0]  %s49_s11, 4096, %s51_s12, [#allocation6], %s4646_s29, %s4646_s29, %s4647_s30  }
   0xc   :  { %4637 = dma.done.wait [#allocation3], 1024  }
   0xd   :  { %4638 = vsyncadd [#allocation3], 4294966272 }
   0xe   :  { %4639 = dma.done.wait [#allocation6], 6144  }
   0xf   :  { %4640 = vsyncadd [#allocation6], 4294961152  ;;  %v4698_v0 = vld [vmem:[#allocation7 + $0x18] sm:$0xff]  ;;  %v4706_v3 = vld [vmem:[#allocation7 + $0x10] sm:$0xff]  ;;  %vm145_vm0 = vcmask 130048   ;;  %v4650_v16 = vmov 0.0  }
  0x10   :  { %v4700_v1 = vld [vmem:[#allocation7 + $0x38] sm:$0xff]  ;;  %137 = vmatpush.msra.mxu0 %v4698_v0  ;;  %v4708_v4 = vld [vmem:[#allocation7 + $0x30] sm:$0xff]  ;;  %v114_v6 = vld [vmem:[#allocation2] sm:$0xff]  ;;  %v4651_v51 = vmov 0   ;;  %s3941_s11 = sshll.u32 %s6229_s5, 4  ;;  %s4653_s5 = smov [#allocation9]   ;;  %s3942_s11 = int_to_ptr.hbm [resolvable:$true] %s3941_s11 }
  0x11   :  { %v4702_v2 = vld [vmem:[#allocation5 + $0x18] sm:$0xff]  ;;  %190 = vmatpush.msra.mxu2 %v4700_v1  ;;  %v4710_v5 = vld [vmem:[#allocation5 + $0x10] sm:$0xff]  ;;  %v4713_v7 = vld [vmem:[#allocation7 + $0x8] sm:$0xff]  ;;  %4152 = vset.pattern.permute.xlu0 %v4651_v51  ;;  %s3950_s2 = sshll.u32 %s4653_s5, 4  ;;  %s3952_s3 = sshll.u32 %s6230_s6, 4  ;;  %s3951_s2 = int_to_ptr.vmem [resolvable:$true] %s3950_s2  ;;  %s3953_s3 = int_to_ptr.hbm [resolvable:$true] %s3952_s3 }
  0x12   :  { %6263 = vst [vmem:[#allocation15_spill] sm:$0xff] %v4702_v2  ;;  %212 = vmatpush.msra.mxu3 %v4702_v2  ;;  %v4715_v8 = vld [vmem:[#allocation5 + $0x8] sm:$0xff]  ;;  %138 = vmatpush.msra.mxu0 %v4706_v3  ;;  %v4721_v10 = vld [vmem:[#allocation5] sm:$0xff]  ;;  %v4737_v14 = vld [vmem:[#allocation5 + $0x38] sm:$0xff] }
  0x13   :  { %6264 = vst [vmem:[#allocation16_spill] sm:$0xff] %v4715_v8  ;;  %191 = vmatpush.msra.mxu2 %v4708_v4  ;;  %v4719_v9 = vld [vmem:[#allocation7 + $0x28] sm:$0xff]  ;;  %163 = vmatpush.msra.mxu1 %v4715_v8  ;;  %v4725_v11 = vld [vmem:[#allocation7] sm:$0xff]  ;;  %v4739_v15 = vld [vmem:[#allocation7 + $0x58] sm:$0xff] }
  0x14   :  { %6265 = vst [vmem:[#allocation17_spill] sm:$0xff] %v4721_v10  ;;  %213 = vmatpush.msra.mxu3 %v4710_v5  ;;  %139 = vmatpush.msra.mxu0 %v4713_v7  ;;  %v4729_v12 = vld [vmem:[#allocation7 + $0x20] sm:$0xff]  ;;  %v4733_v13 = vld [vmem:[#allocation5 + $0x28] sm:$0xff]  ;;  %v4745_v18 = vld [vmem:[#allocation7 + $0x78] sm:$0xff] }
  0x15   :  { %3976 = vmatmul.msk.f32.vlgmr.msra.gmra.mxu3 %vm145_vm0, %v114_v6  ;;  %192 = vmatpush.msra.mxu2 %v4719_v9  ;;  %v4743_v17 = vld [vmem:[#allocation5 + $0x20] sm:$0xff]  ;;  %v4749_v19 = vld [vmem:[#allocation5 + $0x30] sm:$0xff]  ;;  %v4759_v22 = vld [vmem:[#allocation7 + $0x48] sm:$0xff] }
  0x16   :  { %164 = vmatpush.msra.mxu1 %v4721_v10  ;;  %140 = vmatpush.msra.mxu0 %v4725_v11  ;;  %6266 = vst [vmem:[#allocation18_spill] sm:$0xff] %v4743_v17  ;;  %v4751_v20 = vld [vmem:[#allocation7 + $0x50] sm:$0xff]  ;;  %v4761_v23 = vld [vmem:[#allocation5 + $0x48] sm:$0xff]  ;;  %v4765_v24 = vld [vmem:[#allocation5 + $0x58] sm:$0xff] }
  0x17   :  { %3975 = vmatmul.msk.f32.vlgmr.msra.gmra.mxu1 %vm145_vm0, %v114_v6  ;;  %193 = vmatpush.msra.mxu2 %v4729_v12  ;;  %6267 = vst [vmem:[#allocation19_spill] sm:$0xff] %v4749_v19  ;;  %v4755_v21 = vld [vmem:[#allocation7 + $0x70] sm:$0xff]  ;;  %v4767_v25 = vld [vmem:[#allocation7 + $0x68] sm:$0xff]  ;;  %v4771_v26 = vld [vmem:[#allocation7 + $0x40] sm:$0xff] }
  0x18   :  { %141 = vmatmul.f32.vlgmr.msra.gmra.mxu0 %v4650_v16  ;;  %194 = vmatmul.f32.vlgmr.msra.gmra.mxu2 %v4650_v16  ;;  %6268 = vst [vmem:[#allocation20_spill] sm:$0xff] %v4761_v23  ;;  %v4773_v27 = vld [vmem:[#allocation5 + $0x40] sm:$0xff]  ;;  %v4779_v28 = vld [vmem:[#allocation7 + $0x98] sm:$0xff]  ;;  %v4783_v30 = vld [vmem:[#allocation5 + $0x50] sm:$0xff] }
  0x19   :  { %261 = vmatpush.msrb.mxu3 %v4733_v13  ;;  %310 = vmatpush.msrb.mxu2 %v4737_v14  ;;  %6269 = vst [vmem:[#allocation21_spill] sm:$0xff] %v4765_v24  ;;  %v4781_v29 = vld [vmem:[#allocation7 + $0x60] sm:$0xff]  ;;  %v384_v31 = vld [vmem:[#allocation2 + $0x38] sm:$0xff]  ;;  %v4787_v32 = vld [vmem:[#allocation7 + $0x90] sm:$0xff] }
  0x1a   :  { %239 = vmatpush.msrb.mxu1 %v4739_v15  ;;  %288 = vmatpush.msrb.mxu0 %v4745_v18  ;;  %6270 = vst [vmem:[#allocation22_spill] sm:$0xff] %v4773_v27  ;;  %v4789_v33 = vld [vmem:[#allocation7 + $0xb8] sm:$0xff]  ;;  %v4795_v35 = vld [vmem:[#allocation7 + $0x88] sm:$0xff]  ;;  %v4801_v36 = vld [vmem:[#allocation7 + $0xb0] sm:$0xff] }
  0x1b   :  { %262 = vmatpush.msrb.mxu3 %v4743_v17  ;;  %311 = vmatpush.msrb.mxu2 %v4749_v19  ;;  %6271 = vst [vmem:[#allocation23_spill] sm:$0xff] %v4781_v29  ;;  %v4791_v34 = vld [vmem:[#allocation5 + $0x78] sm:$0xff]  ;;  %v4805_v37 = vld [vmem:[#allocation5 + $0x70] sm:$0xff]  ;;  %v4807_v38 = vld [vmem:[#allocation5 + $0x68] sm:$0xff] }
  0x1c   :  { %240 = vmatpush.msrb.mxu1 %v4751_v20  ;;  %289 = vmatpush.msrb.mxu0 %v4755_v21  ;;  %6272 = vst [vmem:[#allocation24_spill] sm:$0xff] %v4783_v30  ;;  %v4810_v39 = vld [vmem:[#allocation7 + $0x80] sm:$0xff]  ;;  %v4812_v40 = vld [vmem:[#allocation7 + $0xa8] sm:$0xff]  ;;  %v4821_v42 = vld [vmem:[#allocation7 + $0xd8] sm:$0xff] }
  0x1d   :  { %3977 = vmatmul.msk.f32.vlgmr.msrb.gmra.mxu3 %vm145_vm0, %v114_v6  ;;  %479 = vmatpush.msra.mxu2 %v4765_v24  ;;  %6273 = vst [vmem:[#allocation25_spill] sm:$0xff] %v4791_v34  ;;  %v4817_v41 = vld [vmem:[#allocation7 + $0xa0] sm:$0xff]  ;;  %v4829_v44 = vld [vmem:[#allocation7 + $0xf8] sm:$0xff]  ;;  %v4831_v45 = vld [vmem:[#allocation7 + $0xd0] sm:$0xff] }
  0x1e   :  { %241 = vmatpush.msrb.mxu1 %v4759_v22  ;;  %430 = vmatpush.msra.mxu3 %v4761_v23  ;;  %6274 = vst [vmem:[#allocation26_spill] sm:$0xff] %v4805_v37  ;;  %v4825_v43 = vld [vmem:[#allocation5 + $0x60] sm:$0xff]  ;;  %v4836_v46 = vld [vmem:[#allocation7 + $0xf0] sm:$0xff]  ;;  %v4839_v47 = vld [vmem:[#allocation7 + $0xc8] sm:$0xff] }
  0x1f   :  { %290 = vmatpush.msrb.mxu0 %v4767_v25  ;;  %480 = vmatpush.msra.mxu2 %v4783_v30  ;;  %6275 = vst [vmem:[#allocation27_spill] sm:$0xff] %v4807_v38  ;;  %v71_v48 = vld [vmem:[%s6225_s1] sm:$0xff]  ;;  %v4846_v49 = vld [vmem:[#allocation7 + $0xe8] sm:$0xff] }
  0x20   :  { %242 = vmatpush.msrb.mxu1 %v4771_v26  ;;  %431 = vmatpush.msra.mxu3 %v4773_v27  ;;  %6276 = vst [vmem:[#allocation28_spill] sm:$0xff] %v4825_v43  ;;  %v4849_v50 = vld [vmem:[#allocation7 + $0xc0] sm:$0xff] }
  0x21   :  { %3978 = vmatmul.msk.f32.vlgmr.msrb.gmra.mxu2 %vm145_vm0, %v114_v6  ;;  %243 = vmatmul.f32.vlgmr.msrb.gmra.mxu1 %v4650_v16  ;;  %v4853_v52 = vld [vmem:[#allocation7 + $0xe0] sm:$0xff] }
  0x22   :  { %405 = vmatpush.msra.mxu1 %v4779_v28  ;;  %291 = vmatpush.msrb.mxu0 %v4781_v29  ;;  %v4888_v53 = vld [vmem:[%s6228_s4] ss:$0 sm:$0xff]  ;;  %v4894_v60 = vld [vmem:[%s6228_s4 + $0x1] ss:$0 sm:$0xff] }
  0x23   :  { %292 = vmatmul.f32.vlgmr.msrb.gmra.mxu0 %v4650_v16  ;;  %577 = vmatpush.msrb.mxu2 %v4791_v34  ;;  %6277 = vst [vmem:[#allocation29_spill] sm:$0xff] %v4888_v53 }
  0x24   :  { %406 = vmatpush.msra.mxu1 %v4787_v32  ;;  %457 = vmatpush.msra.mxu0 %v4789_v33  ;;  %6278 = vst [vmem:[#allocation30_spill] sm:$0xff] %v4894_v60 }
  0x25   :  { %3982 = vmatmul.msk.f32.vlgmr.msra.gmra.mxu3 %vm145_vm0, %v384_v31  ;;  %578 = vmatpush.msrb.mxu2 %v4805_v37 }
  0x26   :  { %407 = vmatpush.msra.mxu1 %v4795_v35  ;;  %458 = vmatpush.msra.mxu0 %v4801_v36 }
  0x27   :  { %528 = vmatpush.msrb.mxu3 %v4807_v38  ;;  %73 = vperm.xlu0 %4152, %v71_v48  }
  0x28   :  { %408 = vmatpush.msra.mxu1 %v4810_v39  ;;  %459 = vmatpush.msra.mxu0 %v4812_v40 }
  0x29   :  { %3983 = vmatmul.msk.f32.vlgmr.msra.gmra.mxu2 %vm145_vm0, %v384_v31  ;;  %409 = vmatmul.f32.vlgmr.msra.gmra.mxu1 %v4650_v16 }
  0x2a   :  { %460 = vmatpush.msra.mxu0 %v4817_v41  ;;  %506 = vmatpush.msrb.mxu1 %v4821_v42 }
  0x2b   :  { %461 = vmatmul.f32.vlgmr.msra.gmra.mxu0 %v4650_v16  ;;  %529 = vmatpush.msrb.mxu3 %v4825_v43 }
  0x2c   :  { %555 = vmatpush.msrb.mxu0 %v4829_v44  ;;  %507 = vmatpush.msrb.mxu1 %v4831_v45 }
  0x2d   :  { %3984 = vmatmul.msk.f32.vlgmr.msrb.gmra.mxu3 %vm145_vm0, %v384_v31  ;;  %733 = vmatpush.msra.mxu2 %v4702_v2 }
  0x2e   :  { %556 = vmatpush.msrb.mxu0 %v4836_v46  ;;  %508 = vmatpush.msrb.mxu1 %v4839_v47 }
  0x2f   :  { %692 = vmatpush.msra.mxu3 %v4715_v8  ;;  %734 = vmatpush.msra.mxu2 %v4710_v5 }
  0x30   :  { %557 = vmatpush.msrb.mxu0 %v4846_v49  ;;  %509 = vmatpush.msrb.mxu1 %v4849_v50 }
  0x31   :  { %3985 = vmatmul.msk.f32.vlgmr.msrb.gmra.mxu2 %vm145_vm0, %v384_v31  ;;  %510 = vmatmul.f32.vlgmr.msrb.gmra.mxu1 %v4650_v16 }
  0x32   :  { %558 = vmatpush.msrb.mxu0 %v4853_v52  ;;  %693 = vmatpush.msra.mxu3 %v4721_v10 }
  0x33   :  { %559 = vmatmul.f32.vlgmr.msrb.gmra.mxu0 %v4650_v16  ;;  %667 = vmatpush.msra.mxu1 %v4698_v0 }
  0x34   :  { %711 = vmatpush.msra.mxu0 %v4700_v1  ;;  %774 = vmatpush.msrb.mxu3 %v4733_v13 }
  0x35   :  { %668 = vmatpush.msra.mxu1 %v4706_v3  ;;  %815 = vmatpush.msrb.mxu2 %v4737_v14 }
  0x36   :  { %712 = vmatpush.msra.mxu0 %v4708_v4  ;;  %775 = vmatpush.msrb.mxu3 %v4743_v17 }
  0x37   :  { %669 = vmatpush.msra.mxu1 %v4713_v7  ;;  %816 = vmatpush.msrb.mxu2 %v4749_v19 }
  0x38   :  { %713 = vmatpush.msra.mxu0 %v4719_v9 }
  0x39   :  { %670 = vmatpush.msra.mxu1 %v4725_v11 }
  0x3a   :  { %714 = vmatpush.msra.mxu0 %v4729_v12 }
  0x3b   :  { %752 = vmatpush.msrb.mxu1 %v4739_v15 }
  0x3c   :  { %793 = vmatpush.msrb.mxu0 %v4745_v18 }
  0x3d   :  { %753 = vmatpush.msrb.mxu1 %v4751_v20 }
  0x3e   :  { %794 = vmatpush.msrb.mxu0 %v4755_v21 }
  0x3f   :  { %754 = vmatpush.msrb.mxu1 %v4759_v22 }
  0x40   :  { %795 = vmatpush.msrb.mxu0 %v4767_v25 }
  0x41   :  { %755 = vmatpush.msrb.mxu1 %v4771_v26 }
  0x42   :  { %796 = vmatpush.msrb.mxu0 %v4781_v29 }
  0x94   :  { %v166_v54 = vpop.f32.mrf.mxu1 }
  0x95   :  { %v142_v55 = vpop.f32.mrf.mxu0 }
  0x96   :  { %v167_v56 = vadd.f32 %v166_v54, %v142_v55  ;;  %v4902_v55 = vld [vmem:[%s6228_s4 + $0x3] ss:$0 sm:$0xff] }
  0x98   :  { %v169_v57 = vadd.f32 %v4888_v53, %v167_v56  ;;  %v215_v58 = vpop.f32.mrf.mxu3 }
  0x9a   :  { %v3979_v59 = vmul.f32 -1.442695, %v169_v57 }
  0x9b   :  { %v195_v61 = vpop.f32.mrf.mxu2 }
  0x9c   :  { %4161 = vpow2.f32 %v3979_v59  ;;  %v216_v62 = vadd.f32 %v215_v58, %v195_v61  ;;  %v651_v59 = vld [vmem:[#allocation2 + $0x8] sm:$0xff]  ;;  %v4908_v61 = vld [vmem:[%s6228_s4 + $0x4] ss:$0 sm:$0xff] }
  0x9d   :  { %6279 = vst [vmem:[#allocation31_spill] sm:$0xff] %v4908_v61  ;;  %3990 = vmatmul.msk.f32.vlgmr.msra.gmra.mxu3 %vm145_vm0, %v651_v59  ;;  %3992 = vmatmul.msk.f32.vlgmr.msra.gmra.mxu2 %vm145_vm0, %v651_v59 }
  0x9e   :  { %v244_v63 = vpop.f32.mrf.mxu1  ;;  %v218_v6 = vadd.f32 %v4894_v60, %v216_v62  ;;  %930 = vmatpush.msra.mxu3 %v4761_v23  ;;  %971 = vmatpush.msra.mxu2 %v4765_v24 }
  0xa0   :  { %v264_v16 = vpop.f32.mrf.mxu3  ;;  %v293_v31 = vpop.f32.mrf.mxu0  ;;  %v3980_v48 = vmul.f32 -1.442695, %v218_v6  ;;  %931 = vmatpush.msra.mxu3 %v4773_v27  ;;  %972 = vmatpush.msra.mxu2 %v4783_v30 }
  0xa2   :  { %v4162_v51 = vpop.eup %4161  ;;  %4163 = vpow2.f32 %v3980_v48 }
  0xa3   :  { %v4897_v54 = vadd.f32 1.0, %v4162_v51 }
  0xa4   :  { %v313_v56 = vpop.f32.mrf.mxu2 }
  0xa5   :  { %4165 = vrcp.f32 %v4897_v54  ;;  %v314_v57 = vadd.f32 %v313_v56, %v293_v31  ;;  %3994 = vmatmul.msk.f32.vlgmr.msrb.gmra.mxu3 %vm145_vm0, %v651_v59  ;;  %3996 = vmatmul.msk.f32.vlgmr.msrb.gmra.mxu2 %vm145_vm0, %v651_v59  ;;  %vm326_vm1 = vweird.f32 %v4897_v54 }
  0xa6   :  { %v410_v58 = vpop.f32.mrf.mxu1  ;;  %1053 = vmatpush.msrb.mxu2 %v4791_v34  ;;  %1012 = vmatpush.msrb.mxu3 %v4807_v38 }
  0xa7   :  { %v316_v62 = vadd.f32 %v4902_v55, %v314_v57  ;;  %v4925_v57 = vld [vmem:[%s6228_s4 + $0x5] ss:$0 sm:$0xff] }
  0xa8   :  { %v433_v6 = vpop.f32.mrf.mxu3  ;;  %v462_v48 = vpop.f32.mrf.mxu0  ;;  %1013 = vmatpush.msrb.mxu3 %v4825_v43  ;;  %1054 = vmatpush.msrb.mxu2 %v4805_v37  ;;  %v330_v37 = vand.u32 2147483647, %v4897_v54 }
  0xa9   :  { %v4164_v31 = vpop.eup %4163  ;;  %v434_v51 = vadd.f32 %v433_v6, %v410_v58  ;;  %v3981_v60 = vmul.f32 -1.442695, %v316_v62  ;;  %v4933_v62 = vld [vmem:[%s6228_s4 + $0x2] ss:$0 sm:$0xff]  ;;  %v265_v6 = vadd.f32 %v264_v16, %v244_v63 }
  0xaa   :  { %v4915_v56 = vadd.f32 1.0, %v4164_v31  ;;  %vm331_vm6 = vcmp.eq.f32.partialorder %v330_v37, 8.507059e+37 }
  0xab   :  { %v4919_v53 = vpop.eup %4165  ;;  %v436_v29 = vadd.f32 %v4908_v61, %v434_v51  ;;  %v267_v23 = vadd.f32 %v4933_v62, %v265_v6  ;;  %v889_v6 = vld [vmem:[#allocation2 + $0x30] sm:$0xff] }
  0xac   :  { %v322_v24 = vmul.f32 %v4919_v53, %v4897_v54  ;;  %4167 = vrcp.f32 %v4915_v56  ;;  %v482_v58 = vpop.f32.mrf.mxu2  ;;  %vm327_vm2 = vweird.f32 %v4919_v53  ;;  %v351_v43 = vand.u32 2147483648, %v4915_v56 }
  0xad   :  { %4169 = vpow2.f32 %v3981_v60  ;;  %v3986_v31 = vmul.f32 -1.442695, %v436_v29  ;;  %v483_v51 = vadd.f32 %v482_v58, %v462_v48  ;;  %vm4960_vm3 = vmor %vm326_vm1, %vm327_vm2  ;;  %v349_v38 = vand.u32 2147483647, %v4915_v56  ;;  %4001 = vmatmul.msk.f32.vlgmr.msra.gmra.mxu3 %vm145_vm0, %v889_v6  ;;  %4003 = vmatmul.msk.f32.vlgmr.msra.gmra.mxu2 %vm145_vm0, %v889_v6 }
  0xae   :  { %v323_v61 = vsub.f32 1.0, %v322_v24  ;;  %1168 = vmatpush.msra.mxu3 %v4715_v8  ;;  %1209 = vmatpush.msra.mxu2 %v4702_v2  ;;  %vm345_vm5 = vweird.f32 %v4915_v56  ;;  %v352_v8 = vor.u32 1.1754944e-38, %v351_v43  ;;  %vm121_vm2 = vcmask 261120  }
  0xaf   :  { %4171 = vpow2.f32 %v3986_v31  ;;  %v485_v30 = vadd.f32 %v4925_v57, %v483_v51  ;;  %vm350_vm8 = vcmp.eq.f32.partialorder %v349_v38, 8.507059e+37 }
  0xb0   :  { %v324_v27 = vmul.f32 %v4919_v53, %v323_v61  ;;  %v560_v24 = vpop.f32.mrf.mxu0  ;;  %v332_v61 = vand.u32 2147483648, %v4897_v54  ;;  %1169 = vmatpush.msra.mxu3 %v4721_v10  ;;  %1210 = vmatpush.msra.mxu2 %v4710_v5 }
  0xb1   :  { %v3987_v63 = vmul.f32 -1.442695, %v485_v30  ;;  %v4951_v30 = vld [vmem:[%s6228_s4 + $0x7] ss:$0 sm:$0xff] }
  0xb2   :  { %v4168_v60 = vpop.eup %4167  ;;  %v325_v59 = vadd.f32 %v4919_v53, %v324_v27  ;;  %v333_v54 = vor.u32 1.1754944e-38, %v332_v61 }
  0xb3   :  { %v4170_v29 = vpop.eup %4169  ;;  %v341_v16 = vmul.f32 %v4168_v60, %v4915_v56  ;;  %4173 = vpow2.f32 %v3987_v63  ;;  %vm346_vm4 = vweird.f32 %v4168_v60  ;;  %v4983_v63 = vld [vmem:[%s6228_s4 + $0x6] ss:$0 sm:$0xff] }
  0xb4   :  { %v4954_v48 = vadd.f32 1.0, %v4170_v29  ;;  %v580_v58 = vpop.f32.mrf.mxu2  ;;  %4175 = vtanh.f32 %v267_v23  ;;  %v329_v23 = vsel %vm4960_vm3, %v4919_v53, %v325_v59  ;;  %vm347_vm7 = vmor %vm345_vm5, %vm346_vm4 }
  0xb5   :  { %v4172_v31 = vpop.eup %4171  ;;  %v342_v51 = vsub.f32 1.0, %v341_v16  ;;  %v581_v27 = vadd.f32 %v580_v58, %v560_v24  ;;  %v511_v16 = vpop.f32.mrf.mxu1  ;;  %4005 = vmatmul.msk.f32.vlgmr.msrb.gmra.mxu3 %vm145_vm0, %v889_v6  ;;  %4007 = vmatmul.msk.f32.vlgmr.msrb.gmra.mxu2 %vm145_vm0, %v889_v6 }
  0xb6   :  { %4177 = vrcp.f32 %v4954_v48  ;;  %v4965_v29 = vadd.f32 1.0, %v4172_v31  ;;  %v531_v58 = vpop.f32.mrf.mxu3  ;;  %v371_v38 = vand.u32 2147483648, %v4954_v48  ;;  %1250 = vmatpush.msrb.mxu3 %v4733_v13  ;;  %1291 = vmatpush.msrb.mxu2 %v4737_v14  ;;  %vm365_vm10 = vweird.f32 %v4954_v48 }
  0xb7   :  { %v343_v34 = vmul.f32 %v4168_v60, %v342_v51  ;;  %v583_v24 = vadd.f32 %v4951_v30, %v581_v27  ;;  %v334_v51 = vsel %vm331_vm6, %v333_v54, %v329_v23  ;;  %v532_v61 = vadd.f32 %v531_v58, %v511_v16 }
  0xb8   :  { %4179 = vrcp.f32 %v4965_v29  ;;  %v369_v6 = vand.u32 2147483647, %v4954_v48  ;;  %1251 = vmatpush.msrb.mxu3 %v4743_v17  ;;  %1292 = vmatpush.msrb.mxu2 %v4749_v19  ;;  %vm593_vm12 = vweird.f32 %v4965_v29 }
  0xb9   :  { %v4174_v31 = vpop.eup %4173  ;;  %v3988_v53 = vmul.f32 -1.442695, %v583_v24  ;;  %v344_v59 = vadd.f32 %v4168_v60, %v343_v34  ;;  %v534_v58 = vadd.f32 %v4983_v63, %v532_v61 }
  0xba   :  { %v4978_v27 = vadd.f32 1.0, %v4174_v31  ;;  %v4176_v56 = vpop.eup %4175  ;;  %vm370_vm15 = vcmp.eq.f32.partialorder %v369_v6, 8.507059e+37 }
  0xbb   :  { %4181 = vpow2.f32 %v3988_v53  ;;  %v348_v37 = vsel %vm347_vm7, %v4168_v60, %v344_v59  ;;  %v376_v24 = vmul.f32 %v4176_v56, %v334_v51 }
  0xbc   :  { %v4178_v34 = vpop.eup %4177  ;;  %4183 = vrcp.f32 %v4978_v27  ;;  %v353_v23 = vsel %vm350_vm8, %v352_v8, %v348_v37  ;;  %v597_v37 = vand.u32 2147483647, %v4965_v29  ;;  %vm612_vm3 = vweird.f32 %v4978_v27 }
  0xbd   :  { %v361_v54 = vmul.f32 %v4178_v34, %v4954_v48  ;;  %v375_v31 = vmul.f32 0.0, %v353_v23  ;;  %vm366_vm9 = vweird.f32 %v4178_v34  ;;  %v599_v23 = vand.u32 2147483648, %v4965_v29 }
  0xbe   :  { %v4180_v16 = vpop.eup %4179  ;;  %vm367_vm13 = vmor %vm365_vm10, %vm366_vm9  ;;  %vm598_vm4 = vcmp.eq.f32.partialorder %v597_v37, 8.507059e+37 }
  0xbf   :  { %v589_v43 = vmul.f32 %v4180_v16, %v4965_v29  ;;  %v362_v10 = vsub.f32 1.0, %v361_v54  ;;  %v4992_v2 = vadd.f32 %v376_v24, %v375_v31  ;;  %vm594_vm11 = vweird.f32 %v4180_v16 }
  0xc0   :  { %v372_v31 = vor.u32 1.1754944e-38, %v371_v38  ;;  %vm5013_vm14 = vmor %vm593_vm12, %vm594_vm11  ;;  %v600_v38 = vor.u32 1.1754944e-38, %v599_v23 }
  0xc1   :  { %v4182_v8 = vpop.eup %4181  ;;  %v590_v60 = vsub.f32 1.0, %v589_v43  ;;  %v363_v53 = vmul.f32 %v4178_v34, %v362_v10  ;;  %4185 = vtanh.f32 %v4992_v2 }
  0xc2   :  { %v4184_v59 = vpop.eup %4183  ;;  %v5000_v51 = vadd.f32 1.0, %v4182_v8  ;;  %4187 = vtanh.f32 %v534_v58  ;;  %v618_v58 = vand.u32 2147483648, %v4978_v27  ;;  %v5017_v8 = vpop.permute.xlu0 %73 }
  0xc3   :  { %v608_v61 = vmul.f32 %v4184_v59, %v4978_v27  ;;  %v591_v56 = vmul.f32 %v4180_v16, %v590_v60  ;;  %v364_v10 = vadd.f32 %v4178_v34, %v363_v53  ;;  %v616_v60 = vand.u32 2147483647, %v4978_v27 }
  0xc4   :  { %4189 = vrcp.f32 %v5000_v51  ;;  %vm613_vm1 = vweird.f32 %v4184_v59  ;;  %vm6256_vm5 = vcmp.gt.s32.totalorder %v5017_v8, 0  ;;  %v638_v43 = vand.u32 2147483648, %v5000_v51 }
  0xc5   :  { %v609_v48 = vsub.f32 1.0, %v608_v61  ;;  %v592_v24 = vadd.f32 %v4180_v16, %v591_v56  ;;  %v368_v54 = vsel %vm367_vm13, %v4178_v34, %v364_v10  ;;  %vm614_vm6 = vmor %vm612_vm3, %vm613_vm1  ;;  %vm617_vm7 = vcmp.eq.f32.partialorder %v616_v60, 8.507059e+37 }
  0xc6   :  { %v373_v61 = vsel %vm370_vm15, %v372_v31, %v368_v54  ;;  %vm632_vm9 = vweird.f32 %v5000_v51  ;;  %vm647_vm12 = vcmp.gt.s32.totalorder %v5017_v8, 7 }
  0xc7   :  { %v4186_v53 = vpop.eup %4185  ;;  %v610_v19 = vmul.f32 %v4184_v59, %v609_v48  ;;  %v596_v29 = vsel %vm5013_vm14, %v4180_v16, %v592_v24  ;;  %v619_v16 = vor.u32 1.1754944e-38, %v618_v58 }
  0xc8   :  { %v4188_v34 = vpop.eup %4187  ;;  %v379_v56 = vmul.f32 %v4186_v53, %v373_v61  ;;  %v601_v17 = vsel %vm598_vm4, %v600_v38, %v596_v29  ;;  %v639_v53 = vor.u32 1.1754944e-38, %v638_v43 }
  0xc9   :  { %v611_v10 = vadd.f32 %v4184_v59, %v610_v19  ;;  %v643_v37 = vmul.f32 %v4188_v34, %v601_v17  ;;  %v636_v17 = vand.u32 2147483647, %v5000_v51 }
  0xca   :  { %v4190_v6 = vpop.eup %4189  ;;  %v5026_v48 = vsel %vm6256_vm5, %v379_v56, 0.0 }
  0xcb   :  { %v628_v24 = vmul.f32 %v4190_v6, %v5000_v51  ;;  %3989 = vmatmul.msk.f32.vlgmr.msra.gmra.mxu1 %vm121_vm2, %v5026_v48  ;;  %3991 = vmatmul.msk.f32.vlgmr.msra.gmra.mxu0 %vm121_vm2, %v5026_v48  ;;  %v615_v27 = vsel %vm614_vm6, %v4184_v59, %v611_v10  ;;  %vm633_vm8 = vweird.f32 %v4190_v6  ;;  %vm637_vm11 = vcmp.eq.f32.partialorder %v636_v17, 8.507059e+37 }
  0xcc   :  { %905 = vmatpush.msra.mxu1 %v4779_v28  ;;  %949 = vmatpush.msra.mxu0 %v4789_v33  ;;  %v620_v19 = vsel %vm617_vm7, %v619_v16, %v615_v27  ;;  %vm634_vm10 = vmor %vm632_vm9, %vm633_vm8  ;;  %vm885_vm9 = vcmp.gt.s32.totalorder %v5017_v8, 1 }
  0xcd   :  { %v629_v23 = vsub.f32 1.0, %v628_v24  ;;  %v642_v54 = vmul.f32 0.0, %v620_v19  ;;  %v5091_v24 = vld [vmem:[#allocation2 + $0x10] sm:$0xff] }
  0xce   :  { %906 = vmatpush.msra.mxu1 %v4787_v32  ;;  %950 = vmatpush.msra.mxu0 %v4801_v36 }
  0xcf   :  { %v630_v31 = vmul.f32 %v4190_v6, %v629_v23  ;;  %v5037_v58 = vadd.f32 %v643_v37, %v642_v54  ;;  %4012 = vmatmul.msk.f32.vlgmr.msra.gmra.mxu3 %vm145_vm0, %v5091_v24  ;;  %4014 = vmatmul.msk.f32.vlgmr.msra.gmra.mxu2 %vm145_vm0, %v5091_v24  ;;  %v6287_v54 = vld [vmem:[#allocation20_spill] sm:$0xff] }
  0xd0   :  { %907 = vmatpush.msra.mxu1 %v4795_v35  ;;  %951 = vmatpush.msra.mxu0 %v4812_v40 }
  0xd1   :  { %v631_v59 = vadd.f32 %v4190_v6, %v630_v31  ;;  %4191 = vtanh.f32 %v5037_v58  ;;  %1406 = vmatpush.msra.mxu3 %v6287_v54  ;;  %v6288_v31 = vld [vmem:[#allocation21_spill] sm:$0xff] }
  0xd2   :  { %908 = vmatpush.msra.mxu1 %v4810_v39  ;;  %952 = vmatpush.msra.mxu0 %v4817_v41 }
  0xd3   :  { %3993 = vmatmul.msk.f32.vlgmr.msrb.gmra.mxu1 %vm121_vm2, %v5026_v48  ;;  %3995 = vmatmul.msk.f32.vlgmr.msrb.gmra.mxu0 %vm121_vm2, %v5026_v48  ;;  %v635_v60 = vsel %vm634_vm10, %v4190_v6, %v631_v59 }
  0xd4   :  { %990 = vmatpush.msrb.mxu1 %v4821_v42  ;;  %1031 = vmatpush.msrb.mxu0 %v4829_v44  ;;  %v640_v51 = vsel %vm637_vm11, %v639_v53, %v635_v60 }
  0xd5   :  { %1447 = vmatpush.msra.mxu2 %v6288_v31 }
  0xd6   :  { %991 = vmatpush.msrb.mxu1 %v4831_v45  ;;  %1032 = vmatpush.msrb.mxu0 %v4836_v46 }
  0xd7   :  { %v4192_v29 = vpop.eup %4191  ;;  %4016 = vmatmul.msk.f32.vlgmr.msrb.gmra.mxu3 %vm145_vm0, %v5091_v24  ;;  %4018 = vmatmul.msk.f32.vlgmr.msrb.gmra.mxu2 %vm145_vm0, %v5091_v24 }
  0xd8   :  { %v646_v61 = vmul.f32 %v4192_v29, %v640_v51  ;;  %992 = vmatpush.msrb.mxu1 %v4839_v47  ;;  %1033 = vmatpush.msrb.mxu0 %v4846_v49  ;;  %v6289_v29 = vld [vmem:[#allocation22_spill] sm:$0xff]  ;;  %v6290_v51 = vld [vmem:[#allocation24_spill] sm:$0xff] }
  0xd9   :  { %1407 = vmatpush.msra.mxu3 %v6289_v29  ;;  %1448 = vmatpush.msra.mxu2 %v6290_v51 }
  0xda   :  { %v5060_v34 = vsel %vm647_vm12, %v646_v61, 0.0  ;;  %993 = vmatpush.msrb.mxu1 %v4849_v50  ;;  %1034 = vmatpush.msrb.mxu0 %v4853_v52 }
  0xdb   :  { %4000 = vmatmul.msk.f32.vlgmr.msra.gmra.mxu1 %vm121_vm2, %v5060_v34  ;;  %4002 = vmatmul.msk.f32.vlgmr.msra.gmra.mxu0 %vm121_vm2, %v5060_v34 }
  0xdc   :  { %1143 = vmatpush.msra.mxu1 %v4698_v0  ;;  %1187 = vmatpush.msra.mxu0 %v4700_v1  ;;  %v6284_v0 = vld [vmem:[#allocation23_spill] sm:$0xff] }
  0xde   :  { %1144 = vmatpush.msra.mxu1 %v4706_v3  ;;  %1188 = vmatpush.msra.mxu0 %v4708_v4 }
  0xe0   :  { %1145 = vmatpush.msra.mxu1 %v4713_v7  ;;  %1189 = vmatpush.msra.mxu0 %v4719_v9 }
  0xe2   :  { %1146 = vmatpush.msra.mxu1 %v4725_v11  ;;  %1190 = vmatpush.msra.mxu0 %v4729_v12 }
  0xe3   :  { %4004 = vmatmul.msk.f32.vlgmr.msrb.gmra.mxu1 %vm121_vm2, %v5060_v34  ;;  %4006 = vmatmul.msk.f32.vlgmr.msrb.gmra.mxu0 %vm121_vm2, %v5060_v34 }
  0xe4   :  { %1228 = vmatpush.msrb.mxu1 %v4739_v15  ;;  %1269 = vmatpush.msrb.mxu0 %v4745_v18  ;;  %v6285_v15 = vld [vmem:[#allocation29_spill] sm:$0xff] }
  0xe6   :  { %1229 = vmatpush.msrb.mxu1 %v4751_v20  ;;  %1270 = vmatpush.msrb.mxu0 %v4755_v21  ;;  %v6286_v20 = vld [vmem:[#allocation30_spill] sm:$0xff] }
  0xe8   :  { %1230 = vmatpush.msrb.mxu1 %v4759_v22  ;;  %1271 = vmatpush.msrb.mxu0 %v4767_v25 }
  0xea   :  { %1231 = vmatpush.msrb.mxu1 %v4771_v26  ;;  %1272 = vmatpush.msrb.mxu0 %v6284_v0 }
 0x120   :  { %v736_v1 = vpop.f32.mrf.mxu2  ;;  %v695_v3 = vpop.f32.mrf.mxu3 }
 0x128   :  { %v818_v12 = vpop.f32.mrf.mxu2  ;;  %v777_v22 = vpop.f32.mrf.mxu3 }
 0x130   :  { %v974_v16 = vpop.f32.mrf.mxu2  ;;  %v933_v17 = vpop.f32.mrf.mxu3 }
 0x148   :  { %v672_v4 = vpop.f32.mrf.mxu1  ;;  %v716_v7 = vpop.f32.mrf.mxu0 }
 0x149   :  { %v696_v9 = vadd.f32 %v695_v3, %v672_v4  ;;  %v737_v11 = vadd.f32 %v736_v1, %v716_v7  ;;  %v6291_v3 = vld [vmem:[#allocation31_spill] sm:$0xff] }
 0x14b   :  { %v698_v18 = vadd.f32 %v6285_v15, %v696_v9  ;;  %v739_v38 = vadd.f32 %v6286_v20, %v737_v11 }
 0x14d   :  { %v3997_v21 = vmul.f32 -1.442695, %v698_v18  ;;  %v3998_v56 = vmul.f32 -1.442695, %v739_v38 }
 0x14f   :  { %4193 = vpow2.f32 %v3997_v21  ;;  %v1056_v21 = vpop.f32.mrf.mxu2 }
 0x150   :  { %4195 = vpow2.f32 %v3998_v56  ;;  %v757_v25 = vpop.f32.mrf.mxu1  ;;  %v798_v26 = vpop.f32.mrf.mxu0  ;;  %v6292_v56 = vld [vmem:[#allocation25_spill] sm:$0xff] }
 0x151   :  { %v819_v10 = vadd.f32 %v818_v12, %v798_v26  ;;  %v778_v43 = vadd.f32 %v777_v22, %v757_v25  ;;  %1529 = vmatpush.msrb.mxu2 %v6292_v56  ;;  %v6293_v22 = vld [vmem:[#allocation27_spill] sm:$0xff] }
 0x152   :  { %1488 = vmatpush.msrb.mxu3 %v6293_v22 }
 0x153   :  { %v821_v6 = vadd.f32 %v4902_v55, %v819_v10  ;;  %v780_v1 = vadd.f32 %v4933_v62, %v778_v43 }
 0x155   :  { %v4194_v27 = vpop.eup %4193  ;;  %v3999_v19 = vmul.f32 -1.442695, %v821_v6 }
 0x156   :  { %v4196_v37 = vpop.eup %4195  ;;  %v825_v23 = vadd.f32 1.0, %v4194_v27  ;;  %v6295_v27 = vld [vmem:[#allocation26_spill] sm:$0xff] }
 0x157   :  { %v5099_v59 = vadd.f32 1.0, %v4196_v37  ;;  %4197 = vpow2.f32 %v3999_v19  ;;  %1530 = vmatpush.msrb.mxu2 %v6295_v27 }
 0x158   :  { %4199 = vrcp.f32 %v825_v23  ;;  %v910_v60 = vpop.f32.mrf.mxu1  ;;  %v954_v53 = vpop.f32.mrf.mxu0  ;;  %v835_v31 = vand.u32 2147483647, %v825_v23  ;;  %v837_v43 = vand.u32 2147483648, %v825_v23  ;;  %vm831_vm15 = vweird.f32 %v825_v23 }
 0x159   :  { %4201 = vrcp.f32 %v5099_v59  ;;  %v934_v61 = vadd.f32 %v933_v17, %v910_v60  ;;  %v975_v0 = vadd.f32 %v974_v16, %v954_v53  ;;  %v6294_v16 = vld [vmem:[#allocation28_spill] sm:$0xff]  ;;  %v5119_v17 = vld [vmem:[#allocation2 + $0x28] sm:$0xff]  ;;  %v856_v60 = vand.u32 2147483648, %v5099_v59 }
 0x15a   :  { %4203 = vtanh.f32 %v780_v1  ;;  %1489 = vmatpush.msrb.mxu3 %v6294_v16  ;;  %v382_v1 = vsel %vm6256_vm5, %v4992_v2, 0.0  ;;  %4025 = vmatmul.msk.f32.vlgmr.msra.gmra.mxu2 %vm145_vm0, %v5119_v17  ;;  %vm850_vm1 = vweird.f32 %v5099_v59  ;;  %vm836_vm4 = vcmp.eq.f32.partialorder %v835_v31, 8.507059e+37  ;;  %v6297_v2 = vld [vmem:[#allocation15_spill] sm:$0xff] }
 0x15b   :  { %v936_v4 = vadd.f32 %v6291_v3, %v934_v61  ;;  %v977_v7 = vadd.f32 %v4925_v57, %v975_v0  ;;  %v854_v61 = vand.u32 2147483647, %v5099_v59  ;;  %4023 = vmatmul.msk.f32.vlgmr.msra.gmra.mxu3 %vm145_vm0, %v5119_v17  ;;  %1685 = vmatpush.msra.mxu2 %v6297_v2  ;;  %v857_v56 = vor.u32 1.1754944e-38, %v856_v60 }
 0x15d   :  { %v4198_v9 = vpop.eup %4197  ;;  %v4008_v18 = vmul.f32 -1.442695, %v936_v4  ;;  %v4009_v38 = vmul.f32 -1.442695, %v977_v7  ;;  %vm855_vm7 = vcmp.eq.f32.partialorder %v854_v61, 8.507059e+37  ;;  %1686 = vmatpush.msra.mxu2 %v4710_v5 }
 0x15e   :  { %v4200_v11 = vpop.eup %4199  ;;  %v5111_v12 = vadd.f32 1.0, %v4198_v9 }
 0x15f   :  { %v4202_v25 = vpop.eup %4201  ;;  %v827_v26 = vmul.f32 %v4200_v11, %v825_v23  ;;  %vm832_vm13 = vweird.f32 %v4200_v11 }
 0x160   :  { %v846_v10 = vmul.f32 %v4202_v25, %v5099_v59  ;;  %4205 = vrcp.f32 %v5111_v12  ;;  %v1036_v6 = vpop.f32.mrf.mxu0  ;;  %vm851_vm14 = vweird.f32 %v4202_v25  ;;  %v4204_v0 = vpop.eup %4203  ;;  %vm833_vm3 = vmor %vm831_vm15, %vm832_vm13  ;;  %vm870_vm10 = vweird.f32 %v5111_v12 }
 0x161   :  { %v828_v19 = vsub.f32 1.0, %v827_v26  ;;  %4207 = vpow2.f32 %v4008_v18  ;;  %v1057_v37 = vadd.f32 %v1056_v21, %v1036_v6  ;;  %v838_v18 = vor.u32 1.1754944e-38, %v837_v43  ;;  %v6296_v21 = vld [vmem:[#allocation16_spill] sm:$0xff]  ;;  %vm852_vm6 = vmor %vm850_vm1, %vm851_vm14  ;;  %v995_v27 = vpop.f32.mrf.mxu1 }
 0x162   :  { %v847_v54 = vsub.f32 1.0, %v846_v10  ;;  %4209 = vpow2.f32 %v4009_v38  ;;  %1644 = vmatpush.msra.mxu3 %v6296_v21  ;;  %4029 = vmatmul.msk.f32.vlgmr.msrb.gmra.mxu2 %vm145_vm0, %v5119_v17 }
 0x163   :  { %v829_v53 = vmul.f32 %v4200_v11, %v828_v19  ;;  %v1059_v29 = vadd.f32 %v4951_v30, %v1057_v37  ;;  %v1015_v19 = vpop.f32.mrf.mxu3  ;;  %v6298_v37 = vld [vmem:[#allocation17_spill] sm:$0xff]  ;;  %4027 = vmatmul.msk.f32.vlgmr.msrb.gmra.mxu3 %vm145_vm0, %v5119_v17  ;;  %1767 = vmatpush.msrb.mxu2 %v4737_v14  ;;  %v6302_v14 = vld [vmem:[#allocation19_spill] sm:$0xff] }
 0x164   :  { %v848_v51 = vmul.f32 %v4202_v25, %v847_v54  ;;  %1645 = vmatpush.msra.mxu3 %v6298_v37 }
 0x165   :  { %v830_v4 = vadd.f32 %v4200_v11, %v829_v53  ;;  %v4010_v7 = vmul.f32 -1.442695, %v1059_v29  ;;  %1768 = vmatpush.msrb.mxu2 %v6302_v14 }
 0x166   :  { %v5131_v9 = vpop.eup %4205  ;;  %v849_v38 = vadd.f32 %v4202_v25, %v848_v51  ;;  %1726 = vmatpush.msrb.mxu3 %v4733_v13  ;;  %v6301_v13 = vld [vmem:[#allocation18_spill] sm:$0xff] }
 0x167   :  { %v4208_v23 = vpop.eup %4207  ;;  %v834_v22 = vsel %vm833_vm3, %v4200_v11, %v830_v4  ;;  %v866_v26 = vmul.f32 %v5131_v9, %v5111_v12  ;;  %4211 = vpow2.f32 %v4010_v7  ;;  %vm871_vm8 = vweird.f32 %v5131_v9 }
 0x168   :  { %v4210_v10 = vpop.eup %4209  ;;  %v839_v6 = vsel %vm836_vm4, %v838_v18, %v834_v22  ;;  %v853_v59 = vsel %vm852_vm6, %v4202_v25, %v849_v38  ;;  %v5139_v16 = vadd.f32 1.0, %v4208_v23  ;;  %v1016_v25 = vadd.f32 %v1015_v19, %v995_v27  ;;  %vm5170_vm11 = vmor %vm870_vm10, %vm871_vm8  ;;  %1727 = vmatpush.msrb.mxu3 %v6301_v13 }
 0x169   :  { %v858_v54 = vsel %vm855_vm7, %v857_v56, %v853_v59  ;;  %v881_v31 = vmul.f32 %v4204_v0, %v839_v6  ;;  %v867_v43 = vsub.f32 1.0, %v866_v26  ;;  %v5143_v11 = vadd.f32 1.0, %v4210_v10 }
 0x16a   :  { %v880_v60 = vmul.f32 %v858_v54, %v382_v1  ;;  %4213 = vrcp.f32 %v5139_v16  ;;  %v876_v0 = vand.u32 2147483648, %v5111_v12  ;;  %v1018_v4 = vadd.f32 %v4983_v63, %v1016_v25 }
 0x16b   :  { %4215 = vrcp.f32 %v5143_v11  ;;  %v868_v29 = vmul.f32 %v5131_v9, %v867_v43  ;;  %v874_v7 = vand.u32 2147483647, %v5111_v12  ;;  %v1073_v6 = vand.u32 2147483647, %v5139_v16 }
 0x16c   :  { %v882_v53 = vadd.f32 %v881_v31, %v880_v60  ;;  %v877_v56 = vor.u32 1.1754944e-38, %v876_v0  ;;  %v1075_v59 = vand.u32 2147483648, %v5139_v16  ;;  %v1094_v19 = vand.u32 2147483648, %v5143_v11 }
 0x16d   :  { %v4212_v51 = vpop.eup %4211  ;;  %v869_v61 = vadd.f32 %v5131_v9, %v868_v29  ;;  %vm875_vm13 = vcmp.eq.f32.partialorder %v874_v7, 8.507059e+37  ;;  %v1092_v43 = vand.u32 2147483647, %v5143_v11  ;;  %vm1069_vm1 = vweird.f32 %v5139_v16 }
 0x16e   :  { %4217 = vtanh.f32 %v882_v53  ;;  %v5154_v5 = vadd.f32 1.0, %v4212_v51  ;;  %v5165_v18 = vsel %vm885_vm9, %v882_v53, %v382_v1  ;;  %vm1088_vm3 = vweird.f32 %v5143_v11 }
 0x16f   :  { %v873_v1 = vsel %vm5170_vm11, %v5131_v9, %v869_v61  ;;  %v1076_v29 = vor.u32 1.1754944e-38, %v1075_v59  ;;  %vm1074_vm7 = vcmp.eq.f32.partialorder %v1073_v6, 8.507059e+37  ;;  %vm1093_vm8 = vcmp.eq.f32.partialorder %v1092_v43, 8.507059e+37  ;;  %v1212_v6 = vpop.f32.mrf.mxu2  ;;  %v1171_v59 = vpop.f32.mrf.mxu3 }
 0x170   :  { %v4214_v38 = vpop.eup %4213  ;;  %4219 = vrcp.f32 %v5154_v5  ;;  %v878_v27 = vsel %vm875_vm13, %v877_v56, %v873_v1  ;;  %v649_v7 = vsel %vm647_vm12, %v5037_v58, 0.0  ;;  %vm1123_vm11 = vcmp.gt.s32.totalorder %v5017_v8, 6  ;;  %v5271_v1 = vld [vmem:[#allocation7 + $0x50] sm:$0xff]  ;;  %v5277_v56 = vld [vmem:[#allocation7 + $0x48] sm:$0xff] }
 0x171   :  { %v4216_v2 = vpop.eup %4215  ;;  %v1065_v12 = vmul.f32 %v4214_v38, %v5139_v16  ;;  %4221 = vtanh.f32 %v1018_v4  ;;  %vm1070_vm14 = vweird.f32 %v4214_v38  ;;  %v1095_v16 = vor.u32 1.1754944e-38, %v1094_v19 }
 0x172   :  { %v1084_v23 = vmul.f32 %v4216_v2, %v5143_v11  ;;  %vm1089_vm15 = vweird.f32 %v4216_v2  ;;  %vm1071_vm4 = vmor %vm1069_vm1, %vm1070_vm14  ;;  %vm1108_vm13 = vweird.f32 %v5154_v5 }
 0x173   :  { %v1066_v22 = vsub.f32 1.0, %v1065_v12  ;;  %vm1090_vm6 = vmor %vm1088_vm3, %vm1089_vm15  ;;  %v5268_v12 = vld [vmem:[#allocation7 + $0x78] sm:$0xff] }
 0x174   :  { %v4218_v26 = vpop.eup %4217  ;;  %v1085_v10 = vsub.f32 1.0, %v1084_v23  ;;  %v5274_v23 = vld [vmem:[#allocation7 + $0x70] sm:$0xff] }
 0x175   :  { %v1067_v37 = vmul.f32 %v4214_v38, %v1066_v22  ;;  %v884_v54 = vmul.f32 %v4218_v26, %v878_v27  ;;  %v5280_v22 = vld [vmem:[#allocation7 + $0x68] sm:$0xff]  ;;  %v5283_v26 = vld [vmem:[#allocation7 + $0x40] sm:$0xff] }
 0x176   :  { %v4220_v31 = vpop.eup %4219  ;;  %v1086_v9 = vmul.f32 %v4216_v2, %v1085_v10  ;;  %v5286_v10 = vld [vmem:[#allocation7 + $0x60] sm:$0xff] }
 0x177   :  { %v1068_v60 = vadd.f32 %v4214_v38, %v1067_v37  ;;  %v1104_v25 = vmul.f32 %v4220_v31, %v5154_v5  ;;  %v5190_v53 = vsel %vm885_vm9, %v884_v54, %v5026_v48  ;;  %v4222_v61 = vpop.eup %4221  ;;  %vm1109_vm10 = vweird.f32 %v4220_v31  ;;  %v1294_v43 = vpop.f32.mrf.mxu2 }
 0x178   :  { %v1087_v51 = vadd.f32 %v4216_v2, %v1086_v9  ;;  %4011 = vmatmul.msk.f32.vlgmr.msra.gmra.mxu1 %vm121_vm2, %v5190_v53  ;;  %4013 = vmatmul.msk.f32.vlgmr.msra.gmra.mxu0 %vm121_vm2, %v5190_v53  ;;  %vm1110_vm14 = vmor %vm1108_vm13, %vm1109_vm10 }
 0x179   :  { %v1072_v0 = vsel %vm1071_vm4, %v4214_v38, %v1068_v60  ;;  %v1105_v4 = vsub.f32 1.0, %v1104_v25  ;;  %1381 = vmatpush.msra.mxu1 %v4779_v28  ;;  %1425 = vmatpush.msra.mxu0 %v4789_v33 }
 0x17a   :  { %v1077_v48 = vsel %vm1074_vm7, %v1076_v29, %v1072_v0  ;;  %v1091_v11 = vsel %vm1090_vm6, %v4216_v2, %v1087_v51  ;;  %v1253_v29 = vpop.f32.mrf.mxu3 }
 0x17b   :  { %v1096_v21 = vsel %vm1093_vm8, %v1095_v16, %v1091_v11  ;;  %v1119_v13 = vmul.f32 %v4222_v61, %v1077_v48  ;;  %1382 = vmatpush.msra.mxu1 %v4787_v32  ;;  %1426 = vmatpush.msra.mxu0 %v4801_v36  ;;  %v1106_v38 = vmul.f32 %v4220_v31, %v1105_v4  ;;  %v1114_v32 = vand.u32 2147483648, %v5154_v5  ;;  %v5292_v11 = vld [vmem:[#allocation2 + $0x18] sm:$0xff] }
 0x17c   :  { %v1118_v14 = vmul.f32 %v1096_v21, %v649_v7  ;;  %v1112_v36 = vand.u32 2147483647, %v5154_v5  ;;  %v5265_v5 = vld [vmem:[#allocation7 + $0x58] sm:$0xff]  ;;  %4034 = vmatmul.msk.f32.vlgmr.msra.gmra.mxu3 %vm145_vm0, %v5292_v11  ;;  %4036 = vmatmul.msk.f32.vlgmr.msra.gmra.mxu2 %vm145_vm0, %v5292_v11 }
 0x17d   :  { %1383 = vmatpush.msra.mxu1 %v4795_v35  ;;  %1427 = vmatpush.msra.mxu0 %v4812_v40  ;;  %v1107_v33 = vadd.f32 %v4220_v31, %v1106_v38  ;;  %v1115_v40 = vor.u32 1.1754944e-38, %v1114_v32  ;;  %v5302_v38 = vld [vmem:[#allocation5 + $0x48] sm:$0xff] }
 0x17e   :  { %v1120_v28 = vadd.f32 %v1119_v13, %v1118_v14  ;;  %vm1113_vm15 = vcmp.eq.f32.partialorder %v1112_v36, 8.507059e+37  ;;  %1882 = vmatpush.msra.mxu3 %v5302_v38 }
 0x17f   :  { %1384 = vmatpush.msra.mxu1 %v4810_v39  ;;  %1428 = vmatpush.msra.mxu0 %v4817_v41  ;;  %v1111_v39 = vsel %vm1110_vm14, %v4220_v31, %v1107_v33  ;;  %v5313_v33 = vld [vmem:[#allocation5 + $0x50] sm:$0xff] }
 0x180   :  { %4223 = vtanh.f32 %v1120_v28  ;;  %4015 = vmatmul.msk.f32.vlgmr.msrb.gmra.mxu1 %vm121_vm2, %v5190_v53  ;;  %4017 = vmatmul.msk.f32.vlgmr.msrb.gmra.mxu0 %vm121_vm2, %v5190_v53  ;;  %v5216_v35 = vsel %vm1123_vm11, %v1120_v28, %v649_v7  ;;  %v1116_v58 = vsel %vm1113_vm15, %v1115_v40, %v1111_v39  ;;  %v5310_v28 = vld [vmem:[#allocation5 + $0x40] sm:$0xff]  ;;  %vm1361_vm15 = vcmp.gt.s32.totalorder %v5017_v8, 2 }
 0x181   :  { %1466 = vmatpush.msrb.mxu1 %v4821_v42  ;;  %1507 = vmatpush.msrb.mxu0 %v4829_v44  ;;  %v5237_v44 = vld [vmem:[#allocation7 + $0x18] sm:$0xff] }
 0x182   :  { %1883 = vmatpush.msra.mxu3 %v5310_v28 }
 0x183   :  { %1467 = vmatpush.msrb.mxu1 %v4831_v45  ;;  %1508 = vmatpush.msrb.mxu0 %v4836_v46  ;;  %v5240_v45 = vld [vmem:[#allocation7 + $0x38] sm:$0xff]  ;;  %v5243_v46 = vld [vmem:[#allocation7 + $0x10] sm:$0xff] }
 0x184   :  { %4038 = vmatmul.msk.f32.vlgmr.msrb.gmra.mxu3 %vm145_vm0, %v5292_v11  ;;  %4040 = vmatmul.msk.f32.vlgmr.msrb.gmra.mxu2 %vm145_vm0, %v5292_v11 }
 0x185   :  { %1468 = vmatpush.msrb.mxu1 %v4839_v47  ;;  %1509 = vmatpush.msrb.mxu0 %v4846_v49  ;;  %v5246_v47 = vld [vmem:[#allocation7 + $0x30] sm:$0xff]  ;;  %v5249_v49 = vld [vmem:[#allocation7 + $0x8] sm:$0xff] }
 0x186   :  { %v4224_v41 = vpop.eup %4223 }
 0x187   :  { %v1122_v2 = vmul.f32 %v4224_v41, %v1116_v58  ;;  %1469 = vmatpush.msrb.mxu1 %v4849_v50  ;;  %1510 = vmatpush.msrb.mxu0 %v4853_v52  ;;  %v5252_v50 = vld [vmem:[#allocation7 + $0x28] sm:$0xff]  ;;  %v5255_v52 = vld [vmem:[#allocation7] sm:$0xff] }
 0x189   :  { %v5231_v42 = vsel %vm1123_vm11, %v1122_v2, %v5060_v34  ;;  %v5258_v34 = vld [vmem:[#allocation7 + $0x20] sm:$0xff] }
 0x18a   :  { %4022 = vmatmul.msk.f32.vlgmr.msra.gmra.mxu1 %vm121_vm2, %v5231_v42  ;;  %4024 = vmatmul.msk.f32.vlgmr.msra.gmra.mxu0 %vm121_vm2, %v5231_v42 }
 0x18b   :  { %1619 = vmatpush.msra.mxu1 %v5237_v44  ;;  %1663 = vmatpush.msra.mxu0 %v5240_v45 }
 0x18d   :  { %1620 = vmatpush.msra.mxu1 %v5243_v46  ;;  %1664 = vmatpush.msra.mxu0 %v5246_v47 }
 0x18f   :  { %1621 = vmatpush.msra.mxu1 %v5249_v49  ;;  %1665 = vmatpush.msra.mxu0 %v5252_v50 }
 0x191   :  { %1622 = vmatpush.msra.mxu1 %v5255_v52  ;;  %1666 = vmatpush.msra.mxu0 %v5258_v34 }
 0x192   :  { %4026 = vmatmul.msk.f32.vlgmr.msrb.gmra.mxu1 %vm121_vm2, %v5231_v42  ;;  %4028 = vmatmul.msk.f32.vlgmr.msrb.gmra.mxu0 %vm121_vm2, %v5231_v42 }
 0x193   :  { %1704 = vmatpush.msrb.mxu1 %v5265_v5  ;;  %1745 = vmatpush.msrb.mxu0 %v5268_v12 }
 0x195   :  { %1705 = vmatpush.msrb.mxu1 %v5271_v1  ;;  %1746 = vmatpush.msrb.mxu0 %v5274_v23 }
 0x197   :  { %1706 = vmatpush.msrb.mxu1 %v5277_v56  ;;  %1747 = vmatpush.msrb.mxu0 %v5280_v22 }
 0x199   :  { %1707 = vmatpush.msrb.mxu1 %v5283_v26  ;;  %1748 = vmatpush.msrb.mxu0 %v5286_v10 }
 0x1de   :  { %v1409_v14 = vpop.f32.mrf.mxu3 }
 0x1f5   :  { %v1148_v27 = vpop.f32.mrf.mxu1  ;;  %v1192_v19 = vpop.f32.mrf.mxu0 }
 0x1f6   :  { %v1172_v37 = vadd.f32 %v1171_v59, %v1148_v27  ;;  %v1213_v54 = vadd.f32 %v1212_v6, %v1192_v19 }
 0x1f8   :  { %v1174_v31 = vadd.f32 %v6285_v15, %v1172_v37  ;;  %v1215_v9 = vadd.f32 %v6286_v20, %v1213_v54  ;;  %v1450_v15 = vpop.f32.mrf.mxu2 }
 0x1fa   :  { %v4019_v60 = vmul.f32 -1.442695, %v1174_v31  ;;  %v4020_v25 = vmul.f32 -1.442695, %v1215_v9  ;;  %v5326_v31 = vld [vmem:[#allocation5 + $0x78] sm:$0xff] }
 0x1fc   :  { %4225 = vpow2.f32 %v4019_v60 }
 0x1fd   :  { %4227 = vpow2.f32 %v4020_v25  ;;  %v1233_v51 = vpop.f32.mrf.mxu1  ;;  %v1274_v61 = vpop.f32.mrf.mxu0  ;;  %v5335_v25 = vld [vmem:[#allocation5 + $0x60] sm:$0xff] }
 0x1fe   :  { %v1295_v16 = vadd.f32 %v1294_v43, %v1274_v61  ;;  %v1254_v13 = vadd.f32 %v1253_v29, %v1233_v51  ;;  %v5338_v29 = vld [vmem:[#allocation5 + $0x70] sm:$0xff] }
 0x200   :  { %v1297_v0 = vadd.f32 %v4902_v55, %v1295_v16  ;;  %v5305_v55 = vld [vmem:[#allocation5 + $0x58] sm:$0xff]  ;;  %v1256_v39 = vadd.f32 %v4933_v62, %v1254_v13  ;;  %v1532_v9 = vpop.f32.mrf.mxu2 }
 0x201   :  { %1923 = vmatpush.msra.mxu2 %v5305_v55 }
 0x202   :  { %v4226_v4 = vpop.eup %4225  ;;  %v4021_v48 = vmul.f32 -1.442695, %v1297_v0 }
 0x203   :  { %v4228_v7 = vpop.eup %4227  ;;  %v5294_v21 = vadd.f32 1.0, %v4226_v4  ;;  %1924 = vmatpush.msra.mxu2 %v5313_v33 }
 0x204   :  { %v5300_v20 = vadd.f32 1.0, %v4228_v7  ;;  %4229 = vpow2.f32 %v4021_v48 }
 0x205   :  { %4231 = vrcp.f32 %v5294_v21  ;;  %2005 = vmatpush.msrb.mxu2 %v5326_v31  ;;  %v1311_v60 = vand.u32 2147483647, %v5294_v21  ;;  %v1313_v16 = vand.u32 2147483648, %v5294_v21  ;;  %vm1307_vm4 = vweird.f32 %v5294_v21 }
 0x206   :  { %4233 = vrcp.f32 %v5300_v20  ;;  %v1332_v61 = vand.u32 2147483648, %v5300_v20  ;;  %v1330_v48 = vand.u32 2147483647, %v5300_v20  ;;  %vm1326_vm6 = vweird.f32 %v5300_v20 }
 0x207   :  { %v1386_v32 = vpop.f32.mrf.mxu1  ;;  %v1430_v36 = vpop.f32.mrf.mxu0  ;;  %4235 = vtanh.f32 %v1256_v39  ;;  %2006 = vmatpush.msrb.mxu2 %v5338_v29  ;;  %vm5355_vm8 = vcmp.eq.f32.partialorder %v1311_v60, 8.507059e+37 }
 0x208   :  { %v1410_v40 = vadd.f32 %v1409_v14, %v1386_v32  ;;  %v1451_v41 = vadd.f32 %v1450_v15, %v1430_v36  ;;  %v5344_v15 = vld [vmem:[#allocation2 + $0x20] sm:$0xff]  ;;  %vm1331_vm13 = vcmp.eq.f32.partialorder %v1330_v48, 8.507059e+37 }
 0x209   :  { %4045 = vmatmul.msk.f32.vlgmr.msra.gmra.mxu3 %vm145_vm0, %v5344_v15  ;;  %4047 = vmatmul.msk.f32.vlgmr.msra.gmra.mxu2 %vm145_vm0, %v5344_v15 }
 0x20a   :  { %v4230_v58 = vpop.eup %4229  ;;  %v1412_v2 = vadd.f32 %v6291_v3, %v1410_v40  ;;  %v1453_v6 = vadd.f32 %v4925_v57, %v1451_v41  ;;  %v5329_v57 = vld [vmem:[#allocation5 + $0x68] sm:$0xff] }
 0x20b   :  { %v4232_v59 = vpop.eup %4231  ;;  %v5319_v27 = vadd.f32 1.0, %v4230_v58  ;;  %1964 = vmatpush.msrb.mxu3 %v5329_v57  ;;  %v1314_v58 = vor.u32 1.1754944e-38, %v1313_v16 }
 0x20c   :  { %v4234_v19 = vpop.eup %4233  ;;  %v1303_v37 = vmul.f32 %v4232_v59, %v5294_v21  ;;  %v4030_v62 = vmul.f32 -1.442695, %v1412_v2  ;;  %v4031_v54 = vmul.f32 -1.442695, %v1453_v6  ;;  %vm1308_vm1 = vweird.f32 %v4232_v59  ;;  %v5411_v21 = vld [vmem:[#allocation5 + $0x28] sm:$0xff] }
 0x20d   :  { %v1322_v3 = vmul.f32 %v4234_v19, %v5300_v20  ;;  %4237 = vrcp.f32 %v5319_v27  ;;  %1965 = vmatpush.msrb.mxu3 %v5335_v25  ;;  %vm1327_vm3 = vweird.f32 %v4234_v19  ;;  %v4236_v14 = vpop.eup %4235  ;;  %vm5351_vm7 = vmor %vm1307_vm4, %vm1308_vm1  ;;  %v1333_v20 = vor.u32 1.1754944e-38, %v1332_v61 }
 0x20e   :  { %v1304_v43 = vsub.f32 1.0, %v1303_v37  ;;  %4239 = vpow2.f32 %v4030_v62  ;;  %vm5363_vm10 = vmor %vm1326_vm6, %vm1327_vm3  ;;  %v5371_v62 = vld [vmem:[#allocation5 + $0x8] sm:$0xff]  ;;  %v1350_v40 = vand.u32 2147483647, %v5319_v27  ;;  %v1352_v41 = vand.u32 2147483648, %v5319_v27 }
 0x20f   :  { %v1323_v51 = vsub.f32 1.0, %v1322_v3  ;;  %4241 = vpow2.f32 %v4031_v54  ;;  %v1512_v0 = vpop.f32.mrf.mxu0  ;;  %2115 = vmatpush.msra.mxu3 %v5371_v62  ;;  %v5374_v54 = vld [vmem:[#allocation5 + $0x18] sm:$0xff]  ;;  %v1471_v60 = vpop.f32.mrf.mxu1  ;;  %vm1346_vm1 = vweird.f32 %v5319_v27 }
 0x210   :  { %v1305_v4 = vmul.f32 %v4232_v59, %v1304_v43  ;;  %v1533_v7 = vadd.f32 %v1532_v9, %v1512_v0  ;;  %2156 = vmatpush.msra.mxu2 %v5374_v54  ;;  %vm1351_vm4 = vcmp.eq.f32.partialorder %v1350_v40, 8.507059e+37 }
 0x211   :  { %v1324_v13 = vmul.f32 %v4234_v19, %v1323_v51  ;;  %v1491_v51 = vpop.f32.mrf.mxu3  ;;  %4049 = vmatmul.msk.f32.vlgmr.msrb.gmra.mxu3 %vm145_vm0, %v5344_v15  ;;  %4051 = vmatmul.msk.f32.vlgmr.msrb.gmra.mxu2 %vm145_vm0, %v5344_v15 }
 0x212   :  { %v1306_v32 = vadd.f32 %v4232_v59, %v1305_v4  ;;  %v1535_v36 = vadd.f32 %v4951_v30, %v1533_v7  ;;  %v5385_v7 = vld [vmem:[#allocation5] sm:$0xff] }
 0x213   :  { %v5348_v39 = vpop.eup %4237  ;;  %v1325_v2 = vadd.f32 %v4234_v19, %v1324_v13  ;;  %2116 = vmatpush.msra.mxu3 %v5385_v7  ;;  %v5388_v13 = vld [vmem:[#allocation5 + $0x10] sm:$0xff] }
 0x214   :  { %v4240_v30 = vpop.eup %4239  ;;  %v1310_v6 = vsel %vm5351_vm7, %v4232_v59, %v1306_v32  ;;  %v1342_v37 = vmul.f32 %v5348_v39, %v5319_v27  ;;  %v4032_v61 = vmul.f32 -1.442695, %v1535_v36  ;;  %2157 = vmatpush.msra.mxu2 %v5388_v13  ;;  %v1492_v32 = vadd.f32 %v1491_v51, %v1471_v60 }
 0x215   :  { %v4242_v3 = vpop.eup %4241  ;;  %v1315_v9 = vsel %vm5355_vm8, %v1314_v58, %v1310_v6  ;;  %v1329_v43 = vsel %vm5363_vm10, %v4234_v19, %v1325_v2  ;;  %v5381_v59 = vadd.f32 1.0, %v4240_v30  ;;  %vm1347_vm14 = vweird.f32 %v5348_v39  ;;  %2197 = vmatpush.msrb.mxu3 %v5411_v21 }
 0x216   :  { %v1334_v16 = vsel %vm1331_vm13, %v1333_v20, %v1329_v43  ;;  %v1357_v0 = vmul.f32 %v4236_v14, %v1315_v9  ;;  %v1343_v4 = vsub.f32 1.0, %v1342_v37  ;;  %v5383_v48 = vadd.f32 1.0, %v4242_v3  ;;  %v5414_v20 = vld [vmem:[#allocation5 + $0x38] sm:$0xff]  ;;  %vm5419_vm3 = vmor %vm1346_vm1, %vm1347_vm14  ;;  %v5427_v3 = vld [vmem:[#allocation5 + $0x20] sm:$0xff] }
 0x217   :  { %v1356_v19 = vmul.f32 %v1334_v16, %v5165_v18  ;;  %4243 = vrcp.f32 %v5381_v59  ;;  %v1494_v2 = vadd.f32 %v4983_v63, %v1492_v32  ;;  %2238 = vmatpush.msrb.mxu2 %v5414_v20  ;;  %2198 = vmatpush.msrb.mxu3 %v5427_v3  ;;  %v5430_v9 = vld [vmem:[#allocation5 + $0x30] sm:$0xff]  ;;  %v1353_v51 = vor.u32 1.1754944e-38, %v1352_v41 }
 0x218   :  { %4245 = vrcp.f32 %v5383_v48  ;;  %v1344_v14 = vmul.f32 %v5348_v39, %v1343_v4  ;;  %v1549_v16 = vand.u32 2147483647, %v5381_v59  ;;  %v1551_v32 = vand.u32 2147483648, %v5381_v59 }
 0x219   :  { %v1358_v36 = vadd.f32 %v1357_v0, %v1356_v19  ;;  %4247 = vpow2.f32 %v4032_v61  ;;  %2239 = vmatpush.msrb.mxu2 %v5430_v9  ;;  %v1570_v19 = vand.u32 2147483648, %v5383_v48  ;;  %v1568_v41 = vand.u32 2147483647, %v5383_v48  ;;  %4056 = vmatmul.msk.f32.vlgmr.msra.gmra.mxu3 %vm145_vm0, %v5344_v15 }
 0x21a   :  { %v1345_v30 = vadd.f32 %v5348_v39, %v1344_v14  ;;  %4058 = vmatmul.msk.f32.vlgmr.msra.gmra.mxu2 %vm145_vm0, %v5344_v15  ;;  %vm1545_vm8 = vweird.f32 %v5381_v59  ;;  %2347 = vmatpush.msra.mxu3 %v5302_v38  ;;  %vm1564_vm10 = vweird.f32 %v5383_v48  ;;  %vm1550_vm1 = vcmp.eq.f32.partialorder %v1549_v16, 8.507059e+37  ;;  %v5470_v16 = vld [vmem:[#allocation7 + $0xb0] sm:$0xff] }
 0x21b   :  { %4249 = vtanh.f32 %v1358_v36  ;;  %v5402_v58 = vsel %vm1361_vm15, %v1358_v36, %v5165_v18  ;;  %2388 = vmatpush.msra.mxu2 %v5305_v55 }
 0x21c   :  { %v1349_v27 = vsel %vm5419_vm3, %v5348_v39, %v1345_v30  ;;  %4251 = vtanh.f32 %v1494_v2  ;;  %vm1569_vm3 = vcmp.eq.f32.partialorder %v1568_v41, 8.507059e+37  ;;  %2348 = vmatpush.msra.mxu3 %v5310_v28  ;;  %v5485_v41 = vld [vmem:[#allocation7 + $0x80] sm:$0xff] }
 0x21d   :  { %v4244_v18 = vpop.eup %4243  ;;  %v1354_v36 = vsel %vm1351_vm4, %v1353_v51, %v1349_v27  ;;  %2389 = vmatpush.msra.mxu2 %v5313_v33  ;;  %vm1599_vm4 = vcmp.gt.s32.totalorder %v5017_v8, 5 }
 0x21e   :  { %v4246_v63 = vpop.eup %4245  ;;  %v1541_v37 = vmul.f32 %v4244_v18, %v5381_v59  ;;  %vm1546_vm6 = vweird.f32 %v4244_v18 }
 0x21f   :  { %v4248_v43 = vpop.eup %4247  ;;  %v1560_v60 = vmul.f32 %v4246_v63, %v5383_v48  ;;  %vm1565_vm7 = vweird.f32 %v4246_v63  ;;  %vm1547_vm13 = vmor %vm1545_vm8, %vm1546_vm6  ;;  %v5462_v48 = vld [vmem:[#allocation7 + $0xb8] sm:$0xff] }
 0x220   :  { %v1542_v61 = vsub.f32 1.0, %v1541_v37  ;;  %v5435_v0 = vadd.f32 1.0, %v4248_v43  ;;  %v1552_v37 = vor.u32 1.1754944e-38, %v1551_v32  ;;  %vm1566_vm14 = vmor %vm1564_vm10, %vm1565_vm7 }
 0x221   :  { %v4250_v39 = vpop.eup %4249  ;;  %v1561_v4 = vsub.f32 1.0, %v1560_v60  ;;  %v5459_v60 = vld [vmem:[#allocation7 + $0x98] sm:$0xff]  ;;  %4060 = vmatmul.msk.f32.vlgmr.msrb.gmra.mxu3 %vm145_vm0, %v5344_v15 }
 0x222   :  { %v1543_v14 = vmul.f32 %v4244_v18, %v1542_v61  ;;  %4253 = vrcp.f32 %v5435_v0  ;;  %v1360_v30 = vmul.f32 %v4250_v39, %v1354_v36  ;;  %v4252_v59 = vpop.eup %4251  ;;  %v5475_v36 = vld [vmem:[#allocation7 + $0x88] sm:$0xff]  ;;  %4062 = vmatmul.msk.f32.vlgmr.msrb.gmra.mxu2 %vm145_vm0, %v5344_v15  ;;  %vm1584_vm7 = vweird.f32 %v5435_v0  ;;  %2429 = vmatpush.msrb.mxu3 %v5329_v57 }
 0x223   :  { %v1562_v40 = vmul.f32 %v4246_v63, %v1561_v4  ;;  %2470 = vmatpush.msrb.mxu2 %v5326_v31 }
 0x224   :  { %v1544_v2 = vadd.f32 %v4244_v18, %v1543_v14  ;;  %v5449_v6 = vsel %vm1361_vm15, %v1360_v30, %v5190_v53  ;;  %v1571_v53 = vor.u32 1.1754944e-38, %v1570_v19  ;;  %v5478_v14 = vld [vmem:[#allocation7 + $0xa8] sm:$0xff]  ;;  %2430 = vmatpush.msrb.mxu3 %v5335_v25 }
 0x225   :  { %v1563_v27 = vadd.f32 %v4246_v63, %v1562_v40  ;;  %4033 = vmatmul.msk.f32.vlgmr.msra.gmra.mxu1 %vm121_vm2, %v5449_v6  ;;  %4035 = vmatmul.msk.f32.vlgmr.msra.gmra.mxu0 %vm121_vm2, %v5449_v6 }
 0x226   :  { %v1548_v43 = vsel %vm1547_vm13, %v4244_v18, %v1544_v2  ;;  %1857 = vmatpush.msra.mxu1 %v5459_v60  ;;  %1901 = vmatpush.msra.mxu0 %v5462_v48  ;;  %v5467_v18 = vld [vmem:[#allocation7 + $0x90] sm:$0xff]  ;;  %v5488_v2 = vld [vmem:[#allocation7 + $0xa0] sm:$0xff] }
 0x227   :  { %v1553_v51 = vsel %vm1550_vm1, %v1552_v37, %v1548_v43  ;;  %v1567_v61 = vsel %vm1566_vm14, %v4246_v63, %v1563_v27  ;;  %v1590_v37 = vand.u32 2147483648, %v5435_v0  ;;  %v5506_v43 = vld [vmem:[#allocation7 + $0xf8] sm:$0xff]  ;;  %2471 = vmatpush.msrb.mxu2 %v5338_v29 }
 0x228   :  { %v4254_v39 = vpop.eup %4253  ;;  %v1572_v4 = vsel %vm1569_vm3, %v1571_v53, %v1567_v61  ;;  %v1595_v19 = vmul.f32 %v4252_v59, %v1553_v51  ;;  %1858 = vmatpush.msra.mxu1 %v5467_v18  ;;  %1902 = vmatpush.msra.mxu0 %v5470_v16  ;;  %v1588_v59 = vand.u32 2147483647, %v5435_v0  ;;  %v5503_v53 = vld [vmem:[#allocation7 + $0xd8] sm:$0xff]  ;;  %v5516_v61 = vld [vmem:[#allocation7 + $0xd0] sm:$0xff] }
 0x229   :  { %v1594_v32 = vmul.f32 %v1572_v4, %v5216_v35  ;;  %v1580_v63 = vmul.f32 %v4254_v39, %v5435_v0  ;;  %vm1585_vm6 = vweird.f32 %v4254_v39  ;;  %v5519_v4 = vld [vmem:[#allocation7 + $0xf0] sm:$0xff]  ;;  %v1591_v0 = vor.u32 1.1754944e-38, %v1590_v37  ;;  %4067 = vmatmul.msk.f32.vlgmr.msra.gmra.mxu3 %vm145_vm0, %v5292_v11  ;;  %v5536_v37 = vld [vmem:[#allocation7 + $0xc0] sm:$0xff] }
 0x22a   :  { %1859 = vmatpush.msra.mxu1 %v5475_v36  ;;  %1903 = vmatpush.msra.mxu0 %v5478_v14  ;;  %vm5512_vm8 = vmor %vm1584_vm7, %vm1585_vm6  ;;  %vm1589_vm10 = vcmp.eq.f32.partialorder %v1588_v59, 8.507059e+37 }
 0x22b   :  { %v1596_v30 = vadd.f32 %v1595_v19, %v1594_v32  ;;  %v1581_v40 = vsub.f32 1.0, %v1580_v63  ;;  %v5526_v32 = vld [vmem:[#allocation7 + $0xc8] sm:$0xff]  ;;  %4069 = vmatmul.msk.f32.vlgmr.msra.gmra.mxu2 %vm145_vm0, %v5292_v11  ;;  %2579 = vmatpush.msra.mxu3 %v5371_v62 }
 0x22c   :  { %1860 = vmatpush.msra.mxu1 %v5485_v41  ;;  %1904 = vmatpush.msra.mxu0 %v5488_v2  ;;  %v5529_v63 = vld [vmem:[#allocation7 + $0xe8] sm:$0xff] }
 0x22d   :  { %4255 = vtanh.f32 %v1596_v30  ;;  %4037 = vmatmul.msk.f32.vlgmr.msrb.gmra.mxu1 %vm121_vm2, %v5449_v6  ;;  %4039 = vmatmul.msk.f32.vlgmr.msrb.gmra.mxu0 %vm121_vm2, %v5449_v6  ;;  %v1582_v15 = vmul.f32 %v4254_v39, %v1581_v40  ;;  %v5500_v27 = vsel %vm1599_vm4, %v1596_v30, %v5216_v35 }
 0x22e   :  { %1942 = vmatpush.msrb.mxu1 %v5503_v53  ;;  %1983 = vmatpush.msrb.mxu0 %v5506_v43 }
 0x22f   :  { %v1583_v51 = vadd.f32 %v4254_v39, %v1582_v15  ;;  %v5539_v15 = vld [vmem:[#allocation7 + $0xe0] sm:$0xff]  ;;  %2620 = vmatpush.msra.mxu2 %v5374_v54  ;;  %2580 = vmatpush.msra.mxu3 %v5385_v7 }
 0x230   :  { %1943 = vmatpush.msrb.mxu1 %v5516_v61  ;;  %1984 = vmatpush.msrb.mxu0 %v5519_v4 }
 0x231   :  { %v1587_v19 = vsel %vm5512_vm8, %v4254_v39, %v1583_v51  ;;  %2621 = vmatpush.msra.mxu2 %v5388_v13  ;;  %4071 = vmatmul.msk.f32.vlgmr.msrb.gmra.mxu3 %vm145_vm0, %v5292_v11 }
 0x232   :  { %1944 = vmatpush.msrb.mxu1 %v5526_v32  ;;  %1985 = vmatpush.msrb.mxu0 %v5529_v63  ;;  %v1592_v40 = vsel %vm1589_vm10, %v1591_v0, %v1587_v19  ;;  %v5682_v19 = vld [vmem:[%s6228_s4 + $0x4] ss:$0 sm:$0xff] }
 0x233   :  { %v4256_v30 = vpop.eup %4255  ;;  %4073 = vmatmul.msk.f32.vlgmr.msrb.gmra.mxu2 %vm145_vm0, %v5292_v11  ;;  %2661 = vmatpush.msrb.mxu3 %v5411_v21  ;;  %6317 = vst [vmem:[#allocation21_spill] sm:$0xff] %v5682_v19 }
 0x234   :  { %v1598_v39 = vmul.f32 %v4256_v30, %v1592_v40  ;;  %1945 = vmatpush.msrb.mxu1 %v5536_v37  ;;  %1986 = vmatpush.msrb.mxu0 %v5539_v15  ;;  %v5688_v30 = vld [vmem:[%s6228_s4 + $0x5] ss:$0 sm:$0xff] }
 0x235   :  { %2702 = vmatpush.msrb.mxu2 %v5414_v20  ;;  %2662 = vmatpush.msrb.mxu3 %v5427_v3  ;;  %6318 = vst [vmem:[#allocation22_spill] sm:$0xff] %v5688_v30 }
 0x236   :  { %v5547_v59 = vsel %vm1599_vm4, %v1598_v39, %v5231_v42  ;;  %v4467_v42 = vld [vmem:[#allocation2 + $0x38] sm:$0xff] }
 0x237   :  { %4044 = vmatmul.msk.f32.vlgmr.msra.gmra.mxu1 %vm121_vm2, %v5547_v59  ;;  %4046 = vmatmul.msk.f32.vlgmr.msra.gmra.mxu0 %vm121_vm2, %v5547_v59 }
 0x238   :  { %2093 = vmatpush.msra.mxu1 %v5237_v44  ;;  %2134 = vmatpush.msra.mxu0 %v5240_v45  ;;  %v4468_v44 = vld [vmem:[#allocation2] sm:$0xff]  ;;  %v1688_v45 = vpop.f32.mrf.mxu2 }
 0x239   :  { %2703 = vmatpush.msrb.mxu2 %v5430_v9  ;;  %4078 = vmatmul.msk.f32.vlgmr.msra.gmra.mxu3 %vm145_vm0, %v5119_v17 }
 0x23a   :  { %2094 = vmatpush.msra.mxu1 %v5243_v46  ;;  %2135 = vmatpush.msra.mxu0 %v5246_v47  ;;  %v1647_v46 = vpop.f32.mrf.mxu3 }
 0x23b   :  { %4080 = vmatmul.msk.f32.vlgmr.msra.gmra.mxu2 %vm145_vm0, %v5119_v17  ;;  %2811 = vmatpush.msra.mxu3 %v5302_v38 }
 0x23c   :  { %2095 = vmatpush.msra.mxu1 %v5249_v49  ;;  %2136 = vmatpush.msra.mxu0 %v5252_v50 }
 0x23d   :  { %2852 = vmatpush.msra.mxu2 %v5305_v55  ;;  %2812 = vmatpush.msra.mxu3 %v5310_v28 }
 0x23e   :  { %2096 = vmatpush.msra.mxu1 %v5255_v52  ;;  %2137 = vmatpush.msra.mxu0 %v5258_v34  ;;  %v5658_v34 = vld [vmem:[%s6228_s4] ss:$0 sm:$0xff] }
 0x23f   :  { %4048 = vmatmul.msk.f32.vlgmr.msrb.gmra.mxu1 %vm121_vm2, %v5547_v59  ;;  %4050 = vmatmul.msk.f32.vlgmr.msrb.gmra.mxu0 %vm121_vm2, %v5547_v59  ;;  %6313 = vst [vmem:[#allocation23_spill] sm:$0xff] %v5658_v34 }
 0x240   :  { %2175 = vmatpush.msrb.mxu1 %v5265_v5  ;;  %2216 = vmatpush.msrb.mxu0 %v5268_v12  ;;  %v5664_v12 = vld [vmem:[%s6228_s4 + $0x1] ss:$0 sm:$0xff] }
 0x241   :  { %2853 = vmatpush.msra.mxu2 %v5313_v33  ;;  %4082 = vmatmul.msk.f32.vlgmr.msrb.gmra.mxu3 %vm145_vm0, %v5119_v17  ;;  %6314 = vst [vmem:[#allocation29_spill] sm:$0xff] %v5664_v12 }
 0x242   :  { %2176 = vmatpush.msrb.mxu1 %v5271_v1  ;;  %2217 = vmatpush.msrb.mxu0 %v5274_v23  ;;  %v1770_v23 = vpop.f32.mrf.mxu2 }
 0x243   :  { %4084 = vmatmul.msk.f32.vlgmr.msrb.gmra.mxu2 %vm145_vm0, %v5119_v17  ;;  %2893 = vmatpush.msrb.mxu3 %v5329_v57  ;;  %v4465_v17 = vld [vmem:[#allocation2 + $0x30] sm:$0xff] }
 0x244   :  { %2177 = vmatpush.msrb.mxu1 %v5277_v56  ;;  %2218 = vmatpush.msrb.mxu0 %v5280_v22 }
 0x245   :  { %2934 = vmatpush.msrb.mxu2 %v5326_v31  ;;  %2894 = vmatpush.msrb.mxu3 %v5335_v25 }
 0x246   :  { %2178 = vmatpush.msrb.mxu1 %v5283_v26  ;;  %2219 = vmatpush.msrb.mxu0 %v5286_v10  ;;  %v1729_v26 = vpop.f32.mrf.mxu3 }
 0x247   :  { %2935 = vmatpush.msrb.mxu2 %v5338_v29 }
 0x249   :  { %4089 = vmatmul.msk.f32.vlgmr.msra.gmra.mxu3 %vm145_vm0, %v5091_v24 }
 0x24a   :  { %3043 = vmatpush.msra.mxu3 %v5371_v62 }
 0x24b   :  { %4091 = vmatmul.msk.f32.vlgmr.msra.gmra.mxu2 %vm145_vm0, %v5091_v24 }
 0x24c   :  { %3084 = vmatpush.msra.mxu2 %v5374_v54  ;;  %3044 = vmatpush.msra.mxu3 %v5385_v7 }
 0x24e   :  { %3085 = vmatpush.msra.mxu2 %v5388_v13 }
 0x251   :  { %4093 = vmatmul.msk.f32.vlgmr.msrb.gmra.mxu3 %vm145_vm0, %v5091_v24 }
 0x252   :  { %3125 = vmatpush.msrb.mxu3 %v5411_v21 }
 0x253   :  { %4095 = vmatmul.msk.f32.vlgmr.msrb.gmra.mxu2 %vm145_vm0, %v5091_v24  ;;  %v4466_v24 = vld [vmem:[#allocation2 + $0x8] sm:$0xff] }
 0x254   :  { %3166 = vmatpush.msrb.mxu2 %v5414_v20  ;;  %3126 = vmatpush.msrb.mxu3 %v5427_v3 }
 0x256   :  { %3167 = vmatpush.msrb.mxu2 %v5430_v9 }
 0x259   :  { %4100 = vmatmul.msk.f32.vlgmr.msra.gmra.mxu3 %vm145_vm0, %v4465_v17 }
 0x25a   :  { %3275 = vmatpush.msra.mxu3 %v5302_v38 }
 0x25b   :  { %4102 = vmatmul.msk.f32.vlgmr.msra.gmra.mxu2 %vm145_vm0, %v4465_v17 }
 0x25c   :  { %3316 = vmatpush.msra.mxu2 %v5305_v55  ;;  %3276 = vmatpush.msra.mxu3 %v5310_v28 }
 0x25e   :  { %3317 = vmatpush.msra.mxu2 %v5313_v33 }
 0x261   :  { %4104 = vmatmul.msk.f32.vlgmr.msrb.gmra.mxu3 %vm145_vm0, %v4465_v17 }
 0x262   :  { %3357 = vmatpush.msrb.mxu3 %v5329_v57 }
 0x263   :  { %4106 = vmatmul.msk.f32.vlgmr.msrb.gmra.mxu2 %vm145_vm0, %v4465_v17 }
 0x264   :  { %3398 = vmatpush.msrb.mxu2 %v5326_v31  ;;  %3358 = vmatpush.msrb.mxu3 %v5335_v25 }
 0x266   :  { %3399 = vmatpush.msrb.mxu2 %v5338_v29 }
 0x269   :  { %4111 = vmatmul.msk.f32.vlgmr.msra.gmra.mxu3 %vm145_vm0, %v4466_v24 }
 0x26a   :  { %3507 = vmatpush.msra.mxu3 %v5371_v62 }
 0x26b   :  { %4113 = vmatmul.msk.f32.vlgmr.msra.gmra.mxu2 %vm145_vm0, %v4466_v24 }
 0x26c   :  { %3548 = vmatpush.msra.mxu2 %v5374_v54  ;;  %3508 = vmatpush.msra.mxu3 %v5385_v7 }
 0x26e   :  { %3549 = vmatpush.msra.mxu2 %v5388_v13 }
 0x271   :  { %4115 = vmatmul.msk.f32.vlgmr.msrb.gmra.mxu3 %vm145_vm0, %v4466_v24 }
 0x272   :  { %3589 = vmatpush.msrb.mxu3 %v5411_v21 }
 0x273   :  { %4117 = vmatmul.msk.f32.vlgmr.msrb.gmra.mxu2 %vm145_vm0, %v4466_v24 }
 0x274   :  { %3630 = vmatpush.msrb.mxu2 %v5414_v20  ;;  %3590 = vmatpush.msrb.mxu3 %v5427_v3  ;;  %v5676_v20 = vld [vmem:[%s6228_s4 + $0x2] ss:$0 sm:$0xff] }
 0x275   :  { %6316 = vst [vmem:[#allocation20_spill] sm:$0xff] %v5676_v20 }
 0x276   :  { %3631 = vmatpush.msrb.mxu2 %v5430_v9 }
 0x279   :  { %4122 = vmatmul.msk.f32.vlgmr.msra.gmra.mxu3 %vm145_vm0, %v4467_v42 }
 0x27a   :  { %3738 = vmatpush.msra.mxu3 %v5302_v38 }
 0x27b   :  { %4124 = vmatmul.msk.f32.vlgmr.msra.gmra.mxu2 %vm145_vm0, %v4467_v42 }
 0x27c   :  { %3779 = vmatpush.msra.mxu2 %v5305_v55  ;;  %3739 = vmatpush.msra.mxu3 %v5310_v28  ;;  %v5670_v55 = vld [vmem:[%s6228_s4 + $0x3] ss:$0 sm:$0xff] }
 0x27d   :  { %6315 = vst [vmem:[#allocation30_spill] sm:$0xff] %v5670_v55 }
 0x27e   :  { %3780 = vmatpush.msra.mxu2 %v5313_v33 }
 0x281   :  { %4126 = vmatmul.msk.f32.vlgmr.msrb.gmra.mxu3 %vm145_vm0, %v4467_v42 }
 0x282   :  { %3820 = vmatpush.msrb.mxu3 %v5329_v57 }
 0x283   :  { %4128 = vmatmul.msk.f32.vlgmr.msrb.gmra.mxu2 %vm145_vm0, %v4467_v42 }
 0x284   :  { %3861 = vmatpush.msrb.mxu2 %v5326_v31  ;;  %3821 = vmatpush.msrb.mxu3 %v5335_v25 }
 0x286   :  { %3862 = vmatpush.msrb.mxu2 %v5338_v29 }
 0x289   :  { %4133 = vmatmul.msk.f32.vlgmr.msra.gmra.mxu3 %vm145_vm0, %v4468_v44 }
 0x28b   :  { %4135 = vmatmul.msk.f32.vlgmr.msra.gmra.mxu2 %vm145_vm0, %v4468_v44 }
 0x28c   :  { %v1926_v29 = vpop.f32.mrf.mxu2  ;;  %v1885_v7 = vpop.f32.mrf.mxu3 }
 0x291   :  { %4137 = vmatmul.msk.f32.vlgmr.msrb.gmra.mxu3 %vm145_vm0, %v4468_v44 }
 0x293   :  { %4139 = vmatmul.msk.f32.vlgmr.msrb.gmra.mxu2 %vm145_vm0, %v4468_v44 }
 0x2a2   :  { %v1624_v47 = vpop.f32.mrf.mxu1  ;;  %v1668_v49 = vpop.f32.mrf.mxu0 }
 0x2a3   :  { %v1648_v50 = vadd.f32 %v1647_v46, %v1624_v47  ;;  %v1689_v52 = vadd.f32 %v1688_v45, %v1668_v49  ;;  %v2008_v47 = vpop.f32.mrf.mxu2 }
 0x2a5   :  { %v1650_v5 = vadd.f32 %v5658_v34, %v1648_v50  ;;  %v1691_v1 = vadd.f32 %v5664_v12, %v1689_v52 }
 0x2a7   :  { %v4041_v56 = vmul.f32 -1.442695, %v1650_v5  ;;  %v4042_v22 = vmul.f32 -1.442695, %v1691_v1 }
 0x2a9   :  { %4257 = vpow2.f32 %v4041_v56 }
 0x2aa   :  { %4259 = vpow2.f32 %v4042_v22  ;;  %v1709_v10 = vpop.f32.mrf.mxu1  ;;  %v1750_v11 = vpop.f32.mrf.mxu0 }
 0x2ab   :  { %v1771_v38 = vadd.f32 %v1770_v23, %v1750_v11  ;;  %v1730_v54 = vadd.f32 %v1729_v26, %v1709_v10 }
 0x2ad   :  { %v1773_v28 = vadd.f32 %v5670_v55, %v1771_v38  ;;  %v1732_v3 = vadd.f32 %v5676_v20, %v1730_v54 }
 0x2af   :  { %v4258_v33 = vpop.eup %4257  ;;  %v4043_v31 = vmul.f32 -1.442695, %v1773_v28  ;;  %v5697_v28 = vld [vmem:[%s6228_s4 + $0x7] ss:$0 sm:$0xff] }
 0x2b0   :  { %v4260_v57 = vpop.eup %4259  ;;  %v1777_v25 = vadd.f32 1.0, %v4258_v33  ;;  %6319 = vst [vmem:[#allocation24_spill] sm:$0xff] %v5697_v28 }
 0x2b1   :  { %v1796_v62 = vadd.f32 1.0, %v4260_v57  ;;  %4261 = vpow2.f32 %v4043_v31 }
 0x2b2   :  { %4263 = vrcp.f32 %v1777_v25  ;;  %v1787_v50 = vand.u32 2147483647, %v1777_v25  ;;  %v1789_v1 = vand.u32 2147483648, %v1777_v25  ;;  %vm1783_vm14 = vweird.f32 %v1777_v25 }
 0x2b3   :  { %4265 = vrcp.f32 %v1796_v62  ;;  %v1808_v5 = vand.u32 2147483648, %v1796_v62  ;;  %v1806_v22 = vand.u32 2147483647, %v1796_v62  ;;  %vm1802_vm1 = vweird.f32 %v1796_v62 }
 0x2b4   :  { %v1862_v13 = vpop.f32.mrf.mxu1  ;;  %v1906_v21 = vpop.f32.mrf.mxu0  ;;  %4267 = vtanh.f32 %v1732_v3  ;;  %vm1788_vm6 = vcmp.eq.f32.partialorder %v1787_v50, 8.507059e+37  ;;  %v1790_v57 = vor.u32 1.1754944e-38, %v1789_v1 }
 0x2b5   :  { %v1886_v9 = vadd.f32 %v1885_v7, %v1862_v13  ;;  %v1927_v51 = vadd.f32 %v1926_v29, %v1906_v21  ;;  %v1809_v7 = vor.u32 1.1754944e-38, %v1808_v5  ;;  %vm1807_vm8 = vcmp.eq.f32.partialorder %v1806_v22, 8.507059e+37  ;;  %v5716_v5 = vld [vmem:[%s6228_s4 + $0x6] ss:$0 sm:$0xff] }
 0x2b7   :  { %v4262_v35 = vpop.eup %4261  ;;  %v1888_v0 = vadd.f32 %v5682_v19, %v1886_v9  ;;  %v1929_v40 = vadd.f32 %v5688_v30, %v1927_v51 }
 0x2b8   :  { %v4264_v39 = vpop.eup %4263  ;;  %v5691_v17 = vadd.f32 1.0, %v4262_v35 }
 0x2b9   :  { %v4266_v24 = vpop.eup %4265  ;;  %v1779_v42 = vmul.f32 %v4264_v39, %v1777_v25  ;;  %v4052_v44 = vmul.f32 -1.442695, %v1888_v0  ;;  %v4053_v45 = vmul.f32 -1.442695, %v1929_v40  ;;  %vm1784_vm0 = vweird.f32 %v4264_v39  ;;  %v1967_v0 = vpop.f32.mrf.mxu3 }
 0x2ba   :  { %v1798_v46 = vmul.f32 %v4266_v24, %v1796_v62  ;;  %4269 = vrcp.f32 %v5691_v17  ;;  %vm1803_vm13 = vweird.f32 %v4266_v24  ;;  %v4268_v11 = vpop.eup %4267  ;;  %vm1785_vm3 = vmor %vm1783_vm14, %vm1784_vm0  ;;  %vm1837_vm0 = vcmp.gt.s32.totalorder %v5017_v8, 3 }
 0x2bb   :  { %v1780_v49 = vsub.f32 1.0, %v1779_v42  ;;  %4271 = vpow2.f32 %v4052_v44  ;;  %vm1804_vm7 = vmor %vm1802_vm1, %vm1803_vm13  ;;  %v1828_v50 = vand.u32 2147483648, %v5691_v17  ;;  %vm1822_vm13 = vweird.f32 %v5691_v17 }
 0x2bc   :  { %v1799_v52 = vsub.f32 1.0, %v1798_v46  ;;  %4273 = vpow2.f32 %v4053_v45  ;;  %v1988_v23 = vpop.f32.mrf.mxu0  ;;  %v1947_v35 = vpop.f32.mrf.mxu1 }
 0x2bd   :  { %v1781_v56 = vmul.f32 %v4264_v39, %v1780_v49  ;;  %v2009_v26 = vadd.f32 %v2008_v47, %v1988_v23 }
 0x2be   :  { %v1800_v10 = vmul.f32 %v4266_v24, %v1799_v52 }
 0x2bf   :  { %v1782_v38 = vadd.f32 %v4264_v39, %v1781_v56  ;;  %v2011_v33 = vadd.f32 %v5697_v28, %v2009_v26 }
 0x2c0   :  { %v4270_v31 = vpop.eup %4269  ;;  %v1801_v29 = vadd.f32 %v4266_v24, %v1800_v10 }
 0x2c1   :  { %v4272_v54 = vpop.eup %4271  ;;  %v1786_v13 = vsel %vm1785_vm3, %v4264_v39, %v1782_v38  ;;  %v1818_v25 = vmul.f32 %v4270_v31, %v5691_v17  ;;  %v4054_v40 = vmul.f32 -1.442695, %v2011_v33  ;;  %v1968_v39 = vadd.f32 %v1967_v0, %v1947_v35 }
 0x2c2   :  { %v4274_v21 = vpop.eup %4273  ;;  %v1791_v3 = vsel %vm1788_vm6, %v1790_v57, %v1786_v13  ;;  %v1805_v9 = vsel %vm1804_vm7, %v4266_v24, %v1801_v29  ;;  %v5701_v51 = vadd.f32 1.0, %v4272_v54  ;;  %vm1823_vm10 = vweird.f32 %v4270_v31 }
 0x2c3   :  { %v1810_v62 = vsel %vm1807_vm8, %v1809_v7, %v1805_v9  ;;  %v1833_v42 = vmul.f32 %v4268_v11, %v1791_v3  ;;  %v1819_v44 = vsub.f32 1.0, %v1818_v25  ;;  %v2034_v45 = vadd.f32 1.0, %v4274_v21  ;;  %vm5720_vm14 = vmor %vm1822_vm13, %vm1823_vm10 }
 0x2c4   :  { %v1832_v46 = vmul.f32 %v1810_v62, %v5402_v58  ;;  %4275 = vrcp.f32 %v5701_v51  ;;  %v1826_v24 = vand.u32 2147483647, %v5691_v17  ;;  %v1970_v1 = vadd.f32 %v5716_v5, %v1968_v39 }
 0x2c5   :  { %4277 = vrcp.f32 %v2034_v45  ;;  %v1820_v49 = vmul.f32 %v4270_v31, %v1819_v44  ;;  %v1829_v33 = vor.u32 1.1754944e-38, %v1828_v50  ;;  %v2025_v29 = vand.u32 2147483647, %v5701_v51 }
 0x2c6   :  { %v1834_v47 = vadd.f32 %v1833_v42, %v1832_v46  ;;  %4279 = vpow2.f32 %v4054_v40  ;;  %vm1827_vm1 = vcmp.eq.f32.partialorder %v1826_v24, 8.507059e+37  ;;  %v2046_v13 = vand.u32 2147483648, %v2034_v45 }
 0x2c7   :  { %v1821_v23 = vadd.f32 %v4270_v31, %v1820_v49  ;;  %v2027_v25 = vand.u32 2147483648, %v5701_v51  ;;  %v2044_v35 = vand.u32 2147483647, %v2034_v45  ;;  %vm2021_vm7 = vweird.f32 %v5701_v51 }
 0x2c8   :  { %4281 = vtanh.f32 %v1834_v47  ;;  %v5711_v52 = vsel %vm1837_vm0, %v1834_v47, %v5402_v58  ;;  %vm2040_vm8 = vweird.f32 %v2034_v45  ;;  %v2047_v46 = vor.u32 1.1754944e-38, %v2046_v13  ;;  %v5794_v13 = vld [vmem:[#allocation7 + $0x8] sm:$0xff] }
 0x2c9   :  { %v1825_v58 = vsel %vm5720_vm14, %v4270_v31, %v1821_v23  ;;  %4283 = vtanh.f32 %v1970_v1  ;;  %v2028_v62 = vor.u32 1.1754944e-38, %v2027_v25  ;;  %vm2026_vm14 = vcmp.eq.f32.partialorder %v2025_v29, 8.507059e+37  ;;  %v5797_v25 = vld [vmem:[#allocation7 + $0x28] sm:$0xff] }
 0x2ca   :  { %v4276_v56 = vpop.eup %4275  ;;  %v1830_v21 = vsel %vm1827_vm1, %v1829_v33, %v1825_v58  ;;  %vm2045_vm1 = vcmp.eq.f32.partialorder %v2044_v35, 8.507059e+37  ;;  %v5816_v35 = vld [vmem:[#allocation7 + $0x50] sm:$0xff] }
 0x2cb   :  { %v4278_v26 = vpop.eup %4277  ;;  %v2017_v10 = vmul.f32 %v4276_v56, %v5701_v51  ;;  %vm2022_vm3 = vweird.f32 %v4276_v56 }
 0x2cc   :  { %v4280_v11 = vpop.eup %4279  ;;  %v2036_v38 = vmul.f32 %v4278_v26, %v2034_v45  ;;  %vm2041_vm6 = vweird.f32 %v4278_v26  ;;  %vm2023_vm10 = vmor %vm2021_vm7, %vm2022_vm3  ;;  %vm2075_vm3 = vcmp.gt.s32.totalorder %v5017_v8, 4 }
 0x2cd   :  { %v2018_v57 = vsub.f32 1.0, %v2017_v10  ;;  %v5728_v17 = vadd.f32 1.0, %v4280_v11  ;;  %vm2042_vm13 = vmor %vm2040_vm8, %vm2041_vm6 }
 0x2ce   :  { %v4282_v54 = vpop.eup %4281  ;;  %v2037_v7 = vsub.f32 1.0, %v2036_v38 }
 0x2cf   :  { %v2019_v3 = vmul.f32 %v4276_v56, %v2018_v57  ;;  %4285 = vrcp.f32 %v5728_v17  ;;  %v1836_v31 = vmul.f32 %v4282_v54, %v1830_v21  ;;  %v4284_v44 = vpop.eup %4283  ;;  %v2064_v10 = vand.u32 2147483647, %v5728_v17  ;;  %v5785_v54 = vld [vmem:[#allocation7 + $0x38] sm:$0xff]  ;;  %v5800_v21 = vld [vmem:[#allocation7] sm:$0xff] }
 0x2d0   :  { %v2038_v9 = vmul.f32 %v4278_v26, %v2037_v7  ;;  %vm2060_vm7 = vweird.f32 %v5728_v17  ;;  %v5788_v7 = vld [vmem:[#allocation7 + $0x10] sm:$0xff] }
 0x2d1   :  { %v2020_v0 = vadd.f32 %v4276_v56, %v2019_v3  ;;  %v5736_v40 = vsel %vm1837_vm0, %v1836_v31, %v5449_v6  ;;  %v5803_v3 = vld [vmem:[#allocation7 + $0x20] sm:$0xff]  ;;  %v5810_v31 = vld [vmem:[#allocation7 + $0x58] sm:$0xff] }
 0x2d2   :  { %v2039_v42 = vadd.f32 %v4278_v26, %v2038_v9  ;;  %4055 = vmatmul.msk.f32.vlgmr.msra.gmra.mxu1 %vm121_vm2, %v5736_v40  ;;  %4057 = vmatmul.msk.f32.vlgmr.msra.gmra.mxu0 %vm121_vm2, %v5736_v40  ;;  %v5813_v9 = vld [vmem:[#allocation7 + $0x78] sm:$0xff] }
 0x2d3   :  { %v2024_v39 = vsel %vm2023_vm10, %v4276_v56, %v2020_v0  ;;  %2325 = vmatpush.msra.mxu1 %v5459_v60  ;;  %2366 = vmatpush.msra.mxu0 %v5462_v48  ;;  %v2066_v56 = vand.u32 2147483648, %v5728_v17  ;;  %vm2065_vm10 = vcmp.eq.f32.partialorder %v2064_v10, 8.507059e+37  ;;  %v5819_v0 = vld [vmem:[#allocation7 + $0x70] sm:$0xff] }
 0x2d4   :  { %v2029_v6 = vsel %vm2026_vm14, %v2028_v62, %v2024_v39  ;;  %v2043_v51 = vsel %vm2042_vm13, %v4278_v26, %v2039_v42  ;;  %v5822_v62 = vld [vmem:[#allocation7 + $0x48] sm:$0xff]  ;;  %v2159_v39 = vpop.f32.mrf.mxu2 }
 0x2d5   :  { %v4286_v45 = vpop.eup %4285  ;;  %v2048_v47 = vsel %vm2045_vm1, %v2047_v46, %v2043_v51  ;;  %v2071_v49 = vmul.f32 %v4284_v44, %v2029_v6  ;;  %2326 = vmatpush.msra.mxu1 %v5467_v18  ;;  %2367 = vmatpush.msra.mxu0 %v5470_v16  ;;  %v2067_v38 = vor.u32 1.1754944e-38, %v2066_v56  ;;  %v5825_v42 = vld [vmem:[#allocation7 + $0x68] sm:$0xff]  ;;  %v5828_v44 = vld [vmem:[#allocation7 + $0x40] sm:$0xff]  ;;  %v2118_v6 = vpop.f32.mrf.mxu3 }
 0x2d6   :  { %v2070_v24 = vmul.f32 %v2048_v47, %v5500_v27  ;;  %v2056_v50 = vmul.f32 %v4286_v45, %v5728_v17  ;;  %vm2061_vm6 = vweird.f32 %v4286_v45  ;;  %v5782_v17 = vld [vmem:[#allocation7 + $0x18] sm:$0xff]  ;;  %6322 = vst [vmem:[#allocation31_spill] sm:$0xff] %v5828_v44  ;;  %v5831_v46 = vld [vmem:[#allocation7 + $0x60] sm:$0xff] }
 0x2d7   :  { %2327 = vmatpush.msra.mxu1 %v5475_v36  ;;  %2368 = vmatpush.msra.mxu0 %v5478_v14  ;;  %vm2062_vm8 = vmor %vm2060_vm7, %vm2061_vm6  ;;  %6323 = vst [vmem:[#allocation25_spill] sm:$0xff] %v5831_v46 }
 0x2d8   :  { %v2072_v1 = vadd.f32 %v2071_v49, %v2070_v24  ;;  %v2057_v23 = vsub.f32 1.0, %v2056_v50 }
 0x2d9   :  { %2328 = vmatpush.msra.mxu1 %v5485_v41  ;;  %2369 = vmatpush.msra.mxu0 %v5488_v2 }
 0x2da   :  { %4287 = vtanh.f32 %v2072_v1  ;;  %4059 = vmatmul.msk.f32.vlgmr.msrb.gmra.mxu1 %vm121_vm2, %v5736_v40  ;;  %4061 = vmatmul.msk.f32.vlgmr.msrb.gmra.mxu0 %vm121_vm2, %v5736_v40  ;;  %v2058_v22 = vmul.f32 %v4286_v45, %v2057_v23  ;;  %v5761_v26 = vsel %vm2075_vm3, %v2072_v1, %v5500_v27 }
 0x2db   :  { %2407 = vmatpush.msrb.mxu1 %v5503_v53  ;;  %2448 = vmatpush.msrb.mxu0 %v5506_v43 }
 0x2dc   :  { %v2059_v58 = vadd.f32 %v4286_v45, %v2058_v22  ;;  %v2241_v1 = vpop.f32.mrf.mxu2 }
 0x2dd   :  { %2408 = vmatpush.msrb.mxu1 %v5516_v61  ;;  %2449 = vmatpush.msrb.mxu0 %v5519_v4  ;;  %v2200_v22 = vpop.f32.mrf.mxu3 }
 0x2de   :  { %v2063_v11 = vsel %vm2062_vm8, %v4286_v45, %v2059_v58 }
 0x2df   :  { %2409 = vmatpush.msrb.mxu1 %v5526_v32  ;;  %2450 = vmatpush.msrb.mxu0 %v5529_v63  ;;  %v2068_v33 = vsel %vm2065_vm10, %v2067_v38, %v2063_v11 }
 0x2e0   :  { %v4288_v27 = vpop.eup %4287 }
 0x2e1   :  { %v2074_v57 = vmul.f32 %v4288_v27, %v2068_v33  ;;  %2410 = vmatpush.msrb.mxu1 %v5536_v37  ;;  %2451 = vmatpush.msrb.mxu0 %v5539_v15 }
 0x2e3   :  { %v5776_v29 = vsel %vm2075_vm3, %v2074_v57, %v5547_v59  ;;  %v5791_v59 = vld [vmem:[#allocation7 + $0x30] sm:$0xff] }
 0x2e4   :  { %4066 = vmatmul.msk.f32.vlgmr.msra.gmra.mxu1 %vm121_vm2, %v5776_v29  ;;  %4068 = vmatmul.msk.f32.vlgmr.msra.gmra.mxu0 %vm121_vm2, %v5776_v29 }
 0x2e5   :  { %2557 = vmatpush.msra.mxu1 %v5782_v17  ;;  %2598 = vmatpush.msra.mxu0 %v5785_v54 }
 0x2e7   :  { %2558 = vmatpush.msra.mxu1 %v5788_v7  ;;  %2599 = vmatpush.msra.mxu0 %v5791_v59 }
 0x2e9   :  { %2559 = vmatpush.msra.mxu1 %v5794_v13  ;;  %2600 = vmatpush.msra.mxu0 %v5797_v25 }
 0x2eb   :  { %2560 = vmatpush.msra.mxu1 %v5800_v21  ;;  %2601 = vmatpush.msra.mxu0 %v5803_v3 }
 0x2ec   :  { %4070 = vmatmul.msk.f32.vlgmr.msrb.gmra.mxu1 %vm121_vm2, %v5776_v29  ;;  %4072 = vmatmul.msk.f32.vlgmr.msrb.gmra.mxu0 %vm121_vm2, %v5776_v29 }
 0x2ed   :  { %2639 = vmatpush.msrb.mxu1 %v5810_v31  ;;  %2680 = vmatpush.msrb.mxu0 %v5813_v9 }
 0x2ef   :  { %2640 = vmatpush.msrb.mxu1 %v5816_v35  ;;  %2681 = vmatpush.msrb.mxu0 %v5819_v0 }
 0x2f1   :  { %2641 = vmatpush.msrb.mxu1 %v5822_v62  ;;  %2682 = vmatpush.msrb.mxu0 %v5825_v42 }
 0x2f3   :  { %2642 = vmatpush.msrb.mxu1 %v5828_v44  ;;  %2683 = vmatpush.msrb.mxu0 %v5831_v46 }
 0x34f   :  { %v2098_v51 = vpop.f32.mrf.mxu1  ;;  %v2139_v45 = vpop.f32.mrf.mxu0 }
 0x350   :  { %v2119_v47 = vadd.f32 %v2118_v6, %v2098_v51  ;;  %v2160_v49 = vadd.f32 %v2159_v39, %v2139_v45  ;;  %v2391_v39 = vpop.f32.mrf.mxu2 }
 0x352   :  { %v2121_v24 = vadd.f32 %v5658_v34, %v2119_v47  ;;  %v2162_v50 = vadd.f32 %v5664_v12, %v2160_v49  ;;  %v2350_v47 = vpop.f32.mrf.mxu3 }
 0x354   :  { %v4063_v23 = vmul.f32 -1.442695, %v2121_v24  ;;  %v4064_v56 = vmul.f32 -1.442695, %v2162_v50 }
 0x356   :  { %4289 = vpow2.f32 %v4063_v23 }
 0x357   :  { %4291 = vpow2.f32 %v4064_v56  ;;  %v2180_v10 = vpop.f32.mrf.mxu1  ;;  %v2221_v58 = vpop.f32.mrf.mxu0 }
 0x358   :  { %v2242_v11 = vadd.f32 %v2241_v1, %v2221_v58  ;;  %v2201_v45 = vadd.f32 %v2200_v22, %v2180_v10  ;;  %v2473_v12 = vpop.f32.mrf.mxu2 }
 0x35a   :  { %v2244_v38 = vadd.f32 %v5670_v55, %v2242_v11  ;;  %v2203_v50 = vadd.f32 %v5676_v20, %v2201_v45  ;;  %v2432_v46 = vpop.f32.mrf.mxu3 }
 0x35c   :  { %v4290_v27 = vpop.eup %4289  ;;  %v4065_v33 = vmul.f32 -1.442695, %v2244_v38 }
 0x35d   :  { %v4292_v57 = vpop.eup %4291  ;;  %v2248_v6 = vadd.f32 1.0, %v4290_v27 }
 0x35e   :  { %v2267_v51 = vadd.f32 1.0, %v4292_v57  ;;  %4293 = vpow2.f32 %v4065_v33 }
 0x35f   :  { %4295 = vrcp.f32 %v2248_v6  ;;  %vm2254_vm1 = vweird.f32 %v2248_v6 }
 0x360   :  { %4297 = vrcp.f32 %v2267_v51  ;;  %vm2273_vm6 = vweird.f32 %v2267_v51 }
 0x361   :  { %v2330_v49 = vpop.f32.mrf.mxu1  ;;  %v2371_v24 = vpop.f32.mrf.mxu0  ;;  %4299 = vtanh.f32 %v2203_v50 }
 0x362   :  { %v2351_v23 = vadd.f32 %v2350_v47, %v2330_v49  ;;  %v2392_v56 = vadd.f32 %v2391_v39, %v2371_v24  ;;  %v2258_v47 = vand.u32 2147483647, %v2248_v6  ;;  %v2279_v49 = vand.u32 2147483648, %v2267_v51 }
 0x363   :  { %v2260_v24 = vand.u32 2147483648, %v2248_v6 }
 0x364   :  { %v4294_v1 = vpop.eup %4293  ;;  %v2353_v58 = vadd.f32 %v5682_v19, %v2351_v23  ;;  %v2394_v11 = vadd.f32 %v5688_v30, %v2392_v56  ;;  %vm2259_vm8 = vcmp.eq.f32.partialorder %v2258_v47, 8.507059e+37 }
 0x365   :  { %v4296_v38 = vpop.eup %4295  ;;  %v5840_v27 = vadd.f32 1.0, %v4294_v1  ;;  %v2277_v1 = vand.u32 2147483647, %v2267_v51 }
 0x366   :  { %v4298_v57 = vpop.eup %4297  ;;  %v2250_v22 = vmul.f32 %v4296_v38, %v2248_v6  ;;  %v4074_v10 = vmul.f32 -1.442695, %v2353_v58  ;;  %v4075_v33 = vmul.f32 -1.442695, %v2394_v11  ;;  %vm2255_vm13 = vweird.f32 %v4296_v38 }
 0x367   :  { %v2269_v55 = vmul.f32 %v4298_v57, %v2267_v51  ;;  %4301 = vrcp.f32 %v5840_v27  ;;  %vm2274_vm14 = vweird.f32 %v4298_v57  ;;  %v4300_v50 = vpop.eup %4299  ;;  %vm2256_vm7 = vmor %vm2254_vm1, %vm2255_vm13  ;;  %vm2278_vm5 = vcmp.eq.f32.partialorder %v2277_v1, 8.507059e+37 }
 0x368   :  { %v2251_v45 = vsub.f32 1.0, %v2250_v22  ;;  %4303 = vpow2.f32 %v4074_v10  ;;  %vm2275_vm10 = vmor %vm2273_vm6, %vm2274_vm14  ;;  %v2299_v1 = vand.u32 2147483648, %v5840_v27 }
 0x369   :  { %v2270_v39 = vsub.f32 1.0, %v2269_v55  ;;  %4305 = vpow2.f32 %v4075_v33  ;;  %v2453_v23 = vpop.f32.mrf.mxu0  ;;  %v2261_v55 = vor.u32 1.1754944e-38, %v2260_v24  ;;  %v2280_v33 = vor.u32 1.1754944e-38, %v2279_v49  ;;  %v2412_v6 = vpop.f32.mrf.mxu1 }
 0x36a   :  { %v2252_v56 = vmul.f32 %v4296_v38, %v2251_v45  ;;  %v2474_v30 = vadd.f32 %v2473_v12, %v2453_v23  ;;  %v2433_v49 = vadd.f32 %v2432_v46, %v2412_v6 }
 0x36b   :  { %v2271_v19 = vmul.f32 %v4298_v57, %v2270_v39 }
 0x36c   :  { %v2253_v58 = vadd.f32 %v4296_v38, %v2252_v56  ;;  %v2476_v11 = vadd.f32 %v5697_v28, %v2474_v30 }
 0x36d   :  { %v4302_v20 = vpop.eup %4301  ;;  %v2272_v22 = vadd.f32 %v4298_v57, %v2271_v19 }
 0x36e   :  { %v4304_v10 = vpop.eup %4303  ;;  %v2257_v45 = vsel %vm2256_vm7, %v4296_v38, %v2253_v58  ;;  %v2289_v12 = vmul.f32 %v4302_v20, %v5840_v27  ;;  %v4076_v30 = vmul.f32 -1.442695, %v2476_v11  ;;  %vm2294_vm13 = vweird.f32 %v4302_v20 }
 0x36f   :  { %v4306_v39 = vpop.eup %4305  ;;  %v2262_v23 = vsel %vm2259_vm8, %v2261_v55, %v2257_v45  ;;  %v2276_v34 = vsel %vm2275_vm10, %v4298_v57, %v2272_v22  ;;  %v2480_v56 = vadd.f32 1.0, %v4304_v10  ;;  %v2297_v57 = vand.u32 2147483647, %v5840_v27 }
 0x370   :  { %v2281_v28 = vsel %vm2278_vm5, %v2280_v33, %v2276_v34  ;;  %v2304_v51 = vmul.f32 %v4300_v50, %v2262_v23  ;;  %v2290_v44 = vsub.f32 1.0, %v2289_v12  ;;  %v2499_v47 = vadd.f32 1.0, %v4306_v39 }
 0x371   :  { %v2303_v19 = vmul.f32 %v2281_v28, %v5711_v52  ;;  %4307 = vrcp.f32 %v2480_v56  ;;  %v2435_v50 = vadd.f32 %v5716_v5, %v2433_v49  ;;  %vm2293_vm5 = vweird.f32 %v5840_v27 }
 0x372   :  { %4309 = vrcp.f32 %v2499_v47  ;;  %v2291_v24 = vmul.f32 %v4302_v20, %v2290_v44  ;;  %vm5855_vm14 = vmor %vm2293_vm5, %vm2294_vm13  ;;  %vm2298_vm1 = vcmp.eq.f32.partialorder %v2297_v57, 8.507059e+37  ;;  %v2490_v45 = vand.u32 2147483647, %v2480_v56 }
 0x373   :  { %v2305_v38 = vadd.f32 %v2304_v51, %v2303_v19  ;;  %4311 = vpow2.f32 %v4076_v30  ;;  %v2511_v23 = vand.u32 2147483648, %v2499_v47  ;;  %v2492_v6 = vand.u32 2147483648, %v2480_v56 }
 0x374   :  { %v2292_v28 = vadd.f32 %v4302_v20, %v2291_v24  ;;  %vm2486_vm8 = vweird.f32 %v2480_v56  ;;  %vm2505_vm10 = vweird.f32 %v2499_v47 }
 0x375   :  { %4313 = vtanh.f32 %v2305_v38  ;;  %v5851_v34 = vsel %vm2075_vm3, %v2305_v38, %v5711_v52  ;;  %v2300_v52 = vor.u32 1.1754944e-38, %v2299_v1  ;;  %v2493_v57 = vor.u32 1.1754944e-38, %v2492_v6 }
 0x376   :  { %v2296_v55 = vsel %vm5855_vm14, %v4302_v20, %v2292_v28  ;;  %4315 = vtanh.f32 %v2435_v50  ;;  %v2509_v20 = vand.u32 2147483647, %v2499_v47  ;;  %v2512_v28 = vor.u32 1.1754944e-38, %v2511_v23 }
 0x377   :  { %v4308_v46 = vpop.eup %4307  ;;  %v2301_v30 = vsel %vm2298_vm1, %v2300_v52, %v2296_v55  ;;  %vm2491_vm14 = vcmp.eq.f32.partialorder %v2490_v45, 8.507059e+37 }
 0x378   :  { %v4310_v44 = vpop.eup %4309  ;;  %v2482_v11 = vmul.f32 %v4308_v46, %v2480_v56  ;;  %vm2487_vm6 = vweird.f32 %v4308_v46 }
 0x379   :  { %v4312_v22 = vpop.eup %4311  ;;  %v2501_v10 = vmul.f32 %v4310_v44, %v2499_v47  ;;  %vm2506_vm7 = vweird.f32 %v4310_v44  ;;  %vm2488_vm13 = vmor %vm2486_vm8, %vm2487_vm6 }
 0x37a   :  { %v2483_v33 = vsub.f32 1.0, %v2482_v11  ;;  %v2519_v12 = vadd.f32 1.0, %v4312_v22  ;;  %vm2507_vm5 = vmor %vm2505_vm10, %vm2506_vm7 }
 0x37b   :  { %v4314_v39 = vpop.eup %4313  ;;  %v2502_v27 = vsub.f32 1.0, %v2501_v10 }
 0x37c   :  { %v2484_v51 = vmul.f32 %v4308_v46, %v2483_v33  ;;  %4317 = vrcp.f32 %v2519_v12  ;;  %v2307_v19 = vmul.f32 %v4314_v39, %v2301_v30  ;;  %v4316_v50 = vpop.eup %4315  ;;  %vm2525_vm6 = vweird.f32 %v2519_v12  ;;  %v6328_v33 = vld [vmem:[#allocation23_spill] sm:$0xff] }
 0x37d   :  { %v2503_v49 = vmul.f32 %v4310_v44, %v2502_v27 }
 0x37e   :  { %v2485_v38 = vadd.f32 %v4308_v46, %v2484_v51  ;;  %v5864_v24 = vsel %vm2075_vm3, %v2307_v19, %v5736_v40  ;;  %vm2510_vm3 = vcmp.eq.f32.partialorder %v2509_v20, 8.507059e+37  ;;  %v6330_v20 = vld [vmem:[#allocation30_spill] sm:$0xff] }
 0x37f   :  { %v2504_v1 = vadd.f32 %v4310_v44, %v2503_v49  ;;  %4077 = vmatmul.msk.f32.vlgmr.msra.gmra.mxu1 %vm121_vm2, %v5864_v24  ;;  %4079 = vmatmul.msk.f32.vlgmr.msra.gmra.mxu0 %vm121_vm2, %v5864_v24 }
 0x380   :  { %v2489_v58 = vsel %vm2488_vm13, %v4308_v46, %v2485_v38  ;;  %2789 = vmatpush.msra.mxu1 %v5459_v60  ;;  %2830 = vmatpush.msra.mxu0 %v5462_v48  ;;  %v2531_v48 = vand.u32 2147483648, %v2519_v12 }
 0x381   :  { %v2494_v40 = vsel %vm2491_vm14, %v2493_v57, %v2489_v58  ;;  %v2508_v56 = vsel %vm2507_vm5, %v4310_v44, %v2504_v1 }
 0x382   :  { %v4318_v47 = vpop.eup %4317  ;;  %v2513_v11 = vsel %vm2510_vm3, %v2512_v28, %v2508_v56  ;;  %v2536_v55 = vmul.f32 %v4316_v50, %v2494_v40  ;;  %2790 = vmatpush.msra.mxu1 %v5467_v18  ;;  %2831 = vmatpush.msra.mxu0 %v5470_v16 }
 0x383   :  { %v2535_v22 = vmul.f32 %v2513_v11, %v5761_v26  ;;  %v2521_v10 = vmul.f32 %v4318_v47, %v2519_v12  ;;  %vm2526_vm1 = vweird.f32 %v4318_v47 }
 0x384   :  { %2791 = vmatpush.msra.mxu1 %v5475_v36  ;;  %2832 = vmatpush.msra.mxu0 %v5478_v14  ;;  %v2529_v36 = vand.u32 2147483647, %v2519_v12  ;;  %vm2527_vm7 = vmor %vm2525_vm6, %vm2526_vm1  ;;  %v6329_v12 = vld [vmem:[#allocation29_spill] sm:$0xff] }
 0x385   :  { %v2537_v60 = vadd.f32 %v2536_v55, %v2535_v22  ;;  %v2522_v46 = vsub.f32 1.0, %v2521_v10  ;;  %v6331_v22 = vld [vmem:[#allocation20_spill] sm:$0xff] }
 0x386   :  { %2792 = vmatpush.msra.mxu1 %v5485_v41  ;;  %2833 = vmatpush.msra.mxu0 %v5488_v2  ;;  %v2532_v2 = vor.u32 1.1754944e-38, %v2531_v48  ;;  %vm2530_vm8 = vcmp.eq.f32.partialorder %v2529_v36, 8.507059e+37 }
 0x387   :  { %4319 = vtanh.f32 %v2537_v60  ;;  %4081 = vmatmul.msk.f32.vlgmr.msrb.gmra.mxu1 %vm121_vm2, %v5864_v24  ;;  %4083 = vmatmul.msk.f32.vlgmr.msrb.gmra.mxu0 %vm121_vm2, %v5864_v24  ;;  %v2523_v18 = vmul.f32 %v4318_v47, %v2522_v46  ;;  %v5886_v16 = vsel %vm1837_vm0, %v2537_v60, %v5761_v26 }
 0x388   :  { %2871 = vmatpush.msrb.mxu1 %v5503_v53  ;;  %2912 = vmatpush.msrb.mxu0 %v5506_v43  ;;  %v6326_v43 = vld [vmem:[#allocation31_spill] sm:$0xff] }
 0x389   :  { %v2524_v14 = vadd.f32 %v4318_v47, %v2523_v18  ;;  %v6332_v18 = vld [vmem:[#allocation21_spill] sm:$0xff] }
 0x38a   :  { %2872 = vmatpush.msrb.mxu1 %v5516_v61  ;;  %2913 = vmatpush.msrb.mxu0 %v5519_v4  ;;  %v6327_v61 = vld [vmem:[#allocation25_spill] sm:$0xff]  ;;  %v2623_v4 = vpop.f32.mrf.mxu2 }
 0x38b   :  { %v2528_v41 = vsel %vm2527_vm7, %v4318_v47, %v2524_v14  ;;  %v6333_v14 = vld [vmem:[#allocation22_spill] sm:$0xff] }
 0x38c   :  { %2873 = vmatpush.msrb.mxu1 %v5526_v32  ;;  %2914 = vmatpush.msrb.mxu0 %v5529_v63  ;;  %v2533_v44 = vsel %vm2530_vm8, %v2532_v2, %v2528_v41  ;;  %v2582_v32 = vpop.f32.mrf.mxu3 }
 0x38d   :  { %v4320_v26 = vpop.eup %4319 }
 0x38e   :  { %v2539_v52 = vmul.f32 %v4320_v26, %v2533_v44  ;;  %2874 = vmatpush.msrb.mxu1 %v5536_v37  ;;  %2915 = vmatpush.msrb.mxu0 %v5539_v15 }
 0x390   :  { %v5899_v53 = vsel %vm1837_vm0, %v2539_v52, %v5776_v29 }
 0x391   :  { %4088 = vmatmul.msk.f32.vlgmr.msra.gmra.mxu1 %vm121_vm2, %v5899_v53  ;;  %4090 = vmatmul.msk.f32.vlgmr.msra.gmra.mxu0 %vm121_vm2, %v5899_v53 }
 0x392   :  { %3021 = vmatpush.msra.mxu1 %v5782_v17  ;;  %3062 = vmatpush.msra.mxu0 %v5785_v54  ;;  %v2705_v27 = vpop.f32.mrf.mxu2 }
 0x394   :  { %3022 = vmatpush.msra.mxu1 %v5788_v7  ;;  %3063 = vmatpush.msra.mxu0 %v5791_v59  ;;  %v2664_v30 = vpop.f32.mrf.mxu3 }
 0x396   :  { %3023 = vmatpush.msra.mxu1 %v5794_v13  ;;  %3064 = vmatpush.msra.mxu0 %v5797_v25 }
 0x398   :  { %3024 = vmatpush.msra.mxu1 %v5800_v21  ;;  %3065 = vmatpush.msra.mxu0 %v5803_v3 }
 0x399   :  { %4092 = vmatmul.msk.f32.vlgmr.msrb.gmra.mxu1 %vm121_vm2, %v5899_v53  ;;  %4094 = vmatmul.msk.f32.vlgmr.msrb.gmra.mxu0 %vm121_vm2, %v5899_v53 }
 0x39a   :  { %3103 = vmatpush.msrb.mxu1 %v5810_v31  ;;  %3144 = vmatpush.msrb.mxu0 %v5813_v9  ;;  %v2855_v58 = vpop.f32.mrf.mxu2 }
 0x39c   :  { %3104 = vmatpush.msrb.mxu1 %v5816_v35  ;;  %3145 = vmatpush.msrb.mxu0 %v5819_v0  ;;  %v2814_v47 = vpop.f32.mrf.mxu3 }
 0x39e   :  { %3105 = vmatpush.msrb.mxu1 %v5822_v62  ;;  %3146 = vmatpush.msrb.mxu0 %v5825_v42 }
 0x3a0   :  { %3106 = vmatpush.msrb.mxu1 %v6326_v43  ;;  %3147 = vmatpush.msrb.mxu0 %v6327_v61 }
 0x3fc   :  { %v2562_v63 = vpop.f32.mrf.mxu1  ;;  %v2603_v37 = vpop.f32.mrf.mxu0 }
 0x3fd   :  { %v2583_v15 = vadd.f32 %v2582_v32, %v2562_v63  ;;  %v2624_v29 = vadd.f32 %v2623_v4, %v2603_v37  ;;  %v2937_v37 = vpop.f32.mrf.mxu2 }
 0x3ff   :  { %v2585_v45 = vadd.f32 %v6328_v33, %v2583_v15  ;;  %v2626_v39 = vadd.f32 %v6329_v12, %v2624_v29 }
 0x401   :  { %v4085_v23 = vmul.f32 -1.442695, %v2585_v45  ;;  %v4086_v6 = vmul.f32 -1.442695, %v2626_v39 }
 0x403   :  { %4321 = vpow2.f32 %v4085_v23 }
 0x404   :  { %4323 = vpow2.f32 %v4086_v6  ;;  %v2644_v51 = vpop.f32.mrf.mxu1  ;;  %v2685_v19 = vpop.f32.mrf.mxu0 }
 0x405   :  { %v2706_v49 = vadd.f32 %v2705_v27, %v2685_v19  ;;  %v2665_v56 = vadd.f32 %v2664_v30, %v2644_v51 }
 0x407   :  { %v2708_v38 = vadd.f32 %v6330_v20, %v2706_v49  ;;  %v2667_v10 = vadd.f32 %v6331_v22, %v2665_v56  ;;  %v6334_v49 = vld [vmem:[#allocation24_spill] sm:$0xff] }
 0x409   :  { %v4322_v57 = vpop.eup %4321  ;;  %v4087_v1 = vmul.f32 -1.442695, %v2708_v38 }
 0x40a   :  { %v4324_v50 = vpop.eup %4323  ;;  %v2712_v28 = vadd.f32 1.0, %v4322_v57 }
 0x40b   :  { %v2731_v40 = vadd.f32 1.0, %v4324_v50  ;;  %4325 = vpow2.f32 %v4087_v1 }
 0x40c   :  { %4327 = vrcp.f32 %v2712_v28  ;;  %v2722_v29 = vand.u32 2147483647, %v2712_v28  ;;  %v2724_v12 = vand.u32 2147483648, %v2712_v28  ;;  %vm2718_vm13 = vweird.f32 %v2712_v28 }
 0x40d   :  { %4329 = vrcp.f32 %v2731_v40  ;;  %v2743_v45 = vand.u32 2147483648, %v2731_v40  ;;  %v2741_v23 = vand.u32 2147483647, %v2731_v40  ;;  %vm2737_vm5 = vweird.f32 %v2731_v40 }
 0x40e   :  { %v2794_v11 = vpop.f32.mrf.mxu1  ;;  %v2835_v55 = vpop.f32.mrf.mxu0  ;;  %4331 = vtanh.f32 %v2667_v10  ;;  %vm2723_vm3 = vcmp.eq.f32.partialorder %v2722_v29, 8.507059e+37  ;;  %v2725_v57 = vor.u32 1.1754944e-38, %v2724_v12 }
 0x40f   :  { %v2815_v60 = vadd.f32 %v2814_v47, %v2794_v11  ;;  %v2856_v46 = vadd.f32 %v2855_v58, %v2835_v55  ;;  %v2744_v58 = vor.u32 1.1754944e-38, %v2743_v45  ;;  %vm2742_vm6 = vcmp.eq.f32.partialorder %v2741_v23, 8.507059e+37 }
 0x411   :  { %v4326_v48 = vpop.eup %4325  ;;  %v2817_v36 = vadd.f32 %v6332_v18, %v2815_v60  ;;  %v2858_v41 = vadd.f32 %v6333_v14, %v2856_v46  ;;  %v2896_v60 = vpop.f32.mrf.mxu3 }
 0x412   :  { %v4328_v2 = vpop.eup %4327  ;;  %v5931_v26 = vadd.f32 1.0, %v4326_v48 }
 0x413   :  { %v4330_v44 = vpop.eup %4329  ;;  %v2714_v52 = vmul.f32 %v4328_v2, %v2712_v28  ;;  %v4096_v4 = vmul.f32 -1.442695, %v2817_v36  ;;  %v4097_v32 = vmul.f32 -1.442695, %v2858_v41  ;;  %vm2719_vm0 = vweird.f32 %v4328_v2 }
 0x414   :  { %v2733_v63 = vmul.f32 %v4330_v44, %v2731_v40  ;;  %4333 = vrcp.f32 %v5931_v26  ;;  %vm2738_vm10 = vweird.f32 %v4330_v44  ;;  %v4332_v51 = vpop.eup %4331  ;;  %vm2720_vm14 = vmor %vm2718_vm13, %vm2719_vm0  ;;  %vm2757_vm8 = vweird.f32 %v5931_v26 }
 0x415   :  { %v2715_v15 = vsub.f32 1.0, %v2714_v52  ;;  %4335 = vpow2.f32 %v4096_v4  ;;  %vm2739_vm1 = vmor %vm2737_vm5, %vm2738_vm10 }
 0x416   :  { %v2734_v33 = vsub.f32 1.0, %v2733_v63  ;;  %4337 = vpow2.f32 %v4097_v32  ;;  %v2917_v39 = vpop.f32.mrf.mxu0  ;;  %v2876_v28 = vpop.f32.mrf.mxu1 }
 0x417   :  { %v2716_v27 = vmul.f32 %v4328_v2, %v2715_v15  ;;  %v2938_v6 = vadd.f32 %v2937_v37, %v2917_v39  ;;  %v2761_v37 = vand.u32 2147483647, %v5931_v26 }
 0x418   :  { %v2735_v30 = vmul.f32 %v4330_v44, %v2734_v33 }
 0x419   :  { %v2717_v19 = vadd.f32 %v4328_v2, %v2716_v27  ;;  %v2940_v20 = vadd.f32 %v6334_v49, %v2938_v6  ;;  %vm2762_vm10 = vcmp.eq.f32.partialorder %v2761_v37, 8.507059e+37  ;;  %v5987_v37 = vld [vmem:[#allocation7 + $0xa0] sm:$0xff] }
 0x41a   :  { %v4334_v38 = vpop.eup %4333  ;;  %v2736_v1 = vadd.f32 %v4330_v44, %v2735_v30 }
 0x41b   :  { %v4336_v50 = vpop.eup %4335  ;;  %v2721_v56 = vsel %vm2720_vm14, %v4328_v2, %v2717_v19  ;;  %v2753_v47 = vmul.f32 %v4334_v38, %v5931_v26  ;;  %v4098_v46 = vmul.f32 -1.442695, %v2940_v20  ;;  %v2897_v2 = vadd.f32 %v2896_v60, %v2876_v28 }
 0x41c   :  { %v4338_v11 = vpop.eup %4337  ;;  %v2726_v55 = vsel %vm2723_vm3, %v2725_v57, %v2721_v56  ;;  %v2740_v22 = vsel %vm2739_vm1, %v4330_v44, %v2736_v1  ;;  %v2944_v10 = vadd.f32 1.0, %v4336_v50  ;;  %vm2758_vm7 = vweird.f32 %v4334_v38 }
 0x41d   :  { %v2745_v48 = vsel %vm2742_vm6, %v2744_v58, %v2740_v22  ;;  %v2768_v40 = vmul.f32 %v4332_v51, %v2726_v55  ;;  %v2754_v18 = vsub.f32 1.0, %v2753_v47  ;;  %v2963_v36 = vadd.f32 1.0, %v4338_v11  ;;  %vm5946_vm0 = vmor %vm2757_vm8, %vm2758_vm7 }
 0x41e   :  { %v2767_v14 = vmul.f32 %v2745_v48, %v5851_v34  ;;  %4339 = vrcp.f32 %v2944_v10  ;;  %v2763_v44 = vand.u32 2147483648, %v5931_v26  ;;  %v2899_v63 = vadd.f32 %v5716_v5, %v2897_v2  ;;  %v5978_v2 = vld [vmem:[#allocation7 + $0x88] sm:$0xff] }
 0x41f   :  { %v2755_v41 = vmul.f32 %v4334_v38, %v2754_v18  ;;  %4341 = vrcp.f32 %v2963_v36  ;;  %v2954_v6 = vand.u32 2147483647, %v2944_v10  ;;  %v2956_v26 = vand.u32 2147483648, %v2944_v10  ;;  %v5973_v18 = vld [vmem:[#allocation7 + $0xb0] sm:$0xff] }
 0x420   :  { %v2769_v52 = vadd.f32 %v2768_v40, %v2767_v14  ;;  %4343 = vpow2.f32 %v4098_v46  ;;  %v2764_v39 = vor.u32 1.1754944e-38, %v2763_v44  ;;  %v2975_v49 = vand.u32 2147483648, %v2963_v36  ;;  %v5970_v40 = vld [vmem:[#allocation7 + $0x90] sm:$0xff] }
 0x421   :  { %v2756_v4 = vadd.f32 %v4334_v38, %v2755_v41  ;;  %vm2950_vm14 = vweird.f32 %v2944_v10  ;;  %vm2969_vm3 = vweird.f32 %v2963_v36  ;;  %v2957_v56 = vor.u32 1.1754944e-38, %v2956_v26 }
 0x422   :  { %4345 = vtanh.f32 %v2769_v52  ;;  %v5941_v32 = vsel %vm1599_vm4, %v2769_v52, %v5851_v34  ;;  %v2976_v55 = vor.u32 1.1754944e-38, %v2975_v49  ;;  %vm2955_vm7 = vcmp.eq.f32.partialorder %v2954_v6, 8.507059e+37  ;;  %v5981_v52 = vld [vmem:[#allocation7 + $0xa8] sm:$0xff]  ;;  %v6020_v49 = vld [vmem:[#allocation7 + $0xc0] sm:$0xff] }
 0x423   :  { %v2760_v12 = vsel %vm5946_vm0, %v4334_v38, %v2756_v4  ;;  %4347 = vtanh.f32 %v2899_v63  ;;  %v2973_v38 = vand.u32 2147483647, %v2963_v36  ;;  %v5984_v63 = vld [vmem:[#allocation7 + $0x80] sm:$0xff] }
 0x424   :  { %v4340_v15 = vpop.eup %4339  ;;  %v2765_v19 = vsel %vm2762_vm10, %v2764_v39, %v2760_v12  ;;  %v6001_v12 = vld [vmem:[#allocation7 + $0xd8] sm:$0xff] }
 0x425   :  { %v4342_v33 = vpop.eup %4341  ;;  %v2946_v45 = vmul.f32 %v4340_v15, %v2944_v10  ;;  %vm2951_vm13 = vweird.f32 %v4340_v15  ;;  %v5964_v10 = vld [vmem:[#allocation7 + $0x98] sm:$0xff] }
 0x426   :  { %v2965_v27 = vmul.f32 %v4342_v33, %v2963_v36  ;;  %v4344_v34 = vpop.eup %4343  ;;  %vm2970_vm5 = vweird.f32 %v4342_v33  ;;  %vm2952_vm1 = vmor %vm2950_vm14, %vm2951_vm13  ;;  %v6004_v39 = vld [vmem:[#allocation7 + $0xf8] sm:$0xff] }
 0x427   :  { %v2947_v23 = vsub.f32 1.0, %v2946_v45  ;;  %v5952_v51 = vadd.f32 1.0, %v4344_v34  ;;  %vm2971_vm6 = vmor %vm2969_vm3, %vm2970_vm5  ;;  %v6008_v34 = vld [vmem:[#allocation7 + $0xd0] sm:$0xff] }
 0x428   :  { %v4346_v5 = vpop.eup %4345  ;;  %v2966_v30 = vsub.f32 1.0, %v2965_v27 }
 0x429   :  { %v2948_v20 = vmul.f32 %v4340_v15, %v2947_v23  ;;  %v2771_v57 = vmul.f32 %v4346_v5, %v2765_v19  ;;  %4349 = vrcp.f32 %v5952_v51  ;;  %v4348_v11 = vpop.eup %4347  ;;  %v2993_v45 = vand.u32 2147483647, %v5952_v51  ;;  %v6014_v5 = vld [vmem:[#allocation7 + $0xc8] sm:$0xff] }
 0x42a   :  { %v2967_v1 = vmul.f32 %v4342_v33, %v2966_v30  ;;  %vm2989_vm0 = vweird.f32 %v5952_v51  ;;  %v6017_v30 = vld [vmem:[#allocation7 + $0xe8] sm:$0xff] }
 0x42b   :  { %v2949_v50 = vadd.f32 %v4340_v15, %v2948_v20  ;;  %v5958_v58 = vsel %vm1599_vm4, %v2771_v57, %v5864_v24  ;;  %v5967_v24 = vld [vmem:[#allocation7 + $0xb8] sm:$0xff]  ;;  %vm2974_vm4 = vcmp.eq.f32.partialorder %v2973_v38, 8.507059e+37  ;;  %vm2994_vm13 = vcmp.eq.f32.partialorder %v2993_v45, 8.507059e+37  ;;  %v6023_v20 = vld [vmem:[#allocation7 + $0xe0] sm:$0xff] }
 0x42c   :  { %v2968_v47 = vadd.f32 %v4342_v33, %v2967_v1  ;;  %4099 = vmatmul.msk.f32.vlgmr.msra.gmra.mxu1 %vm121_vm2, %v5958_v58  ;;  %4101 = vmatmul.msk.f32.vlgmr.msra.gmra.mxu0 %vm121_vm2, %v5958_v58  ;;  %v6070_v1 = vld [vmem:[%s6228_s4 + $0x3] ss:$0 sm:$0xff]  ;;  %v6088_v45 = vld [vmem:[%s6228_s4 + $0x5] ss:$0 sm:$0xff] }
 0x42d   :  { %v2953_v22 = vsel %vm2952_vm1, %v4340_v15, %v2949_v50  ;;  %3253 = vmatpush.msra.mxu1 %v5964_v10  ;;  %3294 = vmatpush.msra.mxu0 %v5967_v24  ;;  %v2995_v15 = vand.u32 2147483648, %v5952_v51 }
 0x42e   :  { %v2958_v28 = vsel %vm2955_vm7, %v2957_v56, %v2953_v22  ;;  %v2972_v60 = vsel %vm2971_vm6, %v4342_v33, %v2968_v47 }
 0x42f   :  { %v2977_v46 = vsel %vm2974_vm4, %v2976_v55, %v2972_v60  ;;  %v3000_v48 = vmul.f32 %v4348_v11, %v2958_v28  ;;  %3254 = vmatpush.msra.mxu1 %v5970_v40  ;;  %3295 = vmatpush.msra.mxu0 %v5973_v18  ;;  %v4350_v36 = vpop.eup %4349  ;;  %v2996_v23 = vor.u32 1.1754944e-38, %v2995_v15  ;;  %v6082_v15 = vld [vmem:[%s6228_s4 + $0x4] ss:$0 sm:$0xff] }
 0x430   :  { %v2999_v14 = vmul.f32 %v2977_v46, %v5886_v16  ;;  %v2985_v41 = vmul.f32 %v4350_v36, %v5952_v51  ;;  %vm2990_vm8 = vweird.f32 %v4350_v36 }
 0x431   :  { %3255 = vmatpush.msra.mxu1 %v5978_v2  ;;  %3296 = vmatpush.msra.mxu0 %v5981_v52  ;;  %vm2991_vm10 = vmor %vm2989_vm0, %vm2990_vm8 }
 0x432   :  { %v3001_v4 = vadd.f32 %v3000_v48, %v2999_v14  ;;  %v2986_v44 = vsub.f32 1.0, %v2985_v41 }
 0x433   :  { %3256 = vmatpush.msra.mxu1 %v5984_v63  ;;  %3297 = vmatpush.msra.mxu0 %v5987_v37 }
 0x434   :  { %4351 = vtanh.f32 %v3001_v4  ;;  %4103 = vmatmul.msk.f32.vlgmr.msrb.gmra.mxu1 %vm121_vm2, %v5958_v58  ;;  %4105 = vmatmul.msk.f32.vlgmr.msrb.gmra.mxu0 %vm121_vm2, %v5958_v58  ;;  %v5998_v29 = vsel %vm1361_vm15, %v3001_v4, %v5886_v16  ;;  %v2987_v33 = vmul.f32 %v4350_v36, %v2986_v44  ;;  %v6011_v16 = vld [vmem:[#allocation7 + $0xf0] sm:$0xff] }
 0x435   :  { %3335 = vmatpush.msrb.mxu1 %v6001_v12  ;;  %3376 = vmatpush.msrb.mxu0 %v6004_v39 }
 0x436   :  { %v2988_v27 = vadd.f32 %v4350_v36, %v2987_v33 }
 0x437   :  { %3336 = vmatpush.msrb.mxu1 %v6008_v34  ;;  %3377 = vmatpush.msrb.mxu0 %v6011_v16 }
 0x438   :  { %v2992_v6 = vsel %vm2991_vm10, %v4350_v36, %v2988_v27  ;;  %v6076_v36 = vld [vmem:[%s6228_s4 + $0x2] ss:$0 sm:$0xff] }
 0x439   :  { %3337 = vmatpush.msrb.mxu1 %v6014_v5  ;;  %3378 = vmatpush.msrb.mxu0 %v6017_v30  ;;  %v2997_v51 = vsel %vm2994_vm13, %v2996_v23, %v2992_v6 }
 0x43a   :  { %v4352_v26 = vpop.eup %4351 }
 0x43b   :  { %v3003_v19 = vmul.f32 %v4352_v26, %v2997_v51  ;;  %3338 = vmatpush.msrb.mxu1 %v6020_v49  ;;  %3379 = vmatpush.msrb.mxu0 %v6023_v20 }
 0x43d   :  { %v6029_v57 = vsel %vm1361_vm15, %v3003_v19, %v5899_v53 }
 0x43e   :  { %4110 = vmatmul.msk.f32.vlgmr.msra.gmra.mxu1 %vm121_vm2, %v6029_v57  ;;  %4112 = vmatmul.msk.f32.vlgmr.msra.gmra.mxu0 %vm121_vm2, %v6029_v57 }
 0x43f   :  { %3485 = vmatpush.msra.mxu1 %v5782_v17  ;;  %3526 = vmatpush.msra.mxu0 %v5785_v54  ;;  %v3087_v17 = vpop.f32.mrf.mxu2  ;;  %v3046_v54 = vpop.f32.mrf.mxu3 }
 0x441   :  { %3486 = vmatpush.msra.mxu1 %v5788_v7  ;;  %3527 = vmatpush.msra.mxu0 %v5791_v59 }
 0x443   :  { %3487 = vmatpush.msra.mxu1 %v5794_v13  ;;  %3528 = vmatpush.msra.mxu0 %v5797_v25 }
 0x445   :  { %3488 = vmatpush.msra.mxu1 %v5800_v21  ;;  %3529 = vmatpush.msra.mxu0 %v5803_v3  ;;  %v6058_v21 = vld [vmem:[%s6228_s4] ss:$0 sm:$0xff] }
 0x446   :  { %4114 = vmatmul.msk.f32.vlgmr.msrb.gmra.mxu1 %vm121_vm2, %v6029_v57  ;;  %4116 = vmatmul.msk.f32.vlgmr.msrb.gmra.mxu0 %vm121_vm2, %v6029_v57 }
 0x447   :  { %3567 = vmatpush.msrb.mxu1 %v5810_v31  ;;  %3608 = vmatpush.msrb.mxu0 %v5813_v9  ;;  %v6064_v31 = vld [vmem:[%s6228_s4 + $0x1] ss:$0 sm:$0xff] }
 0x449   :  { %3568 = vmatpush.msrb.mxu1 %v5816_v35  ;;  %3609 = vmatpush.msrb.mxu0 %v5819_v0  ;;  %v3169_v35 = vpop.f32.mrf.mxu2 }
 0x44b   :  { %3569 = vmatpush.msrb.mxu1 %v5822_v62  ;;  %3610 = vmatpush.msrb.mxu0 %v5825_v42  ;;  %v3128_v42 = vpop.f32.mrf.mxu3 }
 0x44d   :  { %3570 = vmatpush.msrb.mxu1 %v6326_v43  ;;  %3611 = vmatpush.msrb.mxu0 %v6327_v61 }
 0x451   :  { %v3319_v55 = vpop.f32.mrf.mxu2 }
 0x453   :  { %v3278_v60 = vpop.f32.mrf.mxu3 }
 0x4a9   :  { %v3026_v7 = vpop.f32.mrf.mxu1  ;;  %v3067_v59 = vpop.f32.mrf.mxu0 }
 0x4aa   :  { %v3047_v13 = vadd.f32 %v3046_v54, %v3026_v7  ;;  %v3088_v25 = vadd.f32 %v3087_v17, %v3067_v59  ;;  %v3401_v7 = vpop.f32.mrf.mxu2 }
 0x4ac   :  { %v3049_v3 = vadd.f32 %v6058_v21, %v3047_v13  ;;  %v3090_v9 = vadd.f32 %v6064_v31, %v3088_v25 }
 0x4ae   :  { %v4107_v0 = vmul.f32 -1.442695, %v3049_v3  ;;  %v4108_v62 = vmul.f32 -1.442695, %v3090_v9 }
 0x4b0   :  { %4353 = vpow2.f32 %v4107_v0 }
 0x4b1   :  { %4355 = vpow2.f32 %v4108_v62  ;;  %v3108_v53 = vpop.f32.mrf.mxu1  ;;  %v3149_v43 = vpop.f32.mrf.mxu0 }
 0x4b2   :  { %v3170_v61 = vadd.f32 %v3169_v35, %v3149_v43  ;;  %v3129_v28 = vadd.f32 %v3128_v42, %v3108_v53 }
 0x4b4   :  { %v3172_v38 = vadd.f32 %v6070_v1, %v3170_v61  ;;  %v3131_v14 = vadd.f32 %v6076_v36, %v3129_v28 }
 0x4b6   :  { %v4354_v50 = vpop.eup %4353  ;;  %v4109_v56 = vmul.f32 -1.442695, %v3172_v38  ;;  %v6097_v38 = vld [vmem:[%s6228_s4 + $0x7] ss:$0 sm:$0xff] }
 0x4b7   :  { %v4356_v47 = vpop.eup %4355  ;;  %v3176_v11 = vadd.f32 1.0, %v4354_v50 }
 0x4b8   :  { %v3195_v22 = vadd.f32 1.0, %v4356_v47  ;;  %4357 = vpow2.f32 %v4109_v56 }
 0x4b9   :  { %4359 = vrcp.f32 %v3176_v11  ;;  %v3186_v13 = vand.u32 2147483647, %v3176_v11  ;;  %v3188_v9 = vand.u32 2147483648, %v3176_v11  ;;  %vm3182_vm14 = vweird.f32 %v3176_v11 }
 0x4ba   :  { %4361 = vrcp.f32 %v3195_v22  ;;  %v3207_v3 = vand.u32 2147483648, %v3195_v22  ;;  %v3205_v62 = vand.u32 2147483647, %v3195_v22  ;;  %vm3201_vm3 = vweird.f32 %v3195_v22 }
 0x4bb   :  { %v3258_v46 = vpop.f32.mrf.mxu1  ;;  %v3299_v48 = vpop.f32.mrf.mxu0  ;;  %4363 = vtanh.f32 %v3131_v14  ;;  %vm3187_vm6 = vcmp.eq.f32.partialorder %v3186_v13, 8.507059e+37  ;;  %v3189_v47 = vor.u32 1.1754944e-38, %v3188_v9 }
 0x4bc   :  { %v3279_v41 = vadd.f32 %v3278_v60, %v3258_v46  ;;  %v3320_v4 = vadd.f32 %v3319_v55, %v3299_v48  ;;  %v3208_v60 = vor.u32 1.1754944e-38, %v3207_v3  ;;  %vm3206_vm4 = vcmp.eq.f32.partialorder %v3205_v62, 8.507059e+37  ;;  %v6115_v3 = vld [vmem:[%s6228_s4 + $0x6] ss:$0 sm:$0xff]  ;;  %s4652_s4 = smov [#allocation8]  }
 0x4bd   :  { %s6204_s8 = sshll.u32 %s4652_s4, 4  ;;  %s3940_s8 = int_to_ptr.vmem [resolvable:$true] %s6204_s8 }
 0x4be   :  { %v4358_v44 = vpop.eup %4357  ;;  %v3281_v33 = vadd.f32 %v6082_v15, %v3279_v41  ;;  %v3322_v27 = vadd.f32 %v6088_v45, %v3320_v4 }
 0x4bf   :  { %v4360_v23 = vpop.eup %4359  ;;  %v6091_v6 = vadd.f32 1.0, %v4358_v44 }
 0x4c0   :  { %v4362_v26 = vpop.eup %4361  ;;  %v3178_v51 = vmul.f32 %v4360_v23, %v3176_v11  ;;  %v4118_v19 = vmul.f32 -1.442695, %v3281_v33  ;;  %v4119_v17 = vmul.f32 -1.442695, %v3322_v27  ;;  %vm3183_vm15 = vweird.f32 %v4360_v23  ;;  %v3360_v33 = vpop.f32.mrf.mxu3 }
 0x4c1   :  { %v3197_v54 = vmul.f32 %v4362_v26, %v3195_v22  ;;  %4365 = vrcp.f32 %v6091_v6  ;;  %vm3202_vm5 = vweird.f32 %v4362_v26  ;;  %v4364_v43 = vpop.eup %4363  ;;  %vm3184_vm1 = vmor %vm3182_vm14, %vm3183_vm15  ;;  %vm3221_vm0 = vweird.f32 %v6091_v6 }
 0x4c2   :  { %v3179_v59 = vsub.f32 1.0, %v3178_v51  ;;  %4367 = vpow2.f32 %v4118_v19  ;;  %vm3203_vm7 = vmor %vm3201_vm3, %vm3202_vm5 }
 0x4c3   :  { %v3198_v25 = vsub.f32 1.0, %v3197_v54  ;;  %4369 = vpow2.f32 %v4119_v17  ;;  %v3381_v35 = vpop.f32.mrf.mxu0  ;;  %v3340_v44 = vpop.f32.mrf.mxu1 }
 0x4c4   :  { %v3180_v0 = vmul.f32 %v4360_v23, %v3179_v59  ;;  %v3402_v42 = vadd.f32 %v3401_v7, %v3381_v35  ;;  %v3361_v7 = vadd.f32 %v3360_v33, %v3340_v44  ;;  %v3225_v35 = vand.u32 2147483647, %v6091_v6 }
 0x4c5   :  { %v3199_v53 = vmul.f32 %v4362_v26, %v3198_v25 }
 0x4c6   :  { %v3181_v61 = vadd.f32 %v4360_v23, %v3180_v0  ;;  %v3404_v50 = vadd.f32 %v6097_v38, %v3402_v42  ;;  %v3363_v9 = vadd.f32 %v6115_v3, %v3361_v7  ;;  %vm3226_vm13 = vcmp.eq.f32.partialorder %v3225_v35, 8.507059e+37 }
 0x4c7   :  { %v4366_v56 = vpop.eup %4365  ;;  %v3200_v55 = vadd.f32 %v4362_v26, %v3199_v53 }
 0x4c8   :  { %v4368_v28 = vpop.eup %4367  ;;  %v3185_v46 = vsel %vm3184_vm1, %v4360_v23, %v3181_v61  ;;  %v3217_v11 = vmul.f32 %v4366_v56, %v6091_v6  ;;  %v4120_v27 = vmul.f32 -1.442695, %v3404_v50  ;;  %vm3222_vm8 = vweird.f32 %v4366_v56 }
 0x4c9   :  { %v4370_v48 = vpop.eup %4369  ;;  %v3190_v14 = vsel %vm3187_vm6, %v3189_v47, %v3185_v46  ;;  %v3204_v41 = vsel %vm3203_vm7, %v4362_v26, %v3200_v55  ;;  %v6101_v4 = vadd.f32 1.0, %v4368_v28  ;;  %v3227_v26 = vand.u32 2147483648, %v6091_v6  ;;  %vm6119_vm10 = vmor %vm3221_vm0, %vm3222_vm8 }
 0x4ca   :  { %v3209_v22 = vsel %vm3206_vm4, %v3208_v60, %v3204_v41  ;;  %v3232_v51 = vmul.f32 %v4364_v43, %v3190_v14  ;;  %v3218_v19 = vsub.f32 1.0, %v3217_v11  ;;  %v3427_v17 = vadd.f32 1.0, %v4370_v48 }
 0x4cb   :  { %v3231_v54 = vmul.f32 %v3209_v22, %v5941_v32  ;;  %4371 = vrcp.f32 %v6101_v4  ;;  %v3228_v43 = vor.u32 1.1754944e-38, %v3227_v26  ;;  %v3418_v55 = vand.u32 2147483647, %v6101_v4 }
 0x4cc   :  { %v3219_v23 = vmul.f32 %v4366_v56, %v3218_v19  ;;  %4373 = vrcp.f32 %v3427_v17  ;;  %v3420_v60 = vand.u32 2147483648, %v6101_v4  ;;  %v3439_v48 = vand.u32 2147483648, %v3427_v17 }
 0x4cd   :  { %v3233_v59 = vadd.f32 %v3232_v51, %v3231_v54  ;;  %4375 = vpow2.f32 %v4120_v27  ;;  %vm3414_vm14 = vweird.f32 %v6101_v4  ;;  %vm3433_vm3 = vweird.f32 %v3427_v17 }
 0x4ce   :  { %v3220_v13 = vadd.f32 %v4366_v56, %v3219_v23  ;;  %v3421_v22 = vor.u32 1.1754944e-38, %v3420_v60  ;;  %v3440_v54 = vor.u32 1.1754944e-38, %v3439_v48  ;;  %vm3419_vm7 = vcmp.eq.f32.partialorder %v3418_v55, 8.507059e+37 }
 0x4cf   :  { %4377 = vtanh.f32 %v3233_v59  ;;  %v6109_v25 = vsel %vm1123_vm11, %v3233_v59, %v5941_v32 }
 0x4d0   :  { %v3224_v53 = vsel %vm6119_vm10, %v4366_v56, %v3220_v13  ;;  %4379 = vtanh.f32 %v3363_v9  ;;  %v3437_v56 = vand.u32 2147483647, %v3427_v17 }
 0x4d1   :  { %v4372_v0 = vpop.eup %4371  ;;  %v3229_v11 = vsel %vm3226_vm13, %v3228_v43, %v3224_v53 }
 0x4d2   :  { %v4374_v42 = vpop.eup %4373  ;;  %v3410_v32 = vmul.f32 %v4372_v0, %v6101_v4  ;;  %vm3415_vm15 = vweird.f32 %v4372_v0 }
 0x4d3   :  { %v3429_v61 = vmul.f32 %v4374_v42, %v3427_v17  ;;  %v4376_v50 = vpop.eup %4375  ;;  %vm3434_vm5 = vweird.f32 %v4374_v42  ;;  %vm3416_vm1 = vmor %vm3414_vm14, %vm3415_vm15 }
 0x4d4   :  { %v3411_v47 = vsub.f32 1.0, %v3410_v32  ;;  %v3447_v46 = vadd.f32 1.0, %v4376_v50  ;;  %vm3435_vm6 = vmor %vm3433_vm3, %vm3434_vm5 }
 0x4d5   :  { %v4378_v6 = vpop.eup %4377  ;;  %v3430_v28 = vsub.f32 1.0, %v3429_v61 }
 0x4d6   :  { %v3412_v14 = vmul.f32 %v4372_v0, %v3411_v47  ;;  %v3235_v41 = vmul.f32 %v4378_v6, %v3229_v11  ;;  %4381 = vrcp.f32 %v3447_v46  ;;  %v4380_v19 = vpop.eup %4379  ;;  %vm3453_vm8 = vweird.f32 %v3447_v46 }
 0x4d7   :  { %v3431_v44 = vmul.f32 %v4374_v42, %v3430_v28 }
 0x4d8   :  { %v3413_v33 = vadd.f32 %v4372_v0, %v3412_v14  ;;  %v6132_v27 = vsel %vm1123_vm11, %v3235_v41, %v5958_v58  ;;  %vm3438_vm11 = vcmp.eq.f32.partialorder %v3437_v56, 8.507059e+37 }
 0x4d9   :  { %v3432_v51 = vadd.f32 %v4374_v42, %v3431_v44  ;;  %4121 = vmatmul.msk.f32.vlgmr.msra.gmra.mxu1 %vm121_vm2, %v6132_v27  ;;  %4123 = vmatmul.msk.f32.vlgmr.msra.gmra.mxu0 %vm121_vm2, %v6132_v27 }
 0x4da   :  { %v3417_v23 = vsel %vm3416_vm1, %v4372_v0, %v3413_v33  ;;  %3716 = vmatpush.msra.mxu1 %v5964_v10  ;;  %3757 = vmatpush.msra.mxu0 %v5967_v24  ;;  %v3459_v24 = vand.u32 2147483648, %v3447_v46 }
 0x4db   :  { %v3422_v58 = vsel %vm3419_vm7, %v3421_v22, %v3417_v23  ;;  %v3436_v4 = vsel %vm3435_vm6, %v4374_v42, %v3432_v51 }
 0x4dc   :  { %v3441_v17 = vsel %vm3438_vm11, %v3440_v54, %v3436_v4  ;;  %v3464_v7 = vmul.f32 %v4380_v19, %v3422_v58  ;;  %3717 = vmatpush.msra.mxu1 %v5970_v40  ;;  %3758 = vmatpush.msra.mxu0 %v5973_v18  ;;  %v4382_v59 = vpop.eup %4381 }
 0x4dd   :  { %v3463_v13 = vmul.f32 %v3441_v17, %v5998_v29  ;;  %v3449_v26 = vmul.f32 %v4382_v59, %v3447_v46  ;;  %vm3454_vm4 = vweird.f32 %v4382_v59 }
 0x4de   :  { %3718 = vmatpush.msra.mxu1 %v5978_v2  ;;  %3759 = vmatpush.msra.mxu0 %v5981_v52  ;;  %v3457_v2 = vand.u32 2147483647, %v3447_v46  ;;  %vm3455_vm0 = vmor %vm3453_vm8, %vm3454_vm4 }
 0x4df   :  { %v3465_v10 = vadd.f32 %v3464_v7, %v3463_v13  ;;  %v3450_v9 = vsub.f32 1.0, %v3449_v26 }
 0x4e0   :  { %3719 = vmatpush.msra.mxu1 %v5984_v63  ;;  %3760 = vmatpush.msra.mxu0 %v5987_v37  ;;  %v3460_v63 = vor.u32 1.1754944e-38, %v3459_v24  ;;  %vm3458_vm10 = vcmp.eq.f32.partialorder %v3457_v2, 8.507059e+37 }
 0x4e1   :  { %4383 = vtanh.f32 %v3465_v10  ;;  %4125 = vmatmul.msk.f32.vlgmr.msrb.gmra.mxu1 %vm121_vm2, %v6132_v27  ;;  %4127 = vmatmul.msk.f32.vlgmr.msrb.gmra.mxu0 %vm121_vm2, %v6132_v27  ;;  %v6154_v40 = vsel %vm885_vm9, %v3465_v10, %v5998_v29  ;;  %v3451_v18 = vmul.f32 %v4382_v59, %v3450_v9 }
 0x4e2   :  { %3798 = vmatpush.msrb.mxu1 %v6001_v12  ;;  %3839 = vmatpush.msrb.mxu0 %v6004_v39  ;;  %v3551_v39 = vpop.f32.mrf.mxu2 }
 0x4e3   :  { %v3452_v52 = vadd.f32 %v4382_v59, %v3451_v18 }
 0x4e4   :  { %3799 = vmatpush.msrb.mxu1 %v6008_v34  ;;  %3840 = vmatpush.msrb.mxu0 %v6011_v16  ;;  %v3510_v34 = vpop.f32.mrf.mxu3 }
 0x4e5   :  { %v3456_v37 = vsel %vm3455_vm0, %v4382_v59, %v3452_v52 }
 0x4e6   :  { %3800 = vmatpush.msrb.mxu1 %v6014_v5  ;;  %3841 = vmatpush.msrb.mxu0 %v6017_v30  ;;  %v3461_v35 = vsel %vm3458_vm10, %v3460_v63, %v3456_v37 }
 0x4e7   :  { %v4384_v29 = vpop.eup %4383 }
 0x4e8   :  { %v3467_v0 = vmul.f32 %v4384_v29, %v3461_v35  ;;  %3801 = vmatpush.msrb.mxu1 %v6020_v49  ;;  %3842 = vmatpush.msrb.mxu0 %v6023_v20 }
 0x4ea   :  { %v6167_v12 = vsel %vm885_vm9, %v3467_v0, %v6029_v57  ;;  %v3633_v62 = vpop.f32.mrf.mxu2 }
 0x4eb   :  { %4132 = vmatmul.msk.f32.vlgmr.msra.gmra.mxu1 %vm121_vm2, %v6167_v12  ;;  %4134 = vmatmul.msk.f32.vlgmr.msra.gmra.mxu0 %vm121_vm2, %v6167_v12 }
 0x4ec   :  { %v3592_v53 = vpop.f32.mrf.mxu3 }
 0x4f2   :  { %v3782_v46 = vpop.f32.mrf.mxu2 }
 0x4f3   :  { %4136 = vmatmul.msk.f32.vlgmr.msrb.gmra.mxu1 %vm121_vm2, %v6167_v12  ;;  %4138 = vmatmul.msk.f32.vlgmr.msrb.gmra.mxu0 %vm121_vm2, %v6167_v12 }
 0x4fa   :  { %v3864_v7 = vpop.f32.mrf.mxu2 }
 0x556   :  { %v3490_v16 = vpop.f32.mrf.mxu1  ;;  %v3531_v5 = vpop.f32.mrf.mxu0 }
 0x557   :  { %v3511_v30 = vadd.f32 %v3510_v34, %v3490_v16  ;;  %v3552_v49 = vadd.f32 %v3551_v39, %v3531_v5 }
 0x559   :  { %v3513_v20 = vadd.f32 %v6058_v21, %v3511_v30  ;;  %v3554_v57 = vadd.f32 %v6064_v31, %v3552_v49  ;;  %v3741_v31 = vpop.f32.mrf.mxu3 }
 0x55b   :  { %v4129_v42 = vmul.f32 -1.442695, %v3513_v20  ;;  %v4130_v32 = vmul.f32 -1.442695, %v3554_v57 }
 0x55d   :  { %4385 = vpow2.f32 %v4129_v42 }
 0x55e   :  { %4387 = vpow2.f32 %v4130_v32  ;;  %v3572_v43 = vpop.f32.mrf.mxu1  ;;  %v3613_v61 = vpop.f32.mrf.mxu0 }
 0x55f   :  { %v3634_v50 = vadd.f32 %v3633_v62, %v3613_v61  ;;  %v3593_v21 = vadd.f32 %v3592_v53, %v3572_v43 }
 0x561   :  { %v3636_v47 = vadd.f32 %v6070_v1, %v3634_v50  ;;  %v3595_v41 = vadd.f32 %v6076_v36, %v3593_v21 }
 0x563   :  { %v4386_v55 = vpop.eup %4385  ;;  %v4131_v6 = vmul.f32 -1.442695, %v3636_v47 }
 0x564   :  { %v4388_v28 = vpop.eup %4387  ;;  %v3640_v60 = vadd.f32 1.0, %v4386_v55 }
 0x565   :  { %v3659_v11 = vadd.f32 1.0, %v4388_v28  ;;  %4389 = vpow2.f32 %v4131_v6 }
 0x566   :  { %4391 = vrcp.f32 %v3640_v60  ;;  %v3650_v59 = vand.u32 2147483647, %v3640_v60  ;;  %vm3646_vm15 = vweird.f32 %v3640_v60 }
 0x567   :  { %4393 = vrcp.f32 %v3659_v11  ;;  %v3671_v26 = vand.u32 2147483648, %v3659_v11  ;;  %v3669_v9 = vand.u32 2147483647, %v3659_v11  ;;  %vm3665_vm5 = vweird.f32 %v3659_v11 }
 0x568   :  { %v3721_v48 = vpop.f32.mrf.mxu1  ;;  %v3762_v14 = vpop.f32.mrf.mxu0  ;;  %4395 = vtanh.f32 %v3595_v41  ;;  %vm3651_vm3 = vcmp.eq.f32.partialorder %v3650_v59, 8.507059e+37 }
 0x569   :  { %v3742_v44 = vadd.f32 %v3741_v31, %v3721_v48  ;;  %v3783_v56 = vadd.f32 %v3782_v46, %v3762_v14  ;;  %v3672_v39 = vor.u32 1.1754944e-38, %v3671_v26  ;;  %vm3670_vm6 = vcmp.eq.f32.partialorder %v3669_v9, 8.507059e+37 }
 0x56b   :  { %v4390_v33 = vpop.eup %4389  ;;  %v3744_v1 = vadd.f32 %v6082_v15, %v3742_v44  ;;  %v3785_v22 = vadd.f32 %v6088_v45, %v3783_v56  ;;  %v3652_v15 = vand.u32 2147483648, %v3640_v60 }
 0x56c   :  { %v4392_v51 = vpop.eup %4391  ;;  %v6183_v19 = vadd.f32 1.0, %v4390_v33 }
 0x56d   :  { %v4394_v54 = vpop.eup %4393  ;;  %v3642_v23 = vmul.f32 %v4392_v51, %v3640_v60  ;;  %v4140_v58 = vmul.f32 -1.442695, %v3744_v1  ;;  %v4141_v4 = vmul.f32 -1.442695, %v3785_v22  ;;  %vm3647_vm9 = vweird.f32 %v4392_v51 }
 0x56e   :  { %v3661_v17 = vmul.f32 %v4394_v54, %v3659_v11  ;;  %4397 = vrcp.f32 %v6183_v19  ;;  %vm3666_vm13 = vweird.f32 %v4394_v54  ;;  %v4396_v2 = vpop.eup %4395  ;;  %vm3648_vm14 = vmor %vm3646_vm15, %vm3647_vm9  ;;  %v3653_v29 = vor.u32 1.1754944e-38, %v3652_v15 }
 0x56f   :  { %v3643_v36 = vsub.f32 1.0, %v3642_v23  ;;  %4399 = vpow2.f32 %v4140_v58  ;;  %vm3667_vm1 = vmor %vm3665_vm5, %vm3666_vm13  ;;  %v3689_v6 = vand.u32 2147483647, %v6183_v19  ;;  %v3691_v28 = vand.u32 2147483648, %v6183_v19 }
 0x570   :  { %v3662_v13 = vsub.f32 1.0, %v3661_v17  ;;  %4401 = vpow2.f32 %v4141_v4  ;;  %v3844_v45 = vpop.f32.mrf.mxu0  ;;  %v3803_v57 = vpop.f32.mrf.mxu1  ;;  %vm3685_vm11 = vweird.f32 %v6183_v19 }
 0x571   :  { %v3644_v10 = vmul.f32 %v4392_v51, %v3643_v36  ;;  %v3865_v24 = vadd.f32 %v3864_v7, %v3844_v45  ;;  %vm3690_vm8 = vcmp.eq.f32.partialorder %v3689_v6, 8.507059e+37  ;;  %v3692_v44 = vor.u32 1.1754944e-38, %v3691_v28 }
 0x572   :  { %v3663_v18 = vmul.f32 %v4394_v54, %v3662_v13 }
 0x573   :  { %v3645_v52 = vadd.f32 %v4392_v51, %v3644_v10  ;;  %v3867_v63 = vadd.f32 %v6097_v38, %v3865_v24  ;;  %v3823_v38 = vpop.f32.mrf.mxu3 }
 0x574   :  { %v4398_v37 = vpop.eup %4397  ;;  %v3664_v35 = vadd.f32 %v4394_v54, %v3663_v18  ;;  %v3824_v50 = vadd.f32 %v3823_v38, %v3803_v57 }
 0x575   :  { %v4400_v0 = vpop.eup %4399  ;;  %v3649_v34 = vsel %vm3648_vm14, %v4392_v51, %v3645_v52  ;;  %v3681_v16 = vmul.f32 %v4398_v37, %v6183_v19  ;;  %v4142_v62 = vmul.f32 -1.442695, %v3867_v63  ;;  %vm3686_vm7 = vweird.f32 %v4398_v37 }
 0x576   :  { %v4402_v5 = vpop.eup %4401  ;;  %v3654_v30 = vsel %vm3651_vm3, %v3653_v29, %v3649_v34  ;;  %v3668_v49 = vsel %vm3667_vm1, %v4394_v54, %v3664_v35  ;;  %v6188_v20 = vadd.f32 1.0, %v4400_v0  ;;  %v3826_v60 = vadd.f32 %v6115_v3, %v3824_v50  ;;  %vm6196_vm4 = vmor %vm3685_vm11, %vm3686_vm7 }
 0x577   :  { %v3673_v42 = vsel %vm3670_vm6, %v3672_v39, %v3668_v49  ;;  %v3696_v32 = vmul.f32 %v4396_v2, %v3654_v30  ;;  %v3682_v53 = vsub.f32 1.0, %v3681_v16  ;;  %v3890_v43 = vadd.f32 1.0, %v4402_v5 }
 0x578   :  { %v3695_v61 = vmul.f32 %v3673_v42, %v6109_v25  ;;  %4403 = vrcp.f32 %v6188_v20  ;;  %v3881_v3 = vand.u32 2147483647, %v6188_v20  ;;  %v3883_v19 = vand.u32 2147483648, %v6188_v20 }
 0x579   :  { %4405 = vrcp.f32 %v3890_v43  ;;  %v3683_v55 = vmul.f32 %v4398_v37, %v3682_v53  ;;  %v3902_v51 = vand.u32 2147483648, %v3890_v43  ;;  %v3900_v17 = vand.u32 2147483647, %v3890_v43 }
 0x57a   :  { %v3697_v47 = vadd.f32 %v3696_v32, %v3695_v61  ;;  %4407 = vpow2.f32 %v4142_v62  ;;  %vm3877_vm9 = vweird.f32 %v6188_v20  ;;  %vm3896_vm13 = vweird.f32 %v3890_v43 }
 0x57b   :  { %v3684_v46 = vadd.f32 %v4398_v37, %v3683_v55  ;;  %v3884_v59 = vor.u32 1.1754944e-38, %v3883_v19  ;;  %v3903_v15 = vor.u32 1.1754944e-38, %v3902_v51  ;;  %vm3882_vm14 = vcmp.eq.f32.partialorder %v3881_v3, 8.507059e+37 }
 0x57c   :  { %4409 = vtanh.f32 %v3697_v47  ;;  %vm3901_vm3 = vcmp.eq.f32.partialorder %v3900_v17, 8.507059e+37  ;;  %vm6341_vm11 = vcmp.gt.s32.totalorder %v5017_v8, 0 }
 0x57d   :  { %v3688_v48 = vsel %vm6196_vm4, %v4398_v37, %v3684_v46  ;;  %4411 = vtanh.f32 %v3826_v60 }
 0x57e   :  { %v4404_v11 = vpop.eup %4403  ;;  %v3693_v54 = vsel %vm3690_vm8, %v3692_v44, %v3688_v48 }
 0x57f   :  { %v4406_v21 = vpop.eup %4405  ;;  %v3873_v31 = vmul.f32 %v4404_v11, %v6188_v20  ;;  %vm3878_vm0 = vweird.f32 %v4404_v11 }
 0x580   :  { %v4408_v14 = vpop.eup %4407  ;;  %v3892_v41 = vmul.f32 %v4406_v21, %v3890_v43  ;;  %vm3897_vm10 = vweird.f32 %v4406_v21  ;;  %vm3879_vm15 = vmor %vm3877_vm9, %vm3878_vm0 }
 0x581   :  { %v3874_v56 = vsub.f32 1.0, %v3873_v31  ;;  %v3910_v33 = vadd.f32 1.0, %v4408_v14  ;;  %vm3898_vm5 = vmor %vm3896_vm13, %vm3897_vm10 }
 0x582   :  { %v4410_v1 = vpop.eup %4409  ;;  %v3893_v22 = vsub.f32 1.0, %v3892_v41 }
 0x583   :  { %v3875_v23 = vmul.f32 %v4404_v11, %v3874_v56  ;;  %4413 = vrcp.f32 %v3910_v33  ;;  %v3699_v58 = vmul.f32 %v4410_v1, %v3693_v54  ;;  %v4412_v26 = vpop.eup %4411  ;;  %v3922_v35 = vand.u32 2147483648, %v3910_v33 }
 0x584   :  { %v3894_v4 = vmul.f32 %v4406_v21, %v3893_v22  ;;  %v3920_v0 = vand.u32 2147483647, %v3910_v33  ;;  %vm3916_vm1 = vweird.f32 %v3910_v33 }
 0x585   :  { %v3876_v7 = vadd.f32 %v4404_v11, %v3875_v23  ;;  %v3700_v36 = vsel %vm647_vm12, %v3699_v58, %v6132_v27  ;;  %v3923_v16 = vor.u32 1.1754944e-38, %v3922_v35 }
 0x586   :  { %v3895_v13 = vadd.f32 %v4406_v21, %v3894_v4  ;;  %3932 = vst.msk [vmem:[#allocation8] sm:$0xff] %vm121_vm2, %v3700_v36  ;;  %vm3921_vm7 = vcmp.eq.f32.partialorder %v3920_v0, 8.507059e+37 }
 0x587   :  { %v3880_v45 = vsel %vm3879_vm15, %v4404_v11, %v3876_v7  ;;  %3944 = dma.vmem_to_hbm [thread:$0]  %s3940_s8, 128, %s3942_s11, [#allocation4]  }
 0x588   :  { %v3885_v10 = vsel %vm3882_vm14, %v3884_v59, %v3880_v45  ;;  %v3899_v9 = vsel %vm3898_vm5, %v4406_v21, %v3895_v13 }
 0x589   :  { %v4414_v24 = vpop.eup %4413  ;;  %v3904_v18 = vsel %vm3901_vm3, %v3903_v15, %v3899_v9  ;;  %v3927_v2 = vmul.f32 %v4412_v26, %v3885_v10 }
 0x58a   :  { %v3926_v27 = vmul.f32 %v3904_v18, %v6154_v40  ;;  %v3912_v52 = vmul.f32 %v4414_v24, %v3910_v33  ;;  %vm3917_vm12 = vweird.f32 %v4414_v24 }
 0x58b   :  { %vm3918_vm6 = vmor %vm3916_vm1, %vm3917_vm12 }
 0x58c   :  { %v3928_v63 = vadd.f32 %v3927_v2, %v3926_v27  ;;  %v3913_v37 = vsub.f32 1.0, %v3912_v52 }
 0x58e   :  { %4415 = vtanh.f32 %v3928_v63  ;;  %v3914_v29 = vmul.f32 %v4414_v24, %v3913_v37 }
 0x590   :  { %v3915_v39 = vadd.f32 %v4414_v24, %v3914_v29 }
 0x592   :  { %v3919_v34 = vsel %vm3918_vm6, %v4414_v24, %v3915_v39 }
 0x593   :  { %v3924_v5 = vsel %vm3921_vm7, %v3923_v16, %v3919_v34 }
 0x594   :  { %v4416_v40 = vpop.eup %4415 }
 0x595   :  { %v3930_v30 = vmul.f32 %v4416_v40, %v3924_v5 }
 0x597   :  { %v3931_v49 = vsel %vm6341_vm11, %v3930_v30, %v6167_v12 }
 0x598   :  { %3933 = vst.msk [vmem:[#allocation9] sm:$0xff] %vm121_vm2, %v3931_v49 }
 0x599   :  { %3955 = dma.vmem_to_hbm [thread:$0]  %s3951_s2, 128, %s3953_s3, [#allocation10]  }
 0x59a   :  { %4641 = dma.done.wait [#allocation4], 128  }
 0x59b   :  { %4642 = vsyncadd [#allocation4], 4294967168 }
 0x59c   :  { %4643 = dma.done.wait [#allocation10], 128  }
 0x59d   :  { %4644 = vsyncadd [#allocation10], 4294967168 }
 0x59e   :  { %3964 = vsyncpa [#allocation3], 1 }
 0x59f   :  { %3965 = vsyncpa [#allocation6], 1 }
 0x5a0   :  { %3966 = vsyncpa [#allocation4], 1 }
 0x5a1   :  { %3967 = vsyncpa [#allocation10], 1 }

</bundles_post_ra>
